<compile_context>
chip_gen: v6e
topology: v6e:2x2x1
jax: 0.10.0
libtpu: 0.0.40
codegen_flags: <defaults>
</compile_context>

<pallas_src>
import numpy as np
import jax
import jax.numpy as jnp
from jax import lax
from jax.experimental import pallas as pl
from jax.experimental.pallas import tpu as pltpu


def _round_up(x, m):
    return ((x + m - 1) // m) * m


# ----------------------------- Pallas kernel ---------------------------------

def _make_encoder_kernel(n_layers, seq_len, hid_pad, unroll):
    """Fused multi-layer LSTM + last-valid-timestep gather (single invocation)."""
    T = seq_len
    Hp = hid_pad
    G = 4 * Hp

    def kernel(*refs):
        # refs: lens, emb, (w_ih, w_hh, bias) * n_layers, out, seq_buf, z_buf
        lens_ref = refs[0]                           # (B_blk, 1) int32
        emb_ref = refs[1]                            # (T, B_blk, E_pad) bf16
        layer_refs = refs[2:2 + 3 * n_layers]
        o_ref = refs[2 + 3 * n_layers]               # (B_blk, Hp) f32
        seq_buf = refs[2 + 3 * n_layers + 1]         # (T, B_blk, Hp) bf16 scratch
        z_buf = refs[2 + 3 * n_layers + 2]           # (T, B_blk, G) bf16 scratch

        B_blk = emb_ref.shape[1]
        tsel = lens_ref[...] - 1                     # (B_blk, 1) gather time idx

        for layer in range(n_layers):                # unrolled at trace time
            wih_ref, whh_ref, b_ref = layer_refs[3 * layer:3 * layer + 3]
            d_in = wih_ref.shape[0]
            is_top = (layer == n_layers - 1)

            # ---- hoisted input projection: ONE bf16 MXU matmul per layer ----
            # (reshape is layout-free: last dim % 128 == 0, second-minor % 16 == 0)
            if layer == 0:
                x_flat = emb_ref[...].reshape(T * B_blk, d_in)
            else:
                x_flat = seq_buf[...].reshape(T * B_blk, d_in)
            z_all = (jnp.dot(x_flat, wih_ref[...],
                             preferred_element_type=jnp.float32)
                     + b_ref[...])                   # f32 accumulate, bias fused
            z_buf[...] = z_all.reshape(T, B_blk, G).astype(z_buf.dtype)

            whh = whh_ref[...]                       # bf16, loop-invariant hoist

            def cell(t, h_bf, c):
                # Only the recurrent matmul stays inside the time loop.
                z = (z_buf[t].astype(jnp.float32)
                     + jnp.dot(h_bf, whh, preferred_element_type=jnp.float32))
                # PyTorch gate order: input, forget, cell(g), output.
                # Each gate slice is a whole 128-lane tile (Hp % 128 == 0).
                i_g = jax.nn.sigmoid(z[:, 0 * Hp:1 * Hp])
                f_g = jax.nn.sigmoid(z[:, 1 * Hp:2 * Hp])
                g_g = jnp.tanh(z[:, 2 * Hp:3 * Hp])
                o_g = jax.nn.sigmoid(z[:, 3 * Hp:4 * Hp])
                c_new = f_g * c + i_g * g_g
                h_new = o_g * jnp.tanh(c_new)
                return h_new, c_new

            h0 = jnp.zeros((B_blk, Hp), jnp.bfloat16)
            c0 = jnp.zeros((B_blk, Hp), jnp.float32)

            if is_top:
                # Gather kept in the loop carry; o_ref written once after loop.
                def step_top(t, carry):
                    h_bf, c, o_acc = carry
                    h_new, c_new = cell(t, h_bf, c)
                    o_acc = jnp.where(tsel == t, h_new, o_acc)
                    return (h_new.astype(jnp.bfloat16), c_new, o_acc)

                o0 = jnp.zeros((B_blk, Hp), jnp.float32)
                _, _, o_final = lax.fori_loop(0, T, step_top, (h0, c0, o0),
                                              unroll=unroll)
                o_ref[...] = o_final                 # single output store
            else:
                def step_mid(t, carry):
                    h_bf, c = carry
                    h_new, c_new = cell(t, h_bf, c)
                    h_new_bf = h_new.astype(jnp.bfloat16)
                    seq_buf[t] = h_new_bf            # feed the next layer
                    return (h_new_bf, c_new)

                lax.fori_loop(0, T, step_mid, (h0, c0), unroll=unroll)

    return kernel


def encoder_gather_pallas(lens_padded, emb_padded, layers_kernel, hid_pad,
                          batch_block):
    """Run the fused encoder kernel. Returns gathered top-layer h: (B_pad, Hp)."""
    T, B_pad, E_pad = emb_padded.shape
    Hp = hid_pad
    n_layers = len(layers_kernel)
    B_blk = batch_block
    n_blocks = B_pad // B_blk

    flat_weights = []
    in_specs = [
        pl.BlockSpec((B_blk, 1), lambda b: (b, 0)),               # lens
        pl.BlockSpec((T, B_blk, E_pad), lambda b: (0, b, 0)),     # embedded
    ]
    for (w_ih_t, w_hh_t, bias) in layers_kernel:
        flat_weights += [w_ih_t, w_hh_t, bias]
        # Weights: full block, same index every grid step -> stay resident.
        in_specs += [
            pl.BlockSpec(w_ih_t.shape, lambda b: (0, 0)),
            pl.BlockSpec(w_hh_t.shape, lambda b: (0, 0)),
            pl.BlockSpec(bias.shape, lambda b: (0, 0)),
        ]

    out_specs = pl.BlockSpec((B_blk, Hp), lambda b: (b, 0))
    scratch_shapes = [
        pltpu.VMEM((T, B_blk, Hp), jnp.bfloat16),        # inter-layer activations
        pltpu.VMEM((T, B_blk, 4 * Hp), jnp.bfloat16),    # hoisted gate pre-acts
    ]

    # VMEM budget: double-buffered resident blocks + scratch, with headroom,
    # capped below v7x's 64 MiB physical VMEM.
    blk_bytes = (B_blk * 1 * 4                      # lens block (i32)
                 + T * B_blk * E_pad * 2            # emb block (bf16)
                 + B_blk * Hp * 4)                  # out block (f32)
    w_bytes = sum(int(np.prod(w.shape)) * w.dtype.itemsize for w in flat_weights)
    scratch_bytes = T * B_blk * Hp * 2 + T * B_blk * 4 * Hp * 2
    est = 2 * (blk_bytes + w_bytes) + scratch_bytes
    vmem_limit = int(min(max(2 * est, 32 * 1024 * 1024), 64 * 1024 * 1024))

    kernel = _make_encoder_kernel(n_layers, T, Hp, unroll=min(8, T))
    return pl.pallas_call(
        kernel,
        out_shape=jax.ShapeDtypeStruct((B_pad, Hp), jnp.float32),
        grid_spec=pltpu.PrefetchScalarGridSpec(
            num_scalar_prefetch=0,
            grid=(n_blocks,),
            in_specs=in_specs,
            out_specs=out_specs,
            scratch_shapes=scratch_shapes),
        compiler_params=pltpu.CompilerParams(
            dimension_semantics=("parallel",),        # batch blocks -> 2 TCs on v7x
            vmem_limit_bytes=vmem_limit),
    )(lens_padded, emb_padded, *flat_weights)


# ------------------------------ Encoder model --------------------------------

class EncoderPallas:
    def __init__(self, input_dim, emb_dim, hid_dim, n_layers, dropout, key):
        self.emb_dim = emb_dim
        self.hid_dim = hid_dim
        self.n_layers = n_layers
        self.emb_pad = _round_up(emb_dim, 128)
        self.hid_pad = _round_up(hid_dim, 128)
        Hp = self.hid_pad
        H = hid_dim

        k_emb, key = jax.random.split(key)
        # nn.Embedding init: N(0, 1)  (f32 canonical copy for the reference)
        self.embeddings = jax.random.normal(k_emb, (input_dim, emb_dim),
                                            dtype=jnp.float32)
        # Kernel-side table: lane-padded + bf16 (feeds the MXU directly).
        self.emb_table_kernel = jnp.pad(
            self.embeddings, ((0, 0), (0, self.emb_pad - emb_dim))
        ).astype(jnp.bfloat16)

        bound = 1.0 / np.sqrt(hid_dim)
        self.layers_ref = []       # f32, unpadded  (pure-JAX reference)
        self.layers_kernel = []    # bf16, lane-padded (Pallas kernel)
        for layer in range(n_layers):
            d_in = emb_dim if layer == 0 else hid_dim
            d_in_pad = self.emb_pad if layer == 0 else Hp
            k1, k2, k3, k4, key = jax.random.split(key, 5)
            w_ih = jax.random.uniform(k1, (4 * H, d_in),
                                      minval=-bound, maxval=bound,
                                      dtype=jnp.float32)
            w_hh = jax.random.uniform(k2, (4 * H, H),
                                      minval=-bound, maxval=bound,
                                      dtype=jnp.float32)
            b_ih = jax.random.uniform(k3, (4 * H,),
                                      minval=-bound, maxval=bound,
                                      dtype=jnp.float32)
            b_hh = jax.random.uniform(k4, (4 * H,),
                                      minval=-bound, maxval=bound,
                                      dtype=jnp.float32)
            w_ih_t = w_ih.T                        # (d_in, 4H)
            w_hh_t = w_hh.T                        # (H, 4H)
            bias = (b_ih + b_hh).reshape(1, 4 * H)
            self.layers_ref.append((w_ih_t, w_hh_t, bias))

            # Lane-pad so each gate occupies whole 128-lane tiles (i/f/g/o at
            # offsets g*Hp); padded rows/cols are zero so they never leak into
            # the real lanes.  Bias stays f32 (added to the f32 accumulation).
            wih_p = jnp.zeros((d_in_pad, 4 * Hp), jnp.float32)
            whh_p = jnp.zeros((Hp, 4 * Hp), jnp.float32)
            bias_p = jnp.zeros((1, 4 * Hp), jnp.float32)
            for g in range(4):
                wih_p = wih_p.at[:d_in, g * Hp:g * Hp + H].set(
                    w_ih_t[:, g * H:(g + 1) * H])
                whh_p = whh_p.at[:H, g * Hp:g * Hp + H].set(
                    w_hh_t[:, g * H:(g + 1) * H])
                bias_p = bias_p.at[:, g * Hp:g * Hp + H].set(
                    bias[:, g * H:(g + 1) * H])
            self.layers_kernel.append((wih_p.astype(jnp.bfloat16),
                                       whh_p.astype(jnp.bfloat16),
                                       bias_p))

    def __call__(self, src, src_lengths):
        # src: (T, B) int32, src_lengths: (B,) int32
        T, B = src.shape
        H, Hp = self.hid_dim, self.hid_pad
        # Pad batch to the bf16 sublane-packing size (16); batch block <= 128
        # rows (MXU height) so large batches split across grid steps / cores.
        B_pad = _round_up(max(B, 16), 16)
        B_blk = min(B_pad, 128)
        B_pad = _round_up(B_pad, B_blk)

        # Pad the integer token ids (cheap) instead of padding f32 activations;
        # embedding gather from the bf16 lane-padded table (glue).  Dropout is
        # identity (eval mode).
        src_p = jnp.pad(src.astype(jnp.int32), ((0, 0), (0, B_pad - B)))
        emb_p = self.emb_table_kernel[src_p]               # (T, B_pad, E_pad) bf16
        lens_p = jnp.pad(src_lengths.astype(jnp.int32), (0, B_pad - B),
                         constant_values=1).reshape(B_pad, 1)

        gathered_p = encoder_gather_pallas(lens_p, emb_p, self.layers_kernel,
                                           Hp, B_blk)      # (B_pad, Hp) f32
        gathered = gathered_p[:B, :H]

        # hidden_out[0] = outputs[src_lengths-1, batch]; everything else zero,
        # matching the PyTorch module's explicit zeroing of hidden/cell.
        hidden_out = jnp.zeros((self.n_layers, B, H), jnp.float32)
        cell_out = jnp.zeros((self.n_layers, B, H), jnp.float32)
        hidden_out = hidden_out.at[0].set(gathered)
        return hidden_out, cell_out


# --------------------------- pure-JAX reference -------------------------------

def _lstm_layer_ref(x_seq, w_ih_t, w_hh_t, bias):
    T, B, _ = x_seq.shape
    H = w_hh_t.shape[0]

    def step(carry, x_t):
        h, c = carry
        z = x_t @ w_ih_t + h @ w_hh_t + bias
        i_g = jax.nn.sigmoid(z[:, 0 * H:1 * H])
        f_g = jax.nn.sigmoid(z[:, 1 * H:2 * H])
        g_g = jnp.tanh(z[:, 2 * H:3 * H])
        o_g = jax.nn.sigmoid(z[:, 3 * H:4 * H])
        c = f_g * c + i_g * g_g
        h = o_g * jnp.tanh(c)
        return (h, c), h

    init = (jnp.zeros((B, H), jnp.float32), jnp.zeros((B, H), jnp.float32))
    _, h_seq = jax.lax.scan(step, init, x_seq)
    return h_seq


def encoder_ref(model, src, src_lengths):
    T, B = src.shape
    x = model.embeddings[src]
    for (w_ih_t, w_hh_t, bias) in model.layers_ref:
        x = _lstm_layer_ref(x, w_ih_t, w_hh_t, bias)
    gathered = x[src_lengths - 1, jnp.arange(B)]
    hidden_out = jnp.zeros((model.n_layers, B, model.hid_dim), jnp.float32)
    cell_out = jnp.zeros((model.n_layers, B, model.hid_dim), jnp.float32)
    hidden_out = hidden_out.at[0].set(gathered)
    return hidden_out, cell_out


# ---------------------------------- main --------------------------------------

if __name__ == "__main__":
    INPUT_DIM = 50   # vocab size
    EMB_DIM = 16
    HID_DIM = 32
    N_LAYERS = 2
    DROPOUT = 0.1    # identity in eval mode
    T, B = 8, 2

    key = jax.random.PRNGKey(0)
    k_model, k_src, k_len = jax.random.split(key, 3)

    model = EncoderPallas(INPUT_DIM, EMB_DIM, HID_DIM, N_LAYERS, DROPOUT, k_model)

    src = jax.random.randint(k_src, (T, B), 0, INPUT_DIM, dtype=jnp.int32)
    src_lengths = jax.random.randint(k_len, (B,), 1, T + 1, dtype=jnp.int32)

    hidden_out, cell_out = model(src, src_lengths)
    hidden_out, cell_out = jax.block_until_ready((hidden_out, cell_out))

    # Validate against a pure-JAX f32 reference.  Kernel uses bf16 matmuls /
    # bf16 scratch, so tolerances are loosened accordingly (~1e-2 regime).
    h_ref, c_ref = encoder_ref(model, src, src_lengths)
    assert hidden_out.shape == (N_LAYERS, B, HID_DIM)
    assert cell_out.shape == (N_LAYERS, B, HID_DIM)
    assert np.allclose(np.asarray(hidden_out), np.asarray(h_ref),
                       atol=3e-2, rtol=3e-2)
    assert np.allclose(np.asarray(cell_out), np.asarray(c_ref),
                       atol=3e-2, rtol=3e-2)

    print("KERNEL_OK")
</pallas_src>

<mosaic_0001>
module attributes {stable_mosaic.version = 11 : i64} {
  func.func @kernel(%arg0: i32, %arg1: memref<16x1xi32, #tpu.memory_space<vmem>>, %arg2: memref<8x16x128xbf16, #tpu.memory_space<vmem>>, %arg3: memref<128x512xbf16, #tpu.memory_space<vmem>>, %arg4: memref<128x512xbf16, #tpu.memory_space<vmem>>, %arg5: memref<1x512xf32, #tpu.memory_space<vmem>>, %arg6: memref<128x512xbf16, #tpu.memory_space<vmem>>, %arg7: memref<128x512xbf16, #tpu.memory_space<vmem>>, %arg8: memref<1x512xf32, #tpu.memory_space<vmem>>, %arg9: memref<16x128xf32, #tpu.memory_space<vmem>>, %arg10: memref<8x16x128xbf16, #tpu.memory_space<vmem>>, %arg11: memref<8x16x512xbf16, #tpu.memory_space<vmem>>) attributes {dimension_semantics = [#tpu.dimension_semantics<parallel>], iteration_bounds = array<i64: 1>, scalar_prefetch = 0 : i64, scratch_operands = 2 : i64, tpu.core_type = #tpu.core_type<tc>, window_params = [{transform_indices = @transform_0, window_bounds = array<i64: 16, 1>}, {transform_indices = @transform_1, window_bounds = array<i64: 8, 16, 128>}, {pipeline_mode = #tpu.pipeline_mode<synchronous>, transform_indices = @transform_2, window_bounds = array<i64: 128, 512>}, {pipeline_mode = #tpu.pipeline_mode<synchronous>, transform_indices = @transform_3, window_bounds = array<i64: 128, 512>}, {pipeline_mode = #tpu.pipeline_mode<synchronous>, transform_indices = @transform_4, window_bounds = array<i64: 1, 512>}, {pipeline_mode = #tpu.pipeline_mode<synchronous>, transform_indices = @transform_5, window_bounds = array<i64: 128, 512>}, {pipeline_mode = #tpu.pipeline_mode<synchronous>, transform_indices = @transform_6, window_bounds = array<i64: 128, 512>}, {pipeline_mode = #tpu.pipeline_mode<synchronous>, transform_indices = @transform_7, window_bounds = array<i64: 1, 512>}, {transform_indices = @transform_8, window_bounds = array<i64: 16, 128>}]} {
    %c0 = arith.constant 0 : index
    %c0_0 = arith.constant 0 : index
    %0 = vector.load %arg1[%c0, %c0_0] : memref<16x1xi32, #tpu.memory_space<vmem>>, vector<16x1xi32>
    %c1_i32 = arith.constant 1 : i32
    %1 = vector.broadcast %c1_i32 : i32 to vector<16x1xi32>
    %2 = arith.subi %0, %1 : vector<16x1xi32>
    %c0_1 = arith.constant 0 : index
    %c0_2 = arith.constant 0 : index
    %c0_3 = arith.constant 0 : index
    %3 = vector.load %arg2[%c0_1, %c0_2, %c0_3] : memref<8x16x128xbf16, #tpu.memory_space<vmem>>, vector<8x16x128xbf16>
    %4 = vector.shape_cast %3 : vector<8x16x128xbf16> to vector<128x128xbf16>
    %c0_4 = arith.constant 0 : index
    %c0_5 = arith.constant 0 : index
    %5 = vector.load %arg3[%c0_4, %c0_5] : memref<128x512xbf16, #tpu.memory_space<vmem>>, vector<128x512xbf16>
    %cst = arith.constant dense<0.000000e+00> : vector<128x512xf32>
    %6 = tpu.matmul %4, %5, %cst {dimension_numbers = #tpu.dot_dimension_numbers<[1], [0], [0], [1], [0, 0, 1, 1], [], []>} : vector<128x128xbf16>, vector<128x512xbf16>, vector<128x512xf32> -> vector<128x512xf32>
    %c0_6 = arith.constant 0 : index
    %c0_7 = arith.constant 0 : index
    %7 = vector.load %arg5[%c0_6, %c0_7] : memref<1x512xf32, #tpu.memory_space<vmem>>, vector<1x512xf32>
    %8 = vector.broadcast %7 : vector<1x512xf32> to vector<128x512xf32>
    %9 = arith.addf %6, %8 : vector<128x512xf32>
    %10 = vector.shape_cast %9 : vector<128x512xf32> to vector<8x16x512xf32>
    %11 = arith.truncf %10 : vector<8x16x512xf32> to vector<8x16x512xbf16>
    %c0_8 = arith.constant 0 : index
    %c0_9 = arith.constant 0 : index
    %c0_10 = arith.constant 0 : index
    %12 = vector.load %arg11[%c0_8, %c0_9, %c0_10] : memref<8x16x512xbf16, #tpu.memory_space<vmem>>, vector<8x16x512xbf16>
    tpu.vector_store %arg11[%c0_8, %c0_9, %c0_10], %11 {strides = array<i32>} : memref<8x16x512xbf16, #tpu.memory_space<vmem>>, vector<8x16x512xbf16>,
    %c0_11 = arith.constant 0 : index
    %c0_12 = arith.constant 0 : index
    %13 = vector.load %arg4[%c0_11, %c0_12] : memref<128x512xbf16, #tpu.memory_space<vmem>>, vector<128x512xbf16>
    %cst_13 = arith.constant 0.000000e+00 : bf16
    %14 = vector.broadcast %cst_13 : bf16 to vector<16x128xbf16>
    %cst_14 = arith.constant 0.000000e+00 : f32
    %15 = vector.broadcast %cst_14 : f32 to vector<16x128xf32>
    %c0_i32 = arith.constant 0 : i32
    %16 = arith.index_cast %c0_i32 : i32 to index
    %c0_15 = arith.constant 0 : index
    %c0_16 = arith.constant 0 : index
    %17 = vector.load %arg11[%16, %c0_15, %c0_16] : memref<8x16x512xbf16, #tpu.memory_space<vmem>>, vector<1x16x512xbf16>
    %18 = vector.shape_cast %17 : vector<1x16x512xbf16> to vector<16x512xbf16>
    %19 = arith.extf %18 : vector<16x512xbf16> to vector<16x512xf32>
    %cst_17 = arith.constant dense<0.000000e+00> : vector<16x512xf32>
    %20 = tpu.matmul %14, %13, %cst_17 {dimension_numbers = #tpu.dot_dimension_numbers<[1], [0], [0], [1], [0, 0, 1, 1], [], []>} : vector<16x128xbf16>, vector<128x512xbf16>, vector<16x512xf32> -> vector<16x512xf32>
    %21 = arith.addf %19, %20 : vector<16x512xf32>
    %22 = vector.extract_strided_slice %21 {offsets = [0, 0], sizes = [16, 128], strides = [1, 1]} : vector<16x512xf32> to vector<16x128xf32>
    %23 = arith.negf %22 : vector<16x128xf32>
    %24 = math.exp %23 : vector<16x128xf32>
    %cst_18 = arith.constant 1.000000e+00 : f32
    %25 = vector.broadcast %cst_18 : f32 to vector<16x128xf32>
    %26 = arith.addf %25, %24 : vector<16x128xf32>
    %27 = arith.divf %25, %26 : vector<16x128xf32>
    %28 = vector.extract_strided_slice %21 {offsets = [0, 128], sizes = [16, 128], strides = [1, 1]} : vector<16x512xf32> to vector<16x128xf32>
    %29 = arith.negf %28 : vector<16x128xf32>
    %30 = math.exp %29 : vector<16x128xf32>
    %cst_19 = arith.constant 1.000000e+00 : f32
    %31 = vector.broadcast %cst_19 : f32 to vector<16x128xf32>
    %32 = arith.addf %31, %30 : vector<16x128xf32>
    %33 = arith.divf %31, %32 : vector<16x128xf32>
    %34 = vector.extract_strided_slice %21 {offsets = [0, 256], sizes = [16, 128], strides = [1, 1]} : vector<16x512xf32> to vector<16x128xf32>
    %35 = math.tanh %34 : vector<16x128xf32>
    %36 = vector.extract_strided_slice %21 {offsets = [0, 384], sizes = [16, 128], strides = [1, 1]} : vector<16x512xf32> to vector<16x128xf32>
    %37 = arith.negf %36 : vector<16x128xf32>
    %38 = math.exp %37 : vector<16x128xf32>
    %cst_20 = arith.constant 1.000000e+00 : f32
    %39 = vector.broadcast %cst_20 : f32 to vector<16x128xf32>
    %40 = arith.addf %39, %38 : vector<16x128xf32>
    %41 = arith.divf %39, %40 : vector<16x128xf32>
    %42 = arith.mulf %33, %15 : vector<16x128xf32>
    %43 = arith.mulf %27, %35 : vector<16x128xf32>
    %44 = arith.addf %42, %43 : vector<16x128xf32>
    %45 = math.tanh %44 : vector<16x128xf32>
    %46 = arith.mulf %41, %45 : vector<16x128xf32>
    %47 = arith.truncf %46 : vector<16x128xf32> to vector<16x128xbf16>
    %48 = arith.index_cast %c0_i32 : i32 to index
    %c0_21 = arith.constant 0 : index
    %c0_22 = arith.constant 0 : index
    %49 = vector.load %arg10[%48, %c0_21, %c0_22] : memref<8x16x128xbf16, #tpu.memory_space<vmem>>, vector<1x16x128xbf16>
    %50 = vector.shape_cast %49 : vector<1x16x128xbf16> to vector<16x128xbf16>
    %51 = vector.shape_cast %47 : vector<16x128xbf16> to vector<1x16x128xbf16>
    tpu.vector_store %arg10[%48, %c0_21, %c0_22], %51 {strides = array<i32>} : memref<8x16x128xbf16, #tpu.memory_space<vmem>>, vector<1x16x128xbf16>,
    %c1_i32_23 = arith.constant 1 : i32
    %52 = arith.index_cast %c1_i32_23 : i32 to index
    %c0_24 = arith.constant 0 : index
    %c0_25 = arith.constant 0 : index
    %53 = vector.load %arg11[%52, %c0_24, %c0_25] : memref<8x16x512xbf16, #tpu.memory_space<vmem>>, vector<1x16x512xbf16>
    %54 = vector.shape_cast %53 : vector<1x16x512xbf16> to vector<16x512xbf16>
    %55 = arith.extf %54 : vector<16x512xbf16> to vector<16x512xf32>
    %cst_26 = arith.constant dense<0.000000e+00> : vector<16x512xf32>
    %56 = tpu.matmul %47, %13, %cst_26 {dimension_numbers = #tpu.dot_dimension_numbers<[1], [0], [0], [1], [0, 0, 1, 1], [], []>} : vector<16x128xbf16>, vector<128x512xbf16>, vector<16x512xf32> -> vector<16x512xf32>
    %57 = arith.addf %55, %56 : vector<16x512xf32>
    %58 = vector.extract_strided_slice %57 {offsets = [0, 0], sizes = [16, 128], strides = [1, 1]} : vector<16x512xf32> to vector<16x128xf32>
    %59 = arith.negf %58 : vector<16x128xf32>
    %60 = math.exp %59 : vector<16x128xf32>
    %cst_27 = arith.constant 1.000000e+00 : f32
    %61 = vector.broadcast %cst_27 : f32 to vector<16x128xf32>
    %62 = arith.addf %61, %60 : vector<16x128xf32>
    %63 = arith.divf %61, %62 : vector<16x128xf32>
    %64 = vector.extract_strided_slice %57 {offsets = [0, 128], sizes = [16, 128], strides = [1, 1]} : vector<16x512xf32> to vector<16x128xf32>
    %65 = arith.negf %64 : vector<16x128xf32>
    %66 = math.exp %65 : vector<16x128xf32>
    %cst_28 = arith.constant 1.000000e+00 : f32
    %67 = vector.broadcast %cst_28 : f32 to vector<16x128xf32>
    %68 = arith.addf %67, %66 : vector<16x128xf32>
    %69 = arith.divf %67, %68 : vector<16x128xf32>
    %70 = vector.extract_strided_slice %57 {offsets = [0, 256], sizes = [16, 128], strides = [1, 1]} : vector<16x512xf32> to vector<16x128xf32>
    %71 = math.tanh %70 : vector<16x128xf32>
    %72 = vector.extract_strided_slice %57 {offsets = [0, 384], sizes = [16, 128], strides = [1, 1]} : vector<16x512xf32> to vector<16x128xf32>
    %73 = arith.negf %72 : vector<16x128xf32>
    %74 = math.exp %73 : vector<16x128xf32>
    %cst_29 = arith.constant 1.000000e+00 : f32
    %75 = vector.broadcast %cst_29 : f32 to vector<16x128xf32>
    %76 = arith.addf %75, %74 : vector<16x128xf32>
    %77 = arith.divf %75, %76 : vector<16x128xf32>
    %78 = arith.mulf %69, %44 : vector<16x128xf32>
    %79 = arith.mulf %63, %71 : vector<16x128xf32>
    %80 = arith.addf %78, %79 : vector<16x128xf32>
    %81 = math.tanh %80 : vector<16x128xf32>
    %82 = arith.mulf %77, %81 : vector<16x128xf32>
    %83 = arith.truncf %82 : vector<16x128xf32> to vector<16x128xbf16>
    %84 = arith.index_cast %c1_i32_23 : i32 to index
    %c0_30 = arith.constant 0 : index
    %c0_31 = arith.constant 0 : index
    %85 = vector.load %arg10[%84, %c0_30, %c0_31] : memref<8x16x128xbf16, #tpu.memory_space<vmem>>, vector<1x16x128xbf16>
    %86 = vector.shape_cast %85 : vector<1x16x128xbf16> to vector<16x128xbf16>
    %87 = vector.shape_cast %83 : vector<16x128xbf16> to vector<1x16x128xbf16>
    tpu.vector_store %arg10[%84, %c0_30, %c0_31], %87 {strides = array<i32>} : memref<8x16x128xbf16, #tpu.memory_space<vmem>>, vector<1x16x128xbf16>,
    %c2_i32 = arith.constant 2 : i32
    %88 = arith.index_cast %c2_i32 : i32 to index
    %c0_32 = arith.constant 0 : index
    %c0_33 = arith.constant 0 : index
    %89 = vector.load %arg11[%88, %c0_32, %c0_33] : memref<8x16x512xbf16, #tpu.memory_space<vmem>>, vector<1x16x512xbf16>
    %90 = vector.shape_cast %89 : vector<1x16x512xbf16> to vector<16x512xbf16>
    %91 = arith.extf %90 : vector<16x512xbf16> to vector<16x512xf32>
    %cst_34 = arith.constant dense<0.000000e+00> : vector<16x512xf32>
    %92 = tpu.matmul %83, %13, %cst_34 {dimension_numbers = #tpu.dot_dimension_numbers<[1], [0], [0], [1], [0, 0, 1, 1], [], []>} : vector<16x128xbf16>, vector<128x512xbf16>, vector<16x512xf32> -> vector<16x512xf32>
    %93 = arith.addf %91, %92 : vector<16x512xf32>
    %94 = vector.extract_strided_slice %93 {offsets = [0, 0], sizes = [16, 128], strides = [1, 1]} : vector<16x512xf32> to vector<16x128xf32>
    %95 = arith.negf %94 : vector<16x128xf32>
    %96 = math.exp %95 : vector<16x128xf32>
    %cst_35 = arith.constant 1.000000e+00 : f32
    %97 = vector.broadcast %cst_35 : f32 to vector<16x128xf32>
    %98 = arith.addf %97, %96 : vector<16x128xf32>
    %99 = arith.divf %97, %98 : vector<16x128xf32>
    %100 = vector.extract_strided_slice %93 {offsets = [0, 128], sizes = [16, 128], strides = [1, 1]} : vector<16x512xf32> to vector<16x128xf32>
    %101 = arith.negf %100 : vector<16x128xf32>
    %102 = math.exp %101 : vector<16x128xf32>
    %cst_36 = arith.constant 1.000000e+00 : f32
    %103 = vector.broadcast %cst_36 : f32 to vector<16x128xf32>
    %104 = arith.addf %103, %102 : vector<16x128xf32>
    %105 = arith.divf %103, %104 : vector<16x128xf32>
    %106 = vector.extract_strided_slice %93 {offsets = [0, 256], sizes = [16, 128], strides = [1, 1]} : vector<16x512xf32> to vector<16x128xf32>
    %107 = math.tanh %106 : vector<16x128xf32>
    %108 = vector.extract_strided_slice %93 {offsets = [0, 384], sizes = [16, 128], strides = [1, 1]} : vector<16x512xf32> to vector<16x128xf32>
    %109 = arith.negf %108 : vector<16x128xf32>
    %110 = math.exp %109 : vector<16x128xf32>
    %cst_37 = arith.constant 1.000000e+00 : f32
    %111 = vector.broadcast %cst_37 : f32 to vector<16x128xf32>
    %112 = arith.addf %111, %110 : vector<16x128xf32>
    %113 = arith.divf %111, %112 : vector<16x128xf32>
    %114 = arith.mulf %105, %80 : vector<16x128xf32>
    %115 = arith.mulf %99, %107 : vector<16x128xf32>
    %116 = arith.addf %114, %115 : vector<16x128xf32>
    %117 = math.tanh %116 : vector<16x128xf32>
    %118 = arith.mulf %113, %117 : vector<16x128xf32>
    %119 = arith.truncf %118 : vector<16x128xf32> to vector<16x128xbf16>
    %120 = arith.index_cast %c2_i32 : i32 to index
    %c0_38 = arith.constant 0 : index
    %c0_39 = arith.constant 0 : index
    %121 = vector.load %arg10[%120, %c0_38, %c0_39] : memref<8x16x128xbf16, #tpu.memory_space<vmem>>, vector<1x16x128xbf16>
    %122 = vector.shape_cast %121 : vector<1x16x128xbf16> to vector<16x128xbf16>
    %123 = vector.shape_cast %119 : vector<16x128xbf16> to vector<1x16x128xbf16>
    tpu.vector_store %arg10[%120, %c0_38, %c0_39], %123 {strides = array<i32>} : memref<8x16x128xbf16, #tpu.memory_space<vmem>>, vector<1x16x128xbf16>,
    %c3_i32 = arith.constant 3 : i32
    %124 = arith.index_cast %c3_i32 : i32 to index
    %c0_40 = arith.constant 0 : index
    %c0_41 = arith.constant 0 : index
    %125 = vector.load %arg11[%124, %c0_40, %c0_41] : memref<8x16x512xbf16, #tpu.memory_space<vmem>>, vector<1x16x512xbf16>
    %126 = vector.shape_cast %125 : vector<1x16x512xbf16> to vector<16x512xbf16>
    %127 = arith.extf %126 : vector<16x512xbf16> to vector<16x512xf32>
    %cst_42 = arith.constant dense<0.000000e+00> : vector<16x512xf32>
    %128 = tpu.matmul %119, %13, %cst_42 {dimension_numbers = #tpu.dot_dimension_numbers<[1], [0], [0], [1], [0, 0, 1, 1], [], []>} : vector<16x128xbf16>, vector<128x512xbf16>, vector<16x512xf32> -> vector<16x512xf32>
    %129 = arith.addf %127, %128 : vector<16x512xf32>
    %130 = vector.extract_strided_slice %129 {offsets = [0, 0], sizes = [16, 128], strides = [1, 1]} : vector<16x512xf32> to vector<16x128xf32>
    %131 = arith.negf %130 : vector<16x128xf32>
    %132 = math.exp %131 : vector<16x128xf32>
    %cst_43 = arith.constant 1.000000e+00 : f32
    %133 = vector.broadcast %cst_43 : f32 to vector<16x128xf32>
    %134 = arith.addf %133, %132 : vector<16x128xf32>
    %135 = arith.divf %133, %134 : vector<16x128xf32>
    %136 = vector.extract_strided_slice %129 {offsets = [0, 128], sizes = [16, 128], strides = [1, 1]} : vector<16x512xf32> to vector<16x128xf32>
    %137 = arith.negf %136 : vector<16x128xf32>
    %138 = math.exp %137 : vector<16x128xf32>
    %cst_44 = arith.constant 1.000000e+00 : f32
    %139 = vector.broadcast %cst_44 : f32 to vector<16x128xf32>
    %140 = arith.addf %139, %138 : vector<16x128xf32>
    %141 = arith.divf %139, %140 : vector<16x128xf32>
    %142 = vector.extract_strided_slice %129 {offsets = [0, 256], sizes = [16, 128], strides = [1, 1]} : vector<16x512xf32> to vector<16x128xf32>
    %143 = math.tanh %142 : vector<16x128xf32>
    %144 = vector.extract_strided_slice %129 {offsets = [0, 384], sizes = [16, 128], strides = [1, 1]} : vector<16x512xf32> to vector<16x128xf32>
    %145 = arith.negf %144 : vector<16x128xf32>
    %146 = math.exp %145 : vector<16x128xf32>
    %cst_45 = arith.constant 1.000000e+00 : f32
    %147 = vector.broadcast %cst_45 : f32 to vector<16x128xf32>
    %148 = arith.addf %147, %146 : vector<16x128xf32>
    %149 = arith.divf %147, %148 : vector<16x128xf32>
    %150 = arith.mulf %141, %116 : vector<16x128xf32>
    %151 = arith.mulf %135, %143 : vector<16x128xf32>
    %152 = arith.addf %150, %151 : vector<16x128xf32>
    %153 = math.tanh %152 : vector<16x128xf32>
    %154 = arith.mulf %149, %153 : vector<16x128xf32>
    %155 = arith.truncf %154 : vector<16x128xf32> to vector<16x128xbf16>
    %156 = arith.index_cast %c3_i32 : i32 to index
    %c0_46 = arith.constant 0 : index
    %c0_47 = arith.constant 0 : index
    %157 = vector.load %arg10[%156, %c0_46, %c0_47] : memref<8x16x128xbf16, #tpu.memory_space<vmem>>, vector<1x16x128xbf16>
    %158 = vector.shape_cast %157 : vector<1x16x128xbf16> to vector<16x128xbf16>
    %159 = vector.shape_cast %155 : vector<16x128xbf16> to vector<1x16x128xbf16>
    tpu.vector_store %arg10[%156, %c0_46, %c0_47], %159 {strides = array<i32>} : memref<8x16x128xbf16, #tpu.memory_space<vmem>>, vector<1x16x128xbf16>,
    %c4_i32 = arith.constant 4 : i32
    %160 = arith.index_cast %c4_i32 : i32 to index
    %c0_48 = arith.constant 0 : index
    %c0_49 = arith.constant 0 : index
    %161 = vector.load %arg11[%160, %c0_48, %c0_49] : memref<8x16x512xbf16, #tpu.memory_space<vmem>>, vector<1x16x512xbf16>
    %162 = vector.shape_cast %161 : vector<1x16x512xbf16> to vector<16x512xbf16>
    %163 = arith.extf %162 : vector<16x512xbf16> to vector<16x512xf32>
    %cst_50 = arith.constant dense<0.000000e+00> : vector<16x512xf32>
    %164 = tpu.matmul %155, %13, %cst_50 {dimension_numbers = #tpu.dot_dimension_numbers<[1], [0], [0], [1], [0, 0, 1, 1], [], []>} : vector<16x128xbf16>, vector<128x512xbf16>, vector<16x512xf32> -> vector<16x512xf32>
    %165 = arith.addf %163, %164 : vector<16x512xf32>
    %166 = vector.extract_strided_slice %165 {offsets = [0, 0], sizes = [16, 128], strides = [1, 1]} : vector<16x512xf32> to vector<16x128xf32>
    %167 = arith.negf %166 : vector<16x128xf32>
    %168 = math.exp %167 : vector<16x128xf32>
    %cst_51 = arith.constant 1.000000e+00 : f32
    %169 = vector.broadcast %cst_51 : f32 to vector<16x128xf32>
    %170 = arith.addf %169, %168 : vector<16x128xf32>
    %171 = arith.divf %169, %170 : vector<16x128xf32>
    %172 = vector.extract_strided_slice %165 {offsets = [0, 128], sizes = [16, 128], strides = [1, 1]} : vector<16x512xf32> to vector<16x128xf32>
    %173 = arith.negf %172 : vector<16x128xf32>
    %174 = math.exp %173 : vector<16x128xf32>
    %cst_52 = arith.constant 1.000000e+00 : f32
    %175 = vector.broadcast %cst_52 : f32 to vector<16x128xf32>
    %176 = arith.addf %175, %174 : vector<16x128xf32>
    %177 = arith.divf %175, %176 : vector<16x128xf32>
    %178 = vector.extract_strided_slice %165 {offsets = [0, 256], sizes = [16, 128], strides = [1, 1]} : vector<16x512xf32> to vector<16x128xf32>
    %179 = math.tanh %178 : vector<16x128xf32>
    %180 = vector.extract_strided_slice %165 {offsets = [0, 384], sizes = [16, 128], strides = [1, 1]} : vector<16x512xf32> to vector<16x128xf32>
    %181 = arith.negf %180 : vector<16x128xf32>
    %182 = math.exp %181 : vector<16x128xf32>
    %cst_53 = arith.constant 1.000000e+00 : f32
    %183 = vector.broadcast %cst_53 : f32 to vector<16x128xf32>
    %184 = arith.addf %183, %182 : vector<16x128xf32>
    %185 = arith.divf %183, %184 : vector<16x128xf32>
    %186 = arith.mulf %177, %152 : vector<16x128xf32>
    %187 = arith.mulf %171, %179 : vector<16x128xf32>
    %188 = arith.addf %186, %187 : vector<16x128xf32>
    %189 = math.tanh %188 : vector<16x128xf32>
    %190 = arith.mulf %185, %189 : vector<16x128xf32>
    %191 = arith.truncf %190 : vector<16x128xf32> to vector<16x128xbf16>
    %192 = arith.index_cast %c4_i32 : i32 to index
    %c0_54 = arith.constant 0 : index
    %c0_55 = arith.constant 0 : index
    %193 = vector.load %arg10[%192, %c0_54, %c0_55] : memref<8x16x128xbf16, #tpu.memory_space<vmem>>, vector<1x16x128xbf16>
    %194 = vector.shape_cast %193 : vector<1x16x128xbf16> to vector<16x128xbf16>
    %195 = vector.shape_cast %191 : vector<16x128xbf16> to vector<1x16x128xbf16>
    tpu.vector_store %arg10[%192, %c0_54, %c0_55], %195 {strides = array<i32>} : memref<8x16x128xbf16, #tpu.memory_space<vmem>>, vector<1x16x128xbf16>,
    %c5_i32 = arith.constant 5 : i32
    %196 = arith.index_cast %c5_i32 : i32 to index
    %c0_56 = arith.constant 0 : index
    %c0_57 = arith.constant 0 : index
    %197 = vector.load %arg11[%196, %c0_56, %c0_57] : memref<8x16x512xbf16, #tpu.memory_space<vmem>>, vector<1x16x512xbf16>
    %198 = vector.shape_cast %197 : vector<1x16x512xbf16> to vector<16x512xbf16>
    %199 = arith.extf %198 : vector<16x512xbf16> to vector<16x512xf32>
    %cst_58 = arith.constant dense<0.000000e+00> : vector<16x512xf32>
    %200 = tpu.matmul %191, %13, %cst_58 {dimension_numbers = #tpu.dot_dimension_numbers<[1], [0], [0], [1], [0, 0, 1, 1], [], []>} : vector<16x128xbf16>, vector<128x512xbf16>, vector<16x512xf32> -> vector<16x512xf32>
    %201 = arith.addf %199, %200 : vector<16x512xf32>
    %202 = vector.extract_strided_slice %201 {offsets = [0, 0], sizes = [16, 128], strides = [1, 1]} : vector<16x512xf32> to vector<16x128xf32>
    %203 = arith.negf %202 : vector<16x128xf32>
    %204 = math.exp %203 : vector<16x128xf32>
    %cst_59 = arith.constant 1.000000e+00 : f32
    %205 = vector.broadcast %cst_59 : f32 to vector<16x128xf32>
    %206 = arith.addf %205, %204 : vector<16x128xf32>
    %207 = arith.divf %205, %206 : vector<16x128xf32>
    %208 = vector.extract_strided_slice %201 {offsets = [0, 128], sizes = [16, 128], strides = [1, 1]} : vector<16x512xf32> to vector<16x128xf32>
    %209 = arith.negf %208 : vector<16x128xf32>
    %210 = math.exp %209 : vector<16x128xf32>
    %cst_60 = arith.constant 1.000000e+00 : f32
    %211 = vector.broadcast %cst_60 : f32 to vector<16x128xf32>
    %212 = arith.addf %211, %210 : vector<16x128xf32>
    %213 = arith.divf %211, %212 : vector<16x128xf32>
    %214 = vector.extract_strided_slice %201 {offsets = [0, 256], sizes = [16, 128], strides = [1, 1]} : vector<16x512xf32> to vector<16x128xf32>
    %215 = math.tanh %214 : vector<16x128xf32>
    %216 = vector.extract_strided_slice %201 {offsets = [0, 384], sizes = [16, 128], strides = [1, 1]} : vector<16x512xf32> to vector<16x128xf32>
    %217 = arith.negf %216 : vector<16x128xf32>
    %218 = math.exp %217 : vector<16x128xf32>
    %cst_61 = arith.constant 1.000000e+00 : f32
    %219 = vector.broadcast %cst_61 : f32 to vector<16x128xf32>
    %220 = arith.addf %219, %218 : vector<16x128xf32>
    %221 = arith.divf %219, %220 : vector<16x128xf32>
    %222 = arith.mulf %213, %188 : vector<16x128xf32>
    %223 = arith.mulf %207, %215 : vector<16x128xf32>
    %224 = arith.addf %222, %223 : vector<16x128xf32>
    %225 = math.tanh %224 : vector<16x128xf32>
    %226 = arith.mulf %221, %225 : vector<16x128xf32>
    %227 = arith.truncf %226 : vector<16x128xf32> to vector<16x128xbf16>
    %228 = arith.index_cast %c5_i32 : i32 to index
    %c0_62 = arith.constant 0 : index
    %c0_63 = arith.constant 0 : index
    %229 = vector.load %arg10[%228, %c0_62, %c0_63] : memref<8x16x128xbf16, #tpu.memory_space<vmem>>, vector<1x16x128xbf16>
    %230 = vector.shape_cast %229 : vector<1x16x128xbf16> to vector<16x128xbf16>
    %231 = vector.shape_cast %227 : vector<16x128xbf16> to vector<1x16x128xbf16>
    tpu.vector_store %arg10[%228, %c0_62, %c0_63], %231 {strides = array<i32>} : memref<8x16x128xbf16, #tpu.memory_space<vmem>>, vector<1x16x128xbf16>,
    %c6_i32 = arith.constant 6 : i32
    %232 = arith.index_cast %c6_i32 : i32 to index
    %c0_64 = arith.constant 0 : index
    %c0_65 = arith.constant 0 : index
    %233 = vector.load %arg11[%232, %c0_64, %c0_65] : memref<8x16x512xbf16, #tpu.memory_space<vmem>>, vector<1x16x512xbf16>
    %234 = vector.shape_cast %233 : vector<1x16x512xbf16> to vector<16x512xbf16>
    %235 = arith.extf %234 : vector<16x512xbf16> to vector<16x512xf32>
    %cst_66 = arith.constant dense<0.000000e+00> : vector<16x512xf32>
    %236 = tpu.matmul %227, %13, %cst_66 {dimension_numbers = #tpu.dot_dimension_numbers<[1], [0], [0], [1], [0, 0, 1, 1], [], []>} : vector<16x128xbf16>, vector<128x512xbf16>, vector<16x512xf32> -> vector<16x512xf32>
    %237 = arith.addf %235, %236 : vector<16x512xf32>
    %238 = vector.extract_strided_slice %237 {offsets = [0, 0], sizes = [16, 128], strides = [1, 1]} : vector<16x512xf32> to vector<16x128xf32>
    %239 = arith.negf %238 : vector<16x128xf32>
    %240 = math.exp %239 : vector<16x128xf32>
    %cst_67 = arith.constant 1.000000e+00 : f32
    %241 = vector.broadcast %cst_67 : f32 to vector<16x128xf32>
    %242 = arith.addf %241, %240 : vector<16x128xf32>
    %243 = arith.divf %241, %242 : vector<16x128xf32>
    %244 = vector.extract_strided_slice %237 {offsets = [0, 128], sizes = [16, 128], strides = [1, 1]} : vector<16x512xf32> to vector<16x128xf32>
    %245 = arith.negf %244 : vector<16x128xf32>
    %246 = math.exp %245 : vector<16x128xf32>
    %cst_68 = arith.constant 1.000000e+00 : f32
    %247 = vector.broadcast %cst_68 : f32 to vector<16x128xf32>
    %248 = arith.addf %247, %246 : vector<16x128xf32>
    %249 = arith.divf %247, %248 : vector<16x128xf32>
    %250 = vector.extract_strided_slice %237 {offsets = [0, 256], sizes = [16, 128], strides = [1, 1]} : vector<16x512xf32> to vector<16x128xf32>
    %251 = math.tanh %250 : vector<16x128xf32>
    %252 = vector.extract_strided_slice %237 {offsets = [0, 384], sizes = [16, 128], strides = [1, 1]} : vector<16x512xf32> to vector<16x128xf32>
    %253 = arith.negf %252 : vector<16x128xf32>
    %254 = math.exp %253 : vector<16x128xf32>
    %cst_69 = arith.constant 1.000000e+00 : f32
    %255 = vector.broadcast %cst_69 : f32 to vector<16x128xf32>
    %256 = arith.addf %255, %254 : vector<16x128xf32>
    %257 = arith.divf %255, %256 : vector<16x128xf32>
    %258 = arith.mulf %249, %224 : vector<16x128xf32>
    %259 = arith.mulf %243, %251 : vector<16x128xf32>
    %260 = arith.addf %258, %259 : vector<16x128xf32>
    %261 = math.tanh %260 : vector<16x128xf32>
    %262 = arith.mulf %257, %261 : vector<16x128xf32>
    %263 = arith.truncf %262 : vector<16x128xf32> to vector<16x128xbf16>
    %264 = arith.index_cast %c6_i32 : i32 to index
    %c0_70 = arith.constant 0 : index
    %c0_71 = arith.constant 0 : index
    %265 = vector.load %arg10[%264, %c0_70, %c0_71] : memref<8x16x128xbf16, #tpu.memory_space<vmem>>, vector<1x16x128xbf16>
    %266 = vector.shape_cast %265 : vector<1x16x128xbf16> to vector<16x128xbf16>
    %267 = vector.shape_cast %263 : vector<16x128xbf16> to vector<1x16x128xbf16>
    tpu.vector_store %arg10[%264, %c0_70, %c0_71], %267 {strides = array<i32>} : memref<8x16x128xbf16, #tpu.memory_space<vmem>>, vector<1x16x128xbf16>,
    %c7_i32 = arith.constant 7 : i32
    %268 = arith.index_cast %c7_i32 : i32 to index
    %c0_72 = arith.constant 0 : index
    %c0_73 = arith.constant 0 : index
    %269 = vector.load %arg11[%268, %c0_72, %c0_73] : memref<8x16x512xbf16, #tpu.memory_space<vmem>>, vector<1x16x512xbf16>
    %270 = vector.shape_cast %269 : vector<1x16x512xbf16> to vector<16x512xbf16>
    %271 = arith.extf %270 : vector<16x512xbf16> to vector<16x512xf32>
    %cst_74 = arith.constant dense<0.000000e+00> : vector<16x512xf32>
    %272 = tpu.matmul %263, %13, %cst_74 {dimension_numbers = #tpu.dot_dimension_numbers<[1], [0], [0], [1], [0, 0, 1, 1], [], []>} : vector<16x128xbf16>, vector<128x512xbf16>, vector<16x512xf32> -> vector<16x512xf32>
    %273 = arith.addf %271, %272 : vector<16x512xf32>
    %274 = vector.extract_strided_slice %273 {offsets = [0, 0], sizes = [16, 128], strides = [1, 1]} : vector<16x512xf32> to vector<16x128xf32>
    %275 = arith.negf %274 : vector<16x128xf32>
    %276 = math.exp %275 : vector<16x128xf32>
    %cst_75 = arith.constant 1.000000e+00 : f32
    %277 = vector.broadcast %cst_75 : f32 to vector<16x128xf32>
    %278 = arith.addf %277, %276 : vector<16x128xf32>
    %279 = arith.divf %277, %278 : vector<16x128xf32>
    %280 = vector.extract_strided_slice %273 {offsets = [0, 128], sizes = [16, 128], strides = [1, 1]} : vector<16x512xf32> to vector<16x128xf32>
    %281 = arith.negf %280 : vector<16x128xf32>
    %282 = math.exp %281 : vector<16x128xf32>
    %cst_76 = arith.constant 1.000000e+00 : f32
    %283 = vector.broadcast %cst_76 : f32 to vector<16x128xf32>
    %284 = arith.addf %283, %282 : vector<16x128xf32>
    %285 = arith.divf %283, %284 : vector<16x128xf32>
    %286 = vector.extract_strided_slice %273 {offsets = [0, 256], sizes = [16, 128], strides = [1, 1]} : vector<16x512xf32> to vector<16x128xf32>
    %287 = math.tanh %286 : vector<16x128xf32>
    %288 = vector.extract_strided_slice %273 {offsets = [0, 384], sizes = [16, 128], strides = [1, 1]} : vector<16x512xf32> to vector<16x128xf32>
    %289 = arith.negf %288 : vector<16x128xf32>
    %290 = math.exp %289 : vector<16x128xf32>
    %cst_77 = arith.constant 1.000000e+00 : f32
    %291 = vector.broadcast %cst_77 : f32 to vector<16x128xf32>
    %292 = arith.addf %291, %290 : vector<16x128xf32>
    %293 = arith.divf %291, %292 : vector<16x128xf32>
    %294 = arith.mulf %285, %260 : vector<16x128xf32>
    %295 = arith.mulf %279, %287 : vector<16x128xf32>
    %296 = arith.addf %294, %295 : vector<16x128xf32>
    %297 = math.tanh %296 : vector<16x128xf32>
    %298 = arith.mulf %293, %297 : vector<16x128xf32>
    %299 = arith.truncf %298 : vector<16x128xf32> to vector<16x128xbf16>
    %300 = arith.index_cast %c7_i32 : i32 to index
    %c0_78 = arith.constant 0 : index
    %c0_79 = arith.constant 0 : index
    %301 = vector.load %arg10[%300, %c0_78, %c0_79] : memref<8x16x128xbf16, #tpu.memory_space<vmem>>, vector<1x16x128xbf16>
    %302 = vector.shape_cast %301 : vector<1x16x128xbf16> to vector<16x128xbf16>
    %303 = vector.shape_cast %299 : vector<16x128xbf16> to vector<1x16x128xbf16>
    tpu.vector_store %arg10[%300, %c0_78, %c0_79], %303 {strides = array<i32>} : memref<8x16x128xbf16, #tpu.memory_space<vmem>>, vector<1x16x128xbf16>,
    %c8_i32 = arith.constant 8 : i32
    %c0_80 = arith.constant 0 : index
    %c0_81 = arith.constant 0 : index
    %c0_82 = arith.constant 0 : index
    %304 = vector.load %arg10[%c0_80, %c0_81, %c0_82] : memref<8x16x128xbf16, #tpu.memory_space<vmem>>, vector<8x16x128xbf16>
    %305 = vector.shape_cast %304 : vector<8x16x128xbf16> to vector<128x128xbf16>
    %c0_83 = arith.constant 0 : index
    %c0_84 = arith.constant 0 : index
    %306 = vector.load %arg6[%c0_83, %c0_84] : memref<128x512xbf16, #tpu.memory_space<vmem>>, vector<128x512xbf16>
    %cst_85 = arith.constant dense<0.000000e+00> : vector<128x512xf32>
    %307 = tpu.matmul %305, %306, %cst_85 {dimension_numbers = #tpu.dot_dimension_numbers<[1], [0], [0], [1], [0, 0, 1, 1], [], []>} : vector<128x128xbf16>, vector<128x512xbf16>, vector<128x512xf32> -> vector<128x512xf32>
    %c0_86 = arith.constant 0 : index
    %c0_87 = arith.constant 0 : index
    %308 = vector.load %arg8[%c0_86, %c0_87] : memref<1x512xf32, #tpu.memory_space<vmem>>, vector<1x512xf32>
    %309 = vector.broadcast %308 : vector<1x512xf32> to vector<128x512xf32>
    %310 = arith.addf %307, %309 : vector<128x512xf32>
    %311 = vector.shape_cast %310 : vector<128x512xf32> to vector<8x16x512xf32>
    %312 = arith.truncf %311 : vector<8x16x512xf32> to vector<8x16x512xbf16>
    %c0_88 = arith.constant 0 : index
    %c0_89 = arith.constant 0 : index
    %c0_90 = arith.constant 0 : index
    %313 = vector.load %arg11[%c0_88, %c0_89, %c0_90] : memref<8x16x512xbf16, #tpu.memory_space<vmem>>, vector<8x16x512xbf16>
    tpu.vector_store %arg11[%c0_88, %c0_89, %c0_90], %312 {strides = array<i32>} : memref<8x16x512xbf16, #tpu.memory_space<vmem>>, vector<8x16x512xbf16>,
    %c0_91 = arith.constant 0 : index
    %c0_92 = arith.constant 0 : index
    %314 = vector.load %arg7[%c0_91, %c0_92] : memref<128x512xbf16, #tpu.memory_space<vmem>>, vector<128x512xbf16>
    %cst_93 = arith.constant 0.000000e+00 : bf16
    %315 = vector.broadcast %cst_93 : bf16 to vector<16x128xbf16>
    %cst_94 = arith.constant 0.000000e+00 : f32
    %316 = vector.broadcast %cst_94 : f32 to vector<16x128xf32>
    %cst_95 = arith.constant 0.000000e+00 : f32
    %317 = vector.broadcast %cst_95 : f32 to vector<16x128xf32>
    %c0_i32_96 = arith.constant 0 : i32
    %318 = arith.index_cast %c0_i32_96 : i32 to index
    %c0_97 = arith.constant 0 : index
    %c0_98 = arith.constant 0 : index
    %319 = vector.load %arg11[%318, %c0_97, %c0_98] : memref<8x16x512xbf16, #tpu.memory_space<vmem>>, vector<1x16x512xbf16>
    %320 = vector.shape_cast %319 : vector<1x16x512xbf16> to vector<16x512xbf16>
    %321 = arith.extf %320 : vector<16x512xbf16> to vector<16x512xf32>
    %cst_99 = arith.constant dense<0.000000e+00> : vector<16x512xf32>
    %322 = tpu.matmul %315, %314, %cst_99 {dimension_numbers = #tpu.dot_dimension_numbers<[1], [0], [0], [1], [0, 0, 1, 1], [], []>} : vector<16x128xbf16>, vector<128x512xbf16>, vector<16x512xf32> -> vector<16x512xf32>
    %323 = arith.addf %321, %322 : vector<16x512xf32>
    %324 = vector.extract_strided_slice %323 {offsets = [0, 0], sizes = [16, 128], strides = [1, 1]} : vector<16x512xf32> to vector<16x128xf32>
    %325 = arith.negf %324 : vector<16x128xf32>
    %326 = math.exp %325 : vector<16x128xf32>
    %cst_100 = arith.constant 1.000000e+00 : f32
    %327 = vector.broadcast %cst_100 : f32 to vector<16x128xf32>
    %328 = arith.addf %327, %326 : vector<16x128xf32>
    %329 = arith.divf %327, %328 : vector<16x128xf32>
    %330 = vector.extract_strided_slice %323 {offsets = [0, 128], sizes = [16, 128], strides = [1, 1]} : vector<16x512xf32> to vector<16x128xf32>
    %331 = arith.negf %330 : vector<16x128xf32>
    %332 = math.exp %331 : vector<16x128xf32>
    %cst_101 = arith.constant 1.000000e+00 : f32
    %333 = vector.broadcast %cst_101 : f32 to vector<16x128xf32>
    %334 = arith.addf %333, %332 : vector<16x128xf32>
    %335 = arith.divf %333, %334 : vector<16x128xf32>
    %336 = vector.extract_strided_slice %323 {offsets = [0, 256], sizes = [16, 128], strides = [1, 1]} : vector<16x512xf32> to vector<16x128xf32>
    %337 = math.tanh %336 : vector<16x128xf32>
    %338 = vector.extract_strided_slice %323 {offsets = [0, 384], sizes = [16, 128], strides = [1, 1]} : vector<16x512xf32> to vector<16x128xf32>
    %339 = arith.negf %338 : vector<16x128xf32>
    %340 = math.exp %339 : vector<16x128xf32>
    %cst_102 = arith.constant 1.000000e+00 : f32
    %341 = vector.broadcast %cst_102 : f32 to vector<16x128xf32>
    %342 = arith.addf %341, %340 : vector<16x128xf32>
    %343 = arith.divf %341, %342 : vector<16x128xf32>
    %344 = arith.mulf %335, %316 : vector<16x128xf32>
    %345 = arith.mulf %329, %337 : vector<16x128xf32>
    %346 = arith.addf %344, %345 : vector<16x128xf32>
    %347 = math.tanh %346 : vector<16x128xf32>
    %348 = arith.mulf %343, %347 : vector<16x128xf32>
    %349 = vector.broadcast %c0_i32_96 : i32 to vector<16x1xi32>
    %350 = arith.cmpi eq, %2, %349 : vector<16x1xi32>
    %351 = vector.shape_cast %350 : vector<16x1xi1> to vector<16x1xi1>
    %352 = vector.broadcast %351 : vector<16x1xi1> to vector<16x128xi1>
    %353 = arith.select %352, %348, %317 : vector<16x128xi1>, vector<16x128xf32>
    %354 = arith.truncf %348 : vector<16x128xf32> to vector<16x128xbf16>
    %c1_i32_103 = arith.constant 1 : i32
    %355 = arith.index_cast %c1_i32_103 : i32 to index
    %c0_104 = arith.constant 0 : index
    %c0_105 = arith.constant 0 : index
    %356 = vector.load %arg11[%355, %c0_104, %c0_105] : memref<8x16x512xbf16, #tpu.memory_space<vmem>>, vector<1x16x512xbf16>
    %357 = vector.shape_cast %356 : vector<1x16x512xbf16> to vector<16x512xbf16>
    %358 = arith.extf %357 : vector<16x512xbf16> to vector<16x512xf32>
    %cst_106 = arith.constant dense<0.000000e+00> : vector<16x512xf32>
    %359 = tpu.matmul %354, %314, %cst_106 {dimension_numbers = #tpu.dot_dimension_numbers<[1], [0], [0], [1], [0, 0, 1, 1], [], []>} : vector<16x128xbf16>, vector<128x512xbf16>, vector<16x512xf32> -> vector<16x512xf32>
    %360 = arith.addf %358, %359 : vector<16x512xf32>
    %361 = vector.extract_strided_slice %360 {offsets = [0, 0], sizes = [16, 128], strides = [1, 1]} : vector<16x512xf32> to vector<16x128xf32>
    %362 = arith.negf %361 : vector<16x128xf32>
    %363 = math.exp %362 : vector<16x128xf32>
    %cst_107 = arith.constant 1.000000e+00 : f32
    %364 = vector.broadcast %cst_107 : f32 to vector<16x128xf32>
    %365 = arith.addf %364, %363 : vector<16x128xf32>
    %366 = arith.divf %364, %365 : vector<16x128xf32>
    %367 = vector.extract_strided_slice %360 {offsets = [0, 128], sizes = [16, 128], strides = [1, 1]} : vector<16x512xf32> to vector<16x128xf32>
    %368 = arith.negf %367 : vector<16x128xf32>
    %369 = math.exp %368 : vector<16x128xf32>
    %cst_108 = arith.constant 1.000000e+00 : f32
    %370 = vector.broadcast %cst_108 : f32 to vector<16x128xf32>
    %371 = arith.addf %370, %369 : vector<16x128xf32>
    %372 = arith.divf %370, %371 : vector<16x128xf32>
    %373 = vector.extract_strided_slice %360 {offsets = [0, 256], sizes = [16, 128], strides = [1, 1]} : vector<16x512xf32> to vector<16x128xf32>
    %374 = math.tanh %373 : vector<16x128xf32>
    %375 = vector.extract_strided_slice %360 {offsets = [0, 384], sizes = [16, 128], strides = [1, 1]} : vector<16x512xf32> to vector<16x128xf32>
    %376 = arith.negf %375 : vector<16x128xf32>
    %377 = math.exp %376 : vector<16x128xf32>
    %cst_109 = arith.constant 1.000000e+00 : f32
    %378 = vector.broadcast %cst_109 : f32 to vector<16x128xf32>
    %379 = arith.addf %378, %377 : vector<16x128xf32>
    %380 = arith.divf %378, %379 : vector<16x128xf32>
    %381 = arith.mulf %372, %346 : vector<16x128xf32>
    %382 = arith.mulf %366, %374 : vector<16x128xf32>
    %383 = arith.addf %381, %382 : vector<16x128xf32>
    %384 = math.tanh %383 : vector<16x128xf32>
    %385 = arith.mulf %380, %384 : vector<16x128xf32>
    %386 = vector.broadcast %c1_i32_103 : i32 to vector<16x1xi32>
    %387 = arith.cmpi eq, %2, %386 : vector<16x1xi32>
    %388 = vector.shape_cast %387 : vector<16x1xi1> to vector<16x1xi1>
    %389 = vector.broadcast %388 : vector<16x1xi1> to vector<16x128xi1>
    %390 = arith.select %389, %385, %353 : vector<16x128xi1>, vector<16x128xf32>
    %391 = arith.truncf %385 : vector<16x128xf32> to vector<16x128xbf16>
    %c2_i32_110 = arith.constant 2 : i32
    %392 = arith.index_cast %c2_i32_110 : i32 to index
    %c0_111 = arith.constant 0 : index
    %c0_112 = arith.constant 0 : index
    %393 = vector.load %arg11[%392, %c0_111, %c0_112] : memref<8x16x512xbf16, #tpu.memory_space<vmem>>, vector<1x16x512xbf16>
    %394 = vector.shape_cast %393 : vector<1x16x512xbf16> to vector<16x512xbf16>
    %395 = arith.extf %394 : vector<16x512xbf16> to vector<16x512xf32>
    %cst_113 = arith.constant dense<0.000000e+00> : vector<16x512xf32>
    %396 = tpu.matmul %391, %314, %cst_113 {dimension_numbers = #tpu.dot_dimension_numbers<[1], [0], [0], [1], [0, 0, 1, 1], [], []>} : vector<16x128xbf16>, vector<128x512xbf16>, vector<16x512xf32> -> vector<16x512xf32>
    %397 = arith.addf %395, %396 : vector<16x512xf32>
    %398 = vector.extract_strided_slice %397 {offsets = [0, 0], sizes = [16, 128], strides = [1, 1]} : vector<16x512xf32> to vector<16x128xf32>
    %399 = arith.negf %398 : vector<16x128xf32>
    %400 = math.exp %399 : vector<16x128xf32>
    %cst_114 = arith.constant 1.000000e+00 : f32
    %401 = vector.broadcast %cst_114 : f32 to vector<16x128xf32>
    %402 = arith.addf %401, %400 : vector<16x128xf32>
    %403 = arith.divf %401, %402 : vector<16x128xf32>
    %404 = vector.extract_strided_slice %397 {offsets = [0, 128], sizes = [16, 128], strides = [1, 1]} : vector<16x512xf32> to vector<16x128xf32>
    %405 = arith.negf %404 : vector<16x128xf32>
    %406 = math.exp %405 : vector<16x128xf32>
    %cst_115 = arith.constant 1.000000e+00 : f32
    %407 = vector.broadcast %cst_115 : f32 to vector<16x128xf32>
    %408 = arith.addf %407, %406 : vector<16x128xf32>
    %409 = arith.divf %407, %408 : vector<16x128xf32>
    %410 = vector.extract_strided_slice %397 {offsets = [0, 256], sizes = [16, 128], strides = [1, 1]} : vector<16x512xf32> to vector<16x128xf32>
    %411 = math.tanh %410 : vector<16x128xf32>
    %412 = vector.extract_strided_slice %397 {offsets = [0, 384], sizes = [16, 128], strides = [1, 1]} : vector<16x512xf32> to vector<16x128xf32>
    %413 = arith.negf %412 : vector<16x128xf32>
    %414 = math.exp %413 : vector<16x128xf32>
    %cst_116 = arith.constant 1.000000e+00 : f32
    %415 = vector.broadcast %cst_116 : f32 to vector<16x128xf32>
    %416 = arith.addf %415, %414 : vector<16x128xf32>
    %417 = arith.divf %415, %416 : vector<16x128xf32>
    %418 = arith.mulf %409, %383 : vector<16x128xf32>
    %419 = arith.mulf %403, %411 : vector<16x128xf32>
    %420 = arith.addf %418, %419 : vector<16x128xf32>
    %421 = math.tanh %420 : vector<16x128xf32>
    %422 = arith.mulf %417, %421 : vector<16x128xf32>
    %423 = vector.broadcast %c2_i32_110 : i32 to vector<16x1xi32>
    %424 = arith.cmpi eq, %2, %423 : vector<16x1xi32>
    %425 = vector.shape_cast %424 : vector<16x1xi1> to vector<16x1xi1>
    %426 = vector.broadcast %425 : vector<16x1xi1> to vector<16x128xi1>
    %427 = arith.select %426, %422, %390 : vector<16x128xi1>, vector<16x128xf32>
    %428 = arith.truncf %422 : vector<16x128xf32> to vector<16x128xbf16>
    %c3_i32_117 = arith.constant 3 : i32
    %429 = arith.index_cast %c3_i32_117 : i32 to index
    %c0_118 = arith.constant 0 : index
    %c0_119 = arith.constant 0 : index
    %430 = vector.load %arg11[%429, %c0_118, %c0_119] : memref<8x16x512xbf16, #tpu.memory_space<vmem>>, vector<1x16x512xbf16>
    %431 = vector.shape_cast %430 : vector<1x16x512xbf16> to vector<16x512xbf16>
    %432 = arith.extf %431 : vector<16x512xbf16> to vector<16x512xf32>
    %cst_120 = arith.constant dense<0.000000e+00> : vector<16x512xf32>
    %433 = tpu.matmul %428, %314, %cst_120 {dimension_numbers = #tpu.dot_dimension_numbers<[1], [0], [0], [1], [0, 0, 1, 1], [], []>} : vector<16x128xbf16>, vector<128x512xbf16>, vector<16x512xf32> -> vector<16x512xf32>
    %434 = arith.addf %432, %433 : vector<16x512xf32>
    %435 = vector.extract_strided_slice %434 {offsets = [0, 0], sizes = [16, 128], strides = [1, 1]} : vector<16x512xf32> to vector<16x128xf32>
    %436 = arith.negf %435 : vector<16x128xf32>
    %437 = math.exp %436 : vector<16x128xf32>
    %cst_121 = arith.constant 1.000000e+00 : f32
    %438 = vector.broadcast %cst_121 : f32 to vector<16x128xf32>
    %439 = arith.addf %438, %437 : vector<16x128xf32>
    %440 = arith.divf %438, %439 : vector<16x128xf32>
    %441 = vector.extract_strided_slice %434 {offsets = [0, 128], sizes = [16, 128], strides = [1, 1]} : vector<16x512xf32> to vector<16x128xf32>
    %442 = arith.negf %441 : vector<16x128xf32>
    %443 = math.exp %442 : vector<16x128xf32>
    %cst_122 = arith.constant 1.000000e+00 : f32
    %444 = vector.broadcast %cst_122 : f32 to vector<16x128xf32>
    %445 = arith.addf %444, %443 : vector<16x128xf32>
    %446 = arith.divf %444, %445 : vector<16x128xf32>
    %447 = vector.extract_strided_slice %434 {offsets = [0, 256], sizes = [16, 128], strides = [1, 1]} : vector<16x512xf32> to vector<16x128xf32>
    %448 = math.tanh %447 : vector<16x128xf32>
    %449 = vector.extract_strided_slice %434 {offsets = [0, 384], sizes = [16, 128], strides = [1, 1]} : vector<16x512xf32> to vector<16x128xf32>
    %450 = arith.negf %449 : vector<16x128xf32>
    %451 = math.exp %450 : vector<16x128xf32>
    %cst_123 = arith.constant 1.000000e+00 : f32
    %452 = vector.broadcast %cst_123 : f32 to vector<16x128xf32>
    %453 = arith.addf %452, %451 : vector<16x128xf32>
    %454 = arith.divf %452, %453 : vector<16x128xf32>
    %455 = arith.mulf %446, %420 : vector<16x128xf32>
    %456 = arith.mulf %440, %448 : vector<16x128xf32>
    %457 = arith.addf %455, %456 : vector<16x128xf32>
    %458 = math.tanh %457 : vector<16x128xf32>
    %459 = arith.mulf %454, %458 : vector<16x128xf32>
    %460 = vector.broadcast %c3_i32_117 : i32 to vector<16x1xi32>
    %461 = arith.cmpi eq, %2, %460 : vector<16x1xi32>
    %462 = vector.shape_cast %461 : vector<16x1xi1> to vector<16x1xi1>
    %463 = vector.broadcast %462 : vector<16x1xi1> to vector<16x128xi1>
    %464 = arith.select %463, %459, %427 : vector<16x128xi1>, vector<16x128xf32>
    %465 = arith.truncf %459 : vector<16x128xf32> to vector<16x128xbf16>
    %c4_i32_124 = arith.constant 4 : i32
    %466 = arith.index_cast %c4_i32_124 : i32 to index
    %c0_125 = arith.constant 0 : index
    %c0_126 = arith.constant 0 : index
    %467 = vector.load %arg11[%466, %c0_125, %c0_126] : memref<8x16x512xbf16, #tpu.memory_space<vmem>>, vector<1x16x512xbf16>
    %468 = vector.shape_cast %467 : vector<1x16x512xbf16> to vector<16x512xbf16>
    %469 = arith.extf %468 : vector<16x512xbf16> to vector<16x512xf32>
    %cst_127 = arith.constant dense<0.000000e+00> : vector<16x512xf32>
    %470 = tpu.matmul %465, %314, %cst_127 {dimension_numbers = #tpu.dot_dimension_numbers<[1], [0], [0], [1], [0, 0, 1, 1], [], []>} : vector<16x128xbf16>, vector<128x512xbf16>, vector<16x512xf32> -> vector<16x512xf32>
    %471 = arith.addf %469, %470 : vector<16x512xf32>
    %472 = vector.extract_strided_slice %471 {offsets = [0, 0], sizes = [16, 128], strides = [1, 1]} : vector<16x512xf32> to vector<16x128xf32>
    %473 = arith.negf %472 : vector<16x128xf32>
    %474 = math.exp %473 : vector<16x128xf32>
    %cst_128 = arith.constant 1.000000e+00 : f32
    %475 = vector.broadcast %cst_128 : f32 to vector<16x128xf32>
    %476 = arith.addf %475, %474 : vector<16x128xf32>
    %477 = arith.divf %475, %476 : vector<16x128xf32>
    %478 = vector.extract_strided_slice %471 {offsets = [0, 128], sizes = [16, 128], strides = [1, 1]} : vector<16x512xf32> to vector<16x128xf32>
    %479 = arith.negf %478 : vector<16x128xf32>
    %480 = math.exp %479 : vector<16x128xf32>
    %cst_129 = arith.constant 1.000000e+00 : f32
    %481 = vector.broadcast %cst_129 : f32 to vector<16x128xf32>
    %482 = arith.addf %481, %480 : vector<16x128xf32>
    %483 = arith.divf %481, %482 : vector<16x128xf32>
    %484 = vector.extract_strided_slice %471 {offsets = [0, 256], sizes = [16, 128], strides = [1, 1]} : vector<16x512xf32> to vector<16x128xf32>
    %485 = math.tanh %484 : vector<16x128xf32>
    %486 = vector.extract_strided_slice %471 {offsets = [0, 384], sizes = [16, 128], strides = [1, 1]} : vector<16x512xf32> to vector<16x128xf32>
    %487 = arith.negf %486 : vector<16x128xf32>
    %488 = math.exp %487 : vector<16x128xf32>
    %cst_130 = arith.constant 1.000000e+00 : f32
    %489 = vector.broadcast %cst_130 : f32 to vector<16x128xf32>
    %490 = arith.addf %489, %488 : vector<16x128xf32>
    %491 = arith.divf %489, %490 : vector<16x128xf32>
    %492 = arith.mulf %483, %457 : vector<16x128xf32>
    %493 = arith.mulf %477, %485 : vector<16x128xf32>
    %494 = arith.addf %492, %493 : vector<16x128xf32>
    %495 = math.tanh %494 : vector<16x128xf32>
    %496 = arith.mulf %491, %495 : vector<16x128xf32>
    %497 = vector.broadcast %c4_i32_124 : i32 to vector<16x1xi32>
    %498 = arith.cmpi eq, %2, %497 : vector<16x1xi32>
    %499 = vector.shape_cast %498 : vector<16x1xi1> to vector<16x1xi1>
    %500 = vector.broadcast %499 : vector<16x1xi1> to vector<16x128xi1>
    %501 = arith.select %500, %496, %464 : vector<16x128xi1>, vector<16x128xf32>
    %502 = arith.truncf %496 : vector<16x128xf32> to vector<16x128xbf16>
    %c5_i32_131 = arith.constant 5 : i32
    %503 = arith.index_cast %c5_i32_131 : i32 to index
    %c0_132 = arith.constant 0 : index
    %c0_133 = arith.constant 0 : index
    %504 = vector.load %arg11[%503, %c0_132, %c0_133] : memref<8x16x512xbf16, #tpu.memory_space<vmem>>, vector<1x16x512xbf16>
    %505 = vector.shape_cast %504 : vector<1x16x512xbf16> to vector<16x512xbf16>
    %506 = arith.extf %505 : vector<16x512xbf16> to vector<16x512xf32>
    %cst_134 = arith.constant dense<0.000000e+00> : vector<16x512xf32>
    %507 = tpu.matmul %502, %314, %cst_134 {dimension_numbers = #tpu.dot_dimension_numbers<[1], [0], [0], [1], [0, 0, 1, 1], [], []>} : vector<16x128xbf16>, vector<128x512xbf16>, vector<16x512xf32> -> vector<16x512xf32>
    %508 = arith.addf %506, %507 : vector<16x512xf32>
    %509 = vector.extract_strided_slice %508 {offsets = [0, 0], sizes = [16, 128], strides = [1, 1]} : vector<16x512xf32> to vector<16x128xf32>
    %510 = arith.negf %509 : vector<16x128xf32>
    %511 = math.exp %510 : vector<16x128xf32>
    %cst_135 = arith.constant 1.000000e+00 : f32
    %512 = vector.broadcast %cst_135 : f32 to vector<16x128xf32>
    %513 = arith.addf %512, %511 : vector<16x128xf32>
    %514 = arith.divf %512, %513 : vector<16x128xf32>
    %515 = vector.extract_strided_slice %508 {offsets = [0, 128], sizes = [16, 128], strides = [1, 1]} : vector<16x512xf32> to vector<16x128xf32>
    %516 = arith.negf %515 : vector<16x128xf32>
    %517 = math.exp %516 : vector<16x128xf32>
    %cst_136 = arith.constant 1.000000e+00 : f32
    %518 = vector.broadcast %cst_136 : f32 to vector<16x128xf32>
    %519 = arith.addf %518, %517 : vector<16x128xf32>
    %520 = arith.divf %518, %519 : vector<16x128xf32>
    %521 = vector.extract_strided_slice %508 {offsets = [0, 256], sizes = [16, 128], strides = [1, 1]} : vector<16x512xf32> to vector<16x128xf32>
    %522 = math.tanh %521 : vector<16x128xf32>
    %523 = vector.extract_strided_slice %508 {offsets = [0, 384], sizes = [16, 128], strides = [1, 1]} : vector<16x512xf32> to vector<16x128xf32>
    %524 = arith.negf %523 : vector<16x128xf32>
    %525 = math.exp %524 : vector<16x128xf32>
    %cst_137 = arith.constant 1.000000e+00 : f32
    %526 = vector.broadcast %cst_137 : f32 to vector<16x128xf32>
    %527 = arith.addf %526, %525 : vector<16x128xf32>
    %528 = arith.divf %526, %527 : vector<16x128xf32>
    %529 = arith.mulf %520, %494 : vector<16x128xf32>
    %530 = arith.mulf %514, %522 : vector<16x128xf32>
    %531 = arith.addf %529, %530 : vector<16x128xf32>
    %532 = math.tanh %531 : vector<16x128xf32>
    %533 = arith.mulf %528, %532 : vector<16x128xf32>
    %534 = vector.broadcast %c5_i32_131 : i32 to vector<16x1xi32>
    %535 = arith.cmpi eq, %2, %534 : vector<16x1xi32>
    %536 = vector.shape_cast %535 : vector<16x1xi1> to vector<16x1xi1>
    %537 = vector.broadcast %536 : vector<16x1xi1> to vector<16x128xi1>
    %538 = arith.select %537, %533, %501 : vector<16x128xi1>, vector<16x128xf32>
    %539 = arith.truncf %533 : vector<16x128xf32> to vector<16x128xbf16>
    %c6_i32_138 = arith.constant 6 : i32
    %540 = arith.index_cast %c6_i32_138 : i32 to index
    %c0_139 = arith.constant 0 : index
    %c0_140 = arith.constant 0 : index
    %541 = vector.load %arg11[%540, %c0_139, %c0_140] : memref<8x16x512xbf16, #tpu.memory_space<vmem>>, vector<1x16x512xbf16>
    %542 = vector.shape_cast %541 : vector<1x16x512xbf16> to vector<16x512xbf16>
    %543 = arith.extf %542 : vector<16x512xbf16> to vector<16x512xf32>
    %cst_141 = arith.constant dense<0.000000e+00> : vector<16x512xf32>
    %544 = tpu.matmul %539, %314, %cst_141 {dimension_numbers = #tpu.dot_dimension_numbers<[1], [0], [0], [1], [0, 0, 1, 1], [], []>} : vector<16x128xbf16>, vector<128x512xbf16>, vector<16x512xf32> -> vector<16x512xf32>
    %545 = arith.addf %543, %544 : vector<16x512xf32>
    %546 = vector.extract_strided_slice %545 {offsets = [0, 0], sizes = [16, 128], strides = [1, 1]} : vector<16x512xf32> to vector<16x128xf32>
    %547 = arith.negf %546 : vector<16x128xf32>
    %548 = math.exp %547 : vector<16x128xf32>
    %cst_142 = arith.constant 1.000000e+00 : f32
    %549 = vector.broadcast %cst_142 : f32 to vector<16x128xf32>
    %550 = arith.addf %549, %548 : vector<16x128xf32>
    %551 = arith.divf %549, %550 : vector<16x128xf32>
    %552 = vector.extract_strided_slice %545 {offsets = [0, 128], sizes = [16, 128], strides = [1, 1]} : vector<16x512xf32> to vector<16x128xf32>
    %553 = arith.negf %552 : vector<16x128xf32>
    %554 = math.exp %553 : vector<16x128xf32>
    %cst_143 = arith.constant 1.000000e+00 : f32
    %555 = vector.broadcast %cst_143 : f32 to vector<16x128xf32>
    %556 = arith.addf %555, %554 : vector<16x128xf32>
    %557 = arith.divf %555, %556 : vector<16x128xf32>
    %558 = vector.extract_strided_slice %545 {offsets = [0, 256], sizes = [16, 128], strides = [1, 1]} : vector<16x512xf32> to vector<16x128xf32>
    %559 = math.tanh %558 : vector<16x128xf32>
    %560 = vector.extract_strided_slice %545 {offsets = [0, 384], sizes = [16, 128], strides = [1, 1]} : vector<16x512xf32> to vector<16x128xf32>
    %561 = arith.negf %560 : vector<16x128xf32>
    %562 = math.exp %561 : vector<16x128xf32>
    %cst_144 = arith.constant 1.000000e+00 : f32
    %563 = vector.broadcast %cst_144 : f32 to vector<16x128xf32>
    %564 = arith.addf %563, %562 : vector<16x128xf32>
    %565 = arith.divf %563, %564 : vector<16x128xf32>
    %566 = arith.mulf %557, %531 : vector<16x128xf32>
    %567 = arith.mulf %551, %559 : vector<16x128xf32>
    %568 = arith.addf %566, %567 : vector<16x128xf32>
    %569 = math.tanh %568 : vector<16x128xf32>
    %570 = arith.mulf %565, %569 : vector<16x128xf32>
    %571 = vector.broadcast %c6_i32_138 : i32 to vector<16x1xi32>
    %572 = arith.cmpi eq, %2, %571 : vector<16x1xi32>
    %573 = vector.shape_cast %572 : vector<16x1xi1> to vector<16x1xi1>
    %574 = vector.broadcast %573 : vector<16x1xi1> to vector<16x128xi1>
    %575 = arith.select %574, %570, %538 : vector<16x128xi1>, vector<16x128xf32>
    %576 = arith.truncf %570 : vector<16x128xf32> to vector<16x128xbf16>
    %c7_i32_145 = arith.constant 7 : i32
    %577 = arith.index_cast %c7_i32_145 : i32 to index
    %c0_146 = arith.constant 0 : index
    %c0_147 = arith.constant 0 : index
    %578 = vector.load %arg11[%577, %c0_146, %c0_147] : memref<8x16x512xbf16, #tpu.memory_space<vmem>>, vector<1x16x512xbf16>
    %579 = vector.shape_cast %578 : vector<1x16x512xbf16> to vector<16x512xbf16>
    %580 = arith.extf %579 : vector<16x512xbf16> to vector<16x512xf32>
    %cst_148 = arith.constant dense<0.000000e+00> : vector<16x512xf32>
    %581 = tpu.matmul %576, %314, %cst_148 {dimension_numbers = #tpu.dot_dimension_numbers<[1], [0], [0], [1], [0, 0, 1, 1], [], []>} : vector<16x128xbf16>, vector<128x512xbf16>, vector<16x512xf32> -> vector<16x512xf32>
    %582 = arith.addf %580, %581 : vector<16x512xf32>
    %583 = vector.extract_strided_slice %582 {offsets = [0, 0], sizes = [16, 128], strides = [1, 1]} : vector<16x512xf32> to vector<16x128xf32>
    %584 = arith.negf %583 : vector<16x128xf32>
    %585 = math.exp %584 : vector<16x128xf32>
    %cst_149 = arith.constant 1.000000e+00 : f32
    %586 = vector.broadcast %cst_149 : f32 to vector<16x128xf32>
    %587 = arith.addf %586, %585 : vector<16x128xf32>
    %588 = arith.divf %586, %587 : vector<16x128xf32>
    %589 = vector.extract_strided_slice %582 {offsets = [0, 128], sizes = [16, 128], strides = [1, 1]} : vector<16x512xf32> to vector<16x128xf32>
    %590 = arith.negf %589 : vector<16x128xf32>
    %591 = math.exp %590 : vector<16x128xf32>
    %cst_150 = arith.constant 1.000000e+00 : f32
    %592 = vector.broadcast %cst_150 : f32 to vector<16x128xf32>
    %593 = arith.addf %592, %591 : vector<16x128xf32>
    %594 = arith.divf %592, %593 : vector<16x128xf32>
    %595 = vector.extract_strided_slice %582 {offsets = [0, 256], sizes = [16, 128], strides = [1, 1]} : vector<16x512xf32> to vector<16x128xf32>
    %596 = math.tanh %595 : vector<16x128xf32>
    %597 = vector.extract_strided_slice %582 {offsets = [0, 384], sizes = [16, 128], strides = [1, 1]} : vector<16x512xf32> to vector<16x128xf32>
    %598 = arith.negf %597 : vector<16x128xf32>
    %599 = math.exp %598 : vector<16x128xf32>
    %cst_151 = arith.constant 1.000000e+00 : f32
    %600 = vector.broadcast %cst_151 : f32 to vector<16x128xf32>
    %601 = arith.addf %600, %599 : vector<16x128xf32>
    %602 = arith.divf %600, %601 : vector<16x128xf32>
    %603 = arith.mulf %594, %568 : vector<16x128xf32>
    %604 = arith.mulf %588, %596 : vector<16x128xf32>
    %605 = arith.addf %603, %604 : vector<16x128xf32>
    %606 = math.tanh %605 : vector<16x128xf32>
    %607 = arith.mulf %602, %606 : vector<16x128xf32>
    %608 = vector.broadcast %c7_i32_145 : i32 to vector<16x1xi32>
    %609 = arith.cmpi eq, %2, %608 : vector<16x1xi32>
    %610 = vector.shape_cast %609 : vector<16x1xi1> to vector<16x1xi1>
    %611 = vector.broadcast %610 : vector<16x1xi1> to vector<16x128xi1>
    %612 = arith.select %611, %607, %575 : vector<16x128xi1>, vector<16x128xf32>
    %613 = arith.truncf %607 : vector<16x128xf32> to vector<16x128xbf16>
    %c8_i32_152 = arith.constant 8 : i32
    %c0_153 = arith.constant 0 : index
    %c0_154 = arith.constant 0 : index
    %614 = vector.load %arg9[%c0_153, %c0_154] : memref<16x128xf32, #tpu.memory_space<vmem>>, vector<16x128xf32>
    tpu.vector_store %arg9[%c0_153, %c0_154], %612 {strides = array<i32>} : memref<16x128xf32, #tpu.memory_space<vmem>>, vector<16x128xf32>,
    return
  }
  func.func @transform_0(%arg0: i32) -> (i32, i32) {
    %c0_i32 = arith.constant 0 : i32
    %c0_i32_0 = arith.constant 0 : i32
    return %arg0, %c0_i32 : i32, i32
  }
  func.func @transform_1(%arg0: i32) -> (i32, i32, i32) {
    %c0_i32 = arith.constant 0 : i32
    %c0_i32_0 = arith.constant 0 : i32
    %c0_i32_1 = arith.constant 0 : i32
    return %c0_i32, %arg0, %c0_i32_0 : i32, i32, i32
  }
  func.func @transform_2(%arg0: i32) -> (i32, i32) {
    %c0_i32 = arith.constant 0 : i32
    %c0_i32_0 = arith.constant 0 : i32
    %c0_i32_1 = arith.constant 0 : i32
    return %c0_i32, %c0_i32_0 : i32, i32
  }
  func.func @transform_3(%arg0: i32) -> (i32, i32) {
    %c0_i32 = arith.constant 0 : i32
    %c0_i32_0 = arith.constant 0 : i32
    %c0_i32_1 = arith.constant 0 : i32
    return %c0_i32, %c0_i32_0 : i32, i32
  }
  func.func @transform_4(%arg0: i32) -> (i32, i32) {
    %c0_i32 = arith.constant 0 : i32
    %c0_i32_0 = arith.constant 0 : i32
    %c0_i32_1 = arith.constant 0 : i32
    return %c0_i32, %c0_i32_0 : i32, i32
  }
  func.func @transform_5(%arg0: i32) -> (i32, i32) {
    %c0_i32 = arith.constant 0 : i32
    %c0_i32_0 = arith.constant 0 : i32
    %c0_i32_1 = arith.constant 0 : i32
    return %c0_i32, %c0_i32_0 : i32, i32
  }
  func.func @transform_6(%arg0: i32) -> (i32, i32) {
    %c0_i32 = arith.constant 0 : i32
    %c0_i32_0 = arith.constant 0 : i32
    %c0_i32_1 = arith.constant 0 : i32
    return %c0_i32, %c0_i32_0 : i32, i32
  }
  func.func @transform_7(%arg0: i32) -> (i32, i32) {
    %c0_i32 = arith.constant 0 : i32
    %c0_i32_0 = arith.constant 0 : i32
    %c0_i32_1 = arith.constant 0 : i32
    return %c0_i32, %c0_i32_0 : i32, i32
  }
  func.func @transform_8(%arg0: i32) -> (i32, i32) {
    %c0_i32 = arith.constant 0 : i32
    %c0_i32_0 = arith.constant 0 : i32
    return %arg0, %c0_i32 : i32, i32
  }
}

</mosaic_0001>

<bundles_post_ra>
// kernel: tpu_custom_call.1
= control target key start
LH: loop header
LB: loop body
LE: loop exit
PB: predicated region body
PF: predicated region fallthrough
CT: control target
= control target key end

     0   :  { %13 = vsyncpa [#allocation5], 0  ;;  %s7582_s0 = inlined_call_operand.vmem [shape: s32[16,1], index: 0, kind: input, shape index: {}]   ;;  %s7583_s1 = inlined_call_operand.hbm [shape: bf16[8,16,128], index: 1, kind: input, shape index: {}]   ;;  %s7584_s2 = inlined_call_operand.hbm [shape: bf16[128,512], index: 2, kind: input, shape index: {}]   ;;  %s7585_s3 = inlined_call_operand.hbm [shape: bf16[128,512], index: 3, kind: input, shape index: {}]   ;;  %s7586_s4 = inlined_call_operand.vmem [shape: f32[1,512], index: 4, kind: input, shape index: {}]   ;;  %s7587_s5 = inlined_call_operand.hbm [shape: bf16[128,512], index: 5, kind: input, shape index: {}]   ;;  %s7588_s6 = inlined_call_operand.hbm [shape: bf16[128,512], index: 6, kind: input, shape index: {}]   ;;  %s7589_s7 = inlined_call_operand.vmem [shape: f32[1,512], index: 7, kind: input, shape index: {}]   ;;  %s7590_s8 = inlined_call_operand.hbm [shape: f32[16,128], index: 8, kind: output, shape index: {}]  }
   0x1   :  { %14 = vsyncpa [#allocation8], 0 }
   0x2   :  { %15 = vsyncpa [#allocation11], 0 }
   0x3   :  { %16 = vsyncpa [#allocation6], 0  ;;  %s6010_s27 = smov [#allocation7]  }
   0x4   :  { %s36_s28 = sshll.u32 %s6010_s27, 4  ;;  %s37_s28 = int_to_ptr.vmem [resolvable:$true] %s36_s28 }
   0x5   :  { %s5890_s29 = scalar_lea.vmem %s37_s28, 4096  ;;  %p5895_p1 = scmp.lt.s32.totalorder %s37_s28, %s37_s28 }
   0x6   :  { %p5891_p0 = scmp.ne.s32.totalorder %s37_s28, %s5890_s29  ;;  %p5896_p2 = scmp.lt.s32.totalorder %s5890_s29, %s5890_s29 }
   0x8   :  { %p5897_p3 = por %p5896_p2, %p5895_p1 }
   0xa   :  { %p5898_p4 = pnand %p5897_p3, %p5891_p0 }
   0xc   :  { %5901 = shalt.err (!%p5898_p4)
}
   0xd   :  { %s6011_s30 = smov 256   ;;  %s6012_s9 = smov 16  }
   0xe   :  { %42 = dma.hbm_to_vmem [thread:$0]  %s7584_s2, 4096, %s37_s28, [#allocation8], %s6011_s30, %s6011_s30, %s6012_s9  }
   0xf   :  { %s6013_s12 = smov [#allocation10]   ;;  %s6014_s14 = smov [#allocation4]  }
  0x10   :  { %s62_s13 = sshll.u32 %s6013_s12, 4  ;;  %s24_s15 = sshll.u32 %s6014_s14, 4  ;;  %s63_s13 = int_to_ptr.vmem [resolvable:$true] %s62_s13  ;;  %s25_s15 = int_to_ptr.vmem [resolvable:$true] %s24_s15 }
  0x11   :  { %s5910_s16 = scalar_lea.vmem %s63_s13, 4096  ;;  %p5915_p6 = scmp.lt.s32.totalorder %s63_s13, %s63_s13 }
  0x12   :  { %p5911_p5 = scmp.ne.s32.totalorder %s63_s13, %s5910_s16  ;;  %p5916_p7 = scmp.lt.s32.totalorder %s5910_s16, %s5910_s16 }
  0x14   :  { %p5917_p8 = por %p5916_p7, %p5915_p6 }
  0x16   :  { %p5918_p9 = pnand %p5917_p8, %p5911_p5 }
  0x18   :  { %5921 = shalt.err (!%p5918_p9)
}
  0x19   :  { %68 = dma.hbm_to_vmem [thread:$0]  %s7587_s5, 4096, %s63_s13, [#allocation11], %s6011_s30, %s6011_s30, %s6012_s9  }
  0x1a   :  { %s5930_s2 = scalar_lea.vmem %s25_s15, 1024  ;;  %p5935_p11 = scmp.lt.s32.totalorder %s25_s15, %s25_s15 }
  0x1b   :  { %p5931_p10 = scmp.ne.s32.totalorder %s25_s15, %s5930_s2  ;;  %p5936_p12 = scmp.lt.s32.totalorder %s5930_s2, %s5930_s2 }
  0x1d   :  { %p5937_p13 = por %p5936_p12, %p5935_p11 }
  0x1f   :  { %p5938_p0 = pnand %p5937_p13, %p5931_p10 }
  0x21   :  { %5941 = shalt.err (!%p5938_p0)
}
  0x22   :  { %s6015_s19 = smov 64   ;;  %s6016_s20 = smov 4  }
  0x23   :  { %30 = dma.hbm_to_vmem [thread:$0]  %s7583_s1, 1024, %s25_s15, [#allocation5], %s6015_s19, %s6015_s19, %s6016_s20  }
  0x24   :  { %s6017_s23 = smov [#allocation9]   ;;  %s6018_s25 = smov [#allocation12]  }
  0x25   :  { %s48_s24 = sshll.u32 %s6017_s23, 4  ;;  %s74_s26 = sshll.u32 %s6018_s25, 4  ;;  %s49_s24 = int_to_ptr.vmem [resolvable:$true] %s48_s24  ;;  %s75_s26 = int_to_ptr.vmem [resolvable:$true] %s74_s26 }
  0x26   :  { %s5950_s5 = scalar_lea.vmem %s49_s24, 4096  ;;  %p5955_p2 = scmp.lt.s32.totalorder %s49_s24, %s49_s24 }
  0x27   :  { %p5951_p1 = scmp.ne.s32.totalorder %s49_s24, %s5950_s5  ;;  %p5956_p3 = scmp.lt.s32.totalorder %s5950_s5, %s5950_s5 }
  0x29   :  { %p5957_p4 = por %p5956_p3, %p5955_p2 }
  0x2b   :  { %p5958_p5 = pnand %p5957_p4, %p5951_p1 }
  0x2d   :  { %5961 = shalt.err (!%p5958_p5)
}
  0x2e   :  { %54 = dma.hbm_to_vmem [thread:$0]  %s7585_s3, 4096, %s49_s24, [#allocation8], %s6011_s30, %s6011_s30, %s6012_s9  }
  0x2f   :  { %s5970_s1 = scalar_lea.vmem %s75_s26, 4096  ;;  %p5975_p7 = scmp.lt.s32.totalorder %s75_s26, %s75_s26 }
  0x30   :  { %p5971_p6 = scmp.ne.s32.totalorder %s75_s26, %s5970_s1  ;;  %p5976_p8 = scmp.lt.s32.totalorder %s5970_s1, %s5970_s1 }
  0x32   :  { %p5977_p9 = por %p5976_p8, %p5975_p7 }
  0x34   :  { %p5978_p10 = pnand %p5977_p9, %p5971_p6 }
  0x36   :  { %5981 = shalt.err (!%p5978_p10)
}
  0x37   :  { %80 = dma.hbm_to_vmem [thread:$0]  %s7588_s6, 4096, %s75_s26, [#allocation11], %s6011_s30, %s6011_s30, %s6012_s9  }
  0x38   :  { %6002 = dma.done.wait [#allocation5], 1024  }
  0x39   :  { %6003 = vsyncadd [#allocation5], 4294966272 }
  0x3a   :  { %6004 = dma.done.wait [#allocation8], 8192  }
  0x3b   :  { %6005 = vsyncadd [#allocation8], 4294959104 }
  0x3c   :  { %6006 = dma.done.wait [#allocation11], 8192  }
  0x3d   :  { %6007 = vsyncadd [#allocation11], 4294959104  ;;  %v7595_v0 = vmov 0   ;;  %v5098_v1 = vld [vmem:[#allocation7 + $0xe4] ss:$16 sps:$4 sm:$0xff]   ;;  %v5150_v43 = vld [vmem:[#allocation4 + $0x8] sm:$0xff]  }
  0x3e   :  { %413 = vmatprep.mubr.bf16.mxu0 %v7595_v0  ;;  %526 = vmatprep.mubr.bf16.mxu1 %v7595_v0  ;;  %v5100_v2 = vld [vmem:[#allocation7 + $0xec] ss:$16 sps:$4 sm:$0xff]   ;;  %v5102_v3 = vld [vmem:[#allocation7 + $0xe0] ss:$16 sps:$4 sm:$0xff]   ;;  %v5103_v4 = vld [vmem:[#allocation7 + $0xe8] ss:$16 sps:$4 sm:$0xff]  }
  0x3f   :  { %5096 = vset.pattern.permute.xlu0 %v7595_v0  ;;  %5097 = vset.pattern.permute.xlu1 %v7595_v0  ;;  %v5104_v5 = vld [vmem:[#allocation7 + $0xc4] ss:$16 sps:$4 sm:$0xff]   ;;  %v5106_v6 = vld [vmem:[#allocation7 + $0xcc] ss:$16 sps:$4 sm:$0xff]   ;;  %v5108_v7 = vld [vmem:[#allocation7 + $0xc0] ss:$16 sps:$4 sm:$0xff]  }
  0x40   :  { %381 = vmatprep.subr.bf16.mxu0 %v5098_v1  ;;  %494 = vmatprep.subr.bf16.mxu1 %v5100_v2  ;;  %v5109_v8 = vld [vmem:[#allocation7 + $0xc8] ss:$16 sps:$4 sm:$0xff]   ;;  %v5110_v9 = vld [vmem:[#allocation7 + $0xa4] ss:$16 sps:$4 sm:$0xff]   ;;  %v5112_v10 = vld [vmem:[#allocation7 + $0xac] ss:$16 sps:$4 sm:$0xff]  }
  0x41   :  { %382 = vmatpush1.bf16.msra.mxu0 %v5102_v3  ;;  %495 = vmatpush1.bf16.msra.mxu1 %v5103_v4  ;;  %v5114_v11 = vld [vmem:[#allocation7 + $0xa0] ss:$16 sps:$4 sm:$0xff]   ;;  %v5115_v12 = vld [vmem:[#allocation7 + $0xa8] ss:$16 sps:$4 sm:$0xff]   ;;  %v5116_v13 = vld [vmem:[#allocation7 + $0x84] ss:$16 sps:$4 sm:$0xff]  }
  0x42   :  { %383 = vmatprep.subr.bf16.mxu0 %v5104_v5  ;;  %496 = vmatprep.subr.bf16.mxu1 %v5106_v6  ;;  %v5118_v14 = vld [vmem:[#allocation7 + $0x8c] ss:$16 sps:$4 sm:$0xff]   ;;  %v5120_v15 = vld [vmem:[#allocation7 + $0x80] ss:$16 sps:$4 sm:$0xff]   ;;  %v5121_v16 = vld [vmem:[#allocation7 + $0x88] ss:$16 sps:$4 sm:$0xff]  }
  0x43   :  { %v5122_v17 = vld [vmem:[#allocation7 + $0x64] ss:$16 sps:$4 sm:$0xff]   ;;  %v5124_v18 = vld [vmem:[#allocation7 + $0x6c] ss:$16 sps:$4 sm:$0xff]   ;;  %v5126_v19 = vld [vmem:[#allocation7 + $0x60] ss:$16 sps:$4 sm:$0xff]  }
  0x44   :  { %v5127_v20 = vld [vmem:[#allocation7 + $0x68] ss:$16 sps:$4 sm:$0xff]   ;;  %v5128_v21 = vld [vmem:[#allocation7 + $0x44] ss:$16 sps:$4 sm:$0xff]   ;;  %v5130_v22 = vld [vmem:[#allocation7 + $0x4c] ss:$16 sps:$4 sm:$0xff]  }
  0x45   :  { %384 = vmatpush1.bf16.msra.mxu0 %v5108_v7  ;;  %497 = vmatpush1.bf16.msra.mxu1 %v5109_v8  ;;  %v5132_v23 = vld [vmem:[#allocation7 + $0x40] ss:$16 sps:$4 sm:$0xff]   ;;  %v5133_v24 = vld [vmem:[#allocation7 + $0x48] ss:$16 sps:$4 sm:$0xff]   ;;  %v5134_v25 = vld [vmem:[#allocation7 + $0x24] ss:$16 sps:$4 sm:$0xff]  }
  0x46   :  { %385 = vmatprep.subr.bf16.mxu0 %v5110_v9  ;;  %498 = vmatprep.subr.bf16.mxu1 %v5112_v10  ;;  %v5136_v26 = vld [vmem:[#allocation7 + $0x2c] ss:$16 sps:$4 sm:$0xff]   ;;  %v5138_v27 = vld [vmem:[#allocation7 + $0x20] ss:$16 sps:$4 sm:$0xff]   ;;  %v5139_v28 = vld [vmem:[#allocation7 + $0x28] ss:$16 sps:$4 sm:$0xff]   ;;  %v153_v10 = vlaneseq }
  0x47   :  { %v5140_v29 = vld [vmem:[#allocation7 + $0x4] ss:$16 sps:$4 sm:$0xff]   ;;  %v5142_v30 = vld [vmem:[#allocation7 + $0xc] ss:$16 sps:$4 sm:$0xff]   ;;  %v5144_v31 = vld [vmem:[#allocation7] ss:$16 sps:$4 sm:$0xff]  }
  0x48   :  { %v5145_v32 = vld [vmem:[#allocation7 + $0x8] ss:$16 sps:$4 sm:$0xff]   ;;  %v6099_v33 = vld [vmem:[#allocation9 + $0xe4] ss:$16 sps:$4 sm:$0xff]   ;;  %v6101_v34 = vld [vmem:[#allocation9 + $0xec] ss:$16 sps:$4 sm:$0xff]  }
  0x49   :  { %386 = vmatpush1.bf16.msra.mxu0 %v5114_v11  ;;  %499 = vmatpush1.bf16.msra.mxu1 %v5115_v12  ;;  %v5146_v35 = vld [vmem:[#allocation4] sm:$0xff]   ;;  %v6109_v38 = vld [vmem:[#allocation9 + $0xe8] ss:$16 sps:$4 sm:$0xff]   ;;  %v6111_v39 = vld [vmem:[#allocation9 + $0xcc] ss:$16 sps:$4 sm:$0xff]   ;;  %v6249_v11 = vshrl.u32 %v153_v10, 7 }
  0x4a   :  { %387 = vmatprep.subr.bf16.mxu0 %v5116_v13  ;;  %500 = vmatprep.subr.bf16.mxu1 %v5118_v14  ;;  %v6103_v36 = vld [vmem:[#allocation9 + $0xe0] ss:$16 sps:$4 sm:$0xff]   ;;  %v6106_v37 = vld [vmem:[#allocation9 + $0xc4] ss:$16 sps:$4 sm:$0xff]   ;;  %v6122_v42 = vld [vmem:[#allocation9 + $0xc8] ss:$16 sps:$4 sm:$0xff]  }
  0x4b   :  { %v6115_v40 = vld [vmem:[#allocation9 + $0xc0] ss:$16 sps:$4 sm:$0xff]   ;;  %v6119_v41 = vld [vmem:[#allocation9 + $0xa4] ss:$16 sps:$4 sm:$0xff]   ;;  %v6131_v46 = vld [vmem:[#allocation9 + $0xac] ss:$16 sps:$4 sm:$0xff]  }
  0x4c   :  { %v6126_v44 = vld [vmem:[#allocation9 + $0xa0] ss:$16 sps:$4 sm:$0xff]   ;;  %v6128_v45 = vld [vmem:[#allocation9 + $0x84] ss:$16 sps:$4 sm:$0xff]   ;;  %v6134_v47 = vld [vmem:[#allocation9 + $0xa8] ss:$16 sps:$4 sm:$0xff]  }
  0x4d   :  { %388 = vmatpush1.bf16.msra.mxu0 %v5120_v15  ;;  %501 = vmatpush1.bf16.msra.mxu1 %v5121_v16  ;;  %v6136_v48 = vld [vmem:[#allocation9 + $0x8c] ss:$16 sps:$4 sm:$0xff]   ;;  %v6141_v49 = vld [vmem:[#allocation9 + $0x80] ss:$16 sps:$4 sm:$0xff]   ;;  %v6143_v50 = vld [vmem:[#allocation9 + $0x64] ss:$16 sps:$4 sm:$0xff]  }
  0x4e   :  { %389 = vmatprep.subr.bf16.mxu0 %v5122_v17  ;;  %502 = vmatprep.subr.bf16.mxu1 %v5124_v18  ;;  %v6148_v51 = vld [vmem:[#allocation9 + $0x88] ss:$16 sps:$4 sm:$0xff]   ;;  %v5154_v52 = vld [vmem:[#allocation4 + $0x10] sm:$0xff]   ;;  %v6154_v54 = vld [vmem:[#allocation9 + $0x6c] ss:$16 sps:$4 sm:$0xff]   ;;  %7646 = vst [vmem:[#allocation18_spill] sm:$0xff] %v6249_v11 }
  0x4f   :  { %v6151_v53 = vld [vmem:[#allocation9 + $0x60] ss:$16 sps:$4 sm:$0xff]   ;;  %v6157_v55 = vld [vmem:[#allocation9 + $0x44] ss:$16 sps:$4 sm:$0xff]   ;;  %v6160_v56 = vld [vmem:[#allocation9 + $0x68] ss:$16 sps:$4 sm:$0xff]  }
  0x50   :  { %v6162_v57 = vld [vmem:[#allocation9 + $0x4c] ss:$16 sps:$4 sm:$0xff]   ;;  %v6164_v58 = vld [vmem:[#allocation9 + $0x40] ss:$16 sps:$4 sm:$0xff]   ;;  %v6168_v59 = vld [vmem:[#allocation9 + $0x24] ss:$16 sps:$4 sm:$0xff]  }
  0x51   :  { %390 = vmatpush1.bf16.msra.mxu0 %v5126_v19  ;;  %503 = vmatpush1.bf16.msra.mxu1 %v5127_v20  ;;  %v6170_v60 = vld [vmem:[#allocation9 + $0x48] ss:$16 sps:$4 sm:$0xff]   ;;  %v6176_v62 = vld [vmem:[#allocation9 + $0x20] ss:$16 sps:$4 sm:$0xff]   ;;  %v6179_v63 = vld [vmem:[#allocation9 + $0x2c] ss:$16 sps:$4 sm:$0xff]  }
  0x52   :  { %391 = vmatprep.subr.bf16.mxu0 %v5128_v21  ;;  %504 = vmatprep.subr.bf16.mxu1 %v5130_v22  ;;  %v5161_v61 = vld [vmem:[#allocation4 + $0x18] sm:$0xff]   ;;  %v6181_v1 = vld [vmem:[#allocation9 + $0x4] ss:$16 sps:$4 sm:$0xff]   ;;  %v6190_v4 = vld [vmem:[#allocation9] ss:$16 sps:$4 sm:$0xff]   ;;  %v7594_v16 = vsub.s32 0, %v6249_v11 }
  0x53   :  { %v6183_v2 = vld [vmem:[#allocation9 + $0x28] ss:$16 sps:$4 sm:$0xff]   ;;  %v6186_v3 = vld [vmem:[#allocation9 + $0xc] ss:$16 sps:$4 sm:$0xff]   ;;  %v5168_v6 = vld [vmem:[#allocation4 + $0x20] sm:$0xff]   ;;  %v7593_v17 = vsub.s32 2, %v6249_v11 }
  0x54   :  { %v6194_v5 = vld [vmem:[#allocation9 + $0x8] ss:$16 sps:$4 sm:$0xff]   ;;  %v5182_v8 = vld [vmem:[#allocation4 + $0x30] sm:$0xff]   ;;  %v151_v18 = vld [vmem:[%s7586_s4] sm:$0xf]  ;;  %v7592_v21 = vsub.s32 1, %v6249_v11 }
  0x55   :  { %392 = vmatpush1.bf16.msra.mxu0 %v5132_v23  ;;  %505 = vmatpush1.bf16.msra.mxu1 %v5133_v24  ;;  %v5175_v7 = vld [vmem:[#allocation4 + $0x28] sm:$0xff]   ;;  %v5192_v9 = vld [vmem:[#allocation4 + $0x38] sm:$0xff]   ;;  %v7591_v22 = vsub.s32 3, %v6249_v11 }
  0x56   :  { %393 = vmatprep.subr.bf16.mxu0 %v5134_v25  ;;  %506 = vmatprep.subr.bf16.mxu1 %v5136_v26  ;;  %v6276_v25 = vrot.slane %v151_v18, %v7594_v16  ;;  %v6280_v26 = vrot.slane %v151_v18, %v7593_v17 }
  0x59   :  { %394 = vmatpush1.bf16.msra.mxu0 %v5138_v27  ;;  %507 = vmatpush1.bf16.msra.mxu1 %v5139_v28 }
  0x5a   :  { %395 = vmatprep.subr.bf16.mxu0 %v5140_v29  ;;  %508 = vmatprep.subr.bf16.mxu1 %v5142_v30  ;;  %v6284_v29 = vrot.slane %v151_v18, %v7592_v21  ;;  %v6288_v30 = vrot.slane %v151_v18, %v7591_v22 }
  0x5d   :  { %396 = vmatpush1.bf16.msra.mxu0 %v5144_v31  ;;  %509 = vmatpush1.bf16.msra.mxu1 %v5145_v32 }
  0x5e   :  { %1035 = vmatprep.subr.bf16.mxu0 %v6099_v33  ;;  %1078 = vmatprep.subr.bf16.mxu1 %v6101_v34 }
  0x60   :  { %414 = vmatmul.mubr.bf16.vlgmr.msra.gmra.mxu0 %v5146_v35  ;;  %527 = vmatmul.mubr.bf16.vlgmr.msra.gmra.mxu1 %v5146_v35 }
  0x61   :  { %1036 = vmatpush1.bf16.msra.mxu0 %v6103_v36  ;;  %423 = vmatprep.mubr.bf16.mxu0 %v7595_v0 }
  0x62   :  { %536 = vmatprep.mubr.bf16.mxu1 %v7595_v0  ;;  %1037 = vmatprep.subr.bf16.mxu0 %v6106_v37 }
  0x63   :  { %1079 = vmatpush1.bf16.msra.mxu1 %v6109_v38 }
  0x64   :  { %1080 = vmatprep.subr.bf16.mxu1 %v6111_v39 }
  0x65   :  { %1038 = vmatpush1.bf16.msra.mxu0 %v6115_v40 }
  0x66   :  { %1039 = vmatprep.subr.bf16.mxu0 %v6119_v41 }
  0x67   :  { %1081 = vmatpush1.bf16.msra.mxu1 %v6122_v42 }
  0x68   :  { %424 = vmatmul.mubr.bf16.gmra.mxu0 %v5150_v43  ;;  %537 = vmatmul.mubr.bf16.gmra.mxu1 %v5150_v43 }
  0x69   :  { %433 = vmatprep.mubr.bf16.mxu0 %v7595_v0  ;;  %546 = vmatprep.mubr.bf16.mxu1 %v7595_v0 }
  0x6a   :  { %1040 = vmatpush1.bf16.msra.mxu0 %v6126_v44  ;;  %1082 = vmatprep.subr.bf16.mxu1 %v6131_v46 }
  0x6b   :  { %1041 = vmatprep.subr.bf16.mxu0 %v6128_v45  ;;  %1083 = vmatpush1.bf16.msra.mxu1 %v6134_v47 }
  0x6c   :  { %1084 = vmatprep.subr.bf16.mxu1 %v6136_v48 }
  0x6e   :  { %1042 = vmatpush1.bf16.msra.mxu0 %v6141_v49 }
  0x6f   :  { %1043 = vmatprep.subr.bf16.mxu0 %v6143_v50  ;;  %1085 = vmatpush1.bf16.msra.mxu1 %v6148_v51 }
  0x70   :  { %434 = vmatmul.mubr.bf16.gmra.mxu0 %v5154_v52  ;;  %547 = vmatmul.mubr.bf16.gmra.mxu1 %v5154_v52 }
  0x71   :  { %443 = vmatprep.mubr.bf16.mxu0 %v7595_v0  ;;  %556 = vmatprep.mubr.bf16.mxu1 %v7595_v0 }
  0x72   :  { %1044 = vmatpush1.bf16.msra.mxu0 %v6151_v53  ;;  %1086 = vmatprep.subr.bf16.mxu1 %v6154_v54 }
  0x73   :  { %1045 = vmatprep.subr.bf16.mxu0 %v6157_v55  ;;  %1087 = vmatpush1.bf16.msra.mxu1 %v6160_v56 }
  0x74   :  { %1088 = vmatprep.subr.bf16.mxu1 %v6162_v57 }
  0x76   :  { %1046 = vmatpush1.bf16.msra.mxu0 %v6164_v58 }
  0x77   :  { %1047 = vmatprep.subr.bf16.mxu0 %v6168_v59  ;;  %1089 = vmatpush1.bf16.msra.mxu1 %v6170_v60 }
  0x78   :  { %444 = vmatmul.mubr.bf16.gmra.mxu0 %v5161_v61  ;;  %557 = vmatmul.mubr.bf16.gmra.mxu1 %v5161_v61 }
  0x79   :  { %453 = vmatprep.mubr.bf16.mxu0 %v7595_v0  ;;  %566 = vmatprep.mubr.bf16.mxu1 %v7595_v0 }
  0x7a   :  { %1048 = vmatpush1.bf16.msra.mxu0 %v6176_v62  ;;  %1090 = vmatprep.subr.bf16.mxu1 %v6179_v63 }
  0x7b   :  { %1049 = vmatprep.subr.bf16.mxu0 %v6181_v1  ;;  %1091 = vmatpush1.bf16.msra.mxu1 %v6183_v2 }
  0x7c   :  { %1092 = vmatprep.subr.bf16.mxu1 %v6186_v3 }
  0x7e   :  { %1050 = vmatpush1.bf16.msra.mxu0 %v6190_v4 }
  0x7f   :  { %1093 = vmatpush1.bf16.msra.mxu1 %v6194_v5  ;;  %1200 = vmatprep.subr.bf16.mxu0 %v6099_v33 }
  0x80   :  { %454 = vmatmul.mubr.bf16.gmra.mxu0 %v5168_v6  ;;  %567 = vmatmul.mubr.bf16.gmra.mxu1 %v5168_v6 }
  0x81   :  { %463 = vmatprep.mubr.bf16.mxu0 %v7595_v0  ;;  %576 = vmatprep.mubr.bf16.mxu1 %v7595_v0 }
  0x82   :  { %1243 = vmatprep.subr.bf16.mxu1 %v6101_v34 }
  0x88   :  { %464 = vmatmul.mubr.bf16.gmra.mxu0 %v5175_v7  ;;  %577 = vmatmul.mubr.bf16.gmra.mxu1 %v5175_v7 }
  0x89   :  { %473 = vmatprep.mubr.bf16.mxu0 %v7595_v0  ;;  %586 = vmatprep.mubr.bf16.mxu1 %v7595_v0 }
  0x90   :  { %474 = vmatmul.mubr.bf16.gmra.mxu0 %v5182_v8  ;;  %587 = vmatmul.mubr.bf16.gmra.mxu1 %v5182_v8 }
  0x91   :  { %483 = vmatprep.mubr.bf16.mxu0 %v7595_v0  ;;  %596 = vmatprep.mubr.bf16.mxu1 %v7595_v0 }
  0x98   :  { %484 = vmatmul.mubr.bf16.gmra.mxu0 %v5192_v9  ;;  %597 = vmatmul.mubr.bf16.gmra.mxu1 %v5192_v9 }
  0x99   :  { %1067 = vmatprep.mubr.bf16.mxu0 %v7595_v0  ;;  %1110 = vmatprep.mubr.bf16.mxu1 %v7595_v0 }
  0xa0   :  { %1068 = vmatmul.mubr.bf16.vlgmr.msra.gmra.mxu0 %v7595_v0  ;;  %1111 = vmatmul.mubr.bf16.vlgmr.msra.gmra.mxu1 %v7595_v0 }
  0xa1   :  { %1201 = vmatpush1.bf16.msra.mxu0 %v6103_v36  ;;  %1244 = vmatpush1.bf16.msra.mxu1 %v6109_v38 }
  0xa2   :  { %1202 = vmatprep.subr.bf16.mxu0 %v6106_v37  ;;  %1245 = vmatprep.subr.bf16.mxu1 %v6111_v39 }
  0xa3   :  { %1232 = vmatprep.mubr.bf16.mxu0 %v7595_v0  ;;  %1275 = vmatprep.mubr.bf16.mxu1 %v7595_v0 }
  0xa5   :  { %1203 = vmatpush1.bf16.msra.mxu0 %v6115_v40  ;;  %1246 = vmatpush1.bf16.msra.mxu1 %v6122_v42 }
  0xa6   :  { %1204 = vmatprep.subr.bf16.mxu0 %v6119_v41  ;;  %1247 = vmatprep.subr.bf16.mxu1 %v6131_v46 }
  0xa9   :  { %1205 = vmatpush1.bf16.msra.mxu0 %v6126_v44  ;;  %1248 = vmatpush1.bf16.msra.mxu1 %v6134_v47 }
  0xaa   :  { %1206 = vmatprep.subr.bf16.mxu0 %v6128_v45  ;;  %1249 = vmatprep.subr.bf16.mxu1 %v6136_v48 }
  0xad   :  { %1207 = vmatpush1.bf16.msra.mxu0 %v6141_v49  ;;  %1250 = vmatpush1.bf16.msra.mxu1 %v6148_v51 }
  0xae   :  { %1208 = vmatprep.subr.bf16.mxu0 %v6143_v50  ;;  %1251 = vmatprep.subr.bf16.mxu1 %v6154_v54 }
  0xb1   :  { %1209 = vmatpush1.bf16.msra.mxu0 %v6151_v53  ;;  %1252 = vmatpush1.bf16.msra.mxu1 %v6160_v56 }
  0xb2   :  { %1210 = vmatprep.subr.bf16.mxu0 %v6157_v55  ;;  %1253 = vmatprep.subr.bf16.mxu1 %v6162_v57 }
  0xb5   :  { %1211 = vmatpush1.bf16.msra.mxu0 %v6164_v58  ;;  %1254 = vmatpush1.bf16.msra.mxu1 %v6170_v60 }
  0xb6   :  { %1212 = vmatprep.subr.bf16.mxu0 %v6168_v59  ;;  %1255 = vmatprep.subr.bf16.mxu1 %v6179_v63 }
  0xb9   :  { %1213 = vmatpush1.bf16.msra.mxu0 %v6176_v62  ;;  %1256 = vmatpush1.bf16.msra.mxu1 %v6183_v2 }
  0xba   :  { %1214 = vmatprep.subr.bf16.mxu0 %v6181_v1  ;;  %1257 = vmatprep.subr.bf16.mxu1 %v6186_v3 }
  0xbd   :  { %1215 = vmatpush1.bf16.msra.mxu0 %v6190_v4  ;;  %1258 = vmatpush1.bf16.msra.mxu1 %v6194_v5 }
  0xbe   :  { %1366 = vmatprep.subr.bf16.mxu0 %v6099_v33  ;;  %1409 = vmatprep.subr.bf16.mxu1 %v6101_v34 }
 0x120   :  { %v6251_v12 = vpop.f32.mrf.mxu0  ;;  %v6253_v13 = vpop.f32.mrf.mxu1 }
 0x122   :  { %v6255_v14 = vpop.f32.mrf.mxu0  ;;  %v6257_v15 = vpop.f32.mrf.mxu1 }
 0x124   :  { %v6264_v19 = vpop.f32.mrf.mxu0  ;;  %v6266_v20 = vpop.f32.mrf.mxu1 }
 0x126   :  { %v6270_v23 = vpop.f32.mrf.mxu0  ;;  %v6272_v24 = vpop.f32.mrf.mxu1 }
 0x128   :  { %v425_v27 = vpop.f32.mrf.mxu0  ;;  %v538_v28 = vpop.f32.mrf.mxu1 }
 0x129   :  { %v426_v31 = vadd.f32 %v425_v27, %v6276_v25  ;;  %v539_v32 = vadd.f32 %v538_v28, %v6280_v26 }
 0x12a   :  { %v427_v33 = vpop.f32.mrf.mxu0  ;;  %v540_v34 = vpop.f32.mrf.mxu1 }
 0x12b   :  { %v428_v35 = vadd.f32 %v427_v33, %v6284_v29  ;;  %v541_v43 = vadd.f32 %v540_v34, %v6288_v30 }
 0x12c   :  { %v429_v52 = vpop.f32.mrf.mxu0  ;;  %v542_v61 = vpop.f32.mrf.mxu1 }
 0x12d   :  { %v6294_v6 = vpack.c.bf16 %v428_v35, %v426_v31  ;;  %v6296_v7 = vpack.c.bf16 %v541_v43, %v539_v32  ;;  %v430_v8 = vadd.f32 %v429_v52, %v6276_v25  ;;  %v543_v9 = vadd.f32 %v542_v61, %v6280_v26 }
 0x12e   :  { %v431_v10 = vpop.f32.mrf.mxu0  ;;  %v544_v18 = vpop.f32.mrf.mxu1 }
 0x12f   :  { %v432_v27 = vadd.f32 %v431_v10, %v6284_v29  ;;  %v545_v28 = vadd.f32 %v544_v18, %v6288_v30 }
 0x130   :  { %v435_v22 = vpop.f32.mrf.mxu0  ;;  %v548_v33 = vpop.f32.mrf.mxu1 }
 0x131   :  { %v6302_v21 = vpack.c.bf16 %v432_v27, %v430_v8  ;;  %v6304_v34 = vpack.c.bf16 %v545_v28, %v543_v9  ;;  %v436_v31 = vadd.f32 %v435_v22, %v6276_v25  ;;  %v549_v32 = vadd.f32 %v548_v33, %v6280_v26 }
 0x132   :  { %v437_v35 = vpop.f32.mrf.mxu0  ;;  %v550_v43 = vpop.f32.mrf.mxu1 }
 0x133   :  { %v438_v52 = vadd.f32 %v437_v35, %v6284_v29  ;;  %v551_v61 = vadd.f32 %v550_v43, %v6288_v30 }
 0x134   :  { %v439_v17 = vpop.f32.mrf.mxu0  ;;  %v552_v10 = vpop.f32.mrf.mxu1 }
 0x135   :  { %v6310_v16 = vpack.c.bf16 %v438_v52, %v436_v31  ;;  %v6312_v18 = vpack.c.bf16 %v551_v61, %v549_v32  ;;  %v440_v8 = vadd.f32 %v439_v17, %v6276_v25  ;;  %v553_v9 = vadd.f32 %v552_v10, %v6280_v26 }
 0x136   :  { %v441_v27 = vpop.f32.mrf.mxu0  ;;  %v554_v22 = vpop.f32.mrf.mxu1 }
 0x137   :  { %7647 = vst [vmem:[#allocation19_spill] sm:$0xff] %v6310_v16  ;;  %7648 = vst [vmem:[#allocation20_spill] sm:$0xff] %v6312_v18  ;;  %v442_v28 = vadd.f32 %v441_v27, %v6284_v29  ;;  %v555_v33 = vadd.f32 %v554_v22, %v6288_v30 }
 0x138   :  { %v445_v0 = vpop.f32.mrf.mxu0  ;;  %v558_v35 = vpop.f32.mrf.mxu1 }
 0x139   :  { %v6318_v11 = vpack.c.bf16 %v442_v28, %v440_v8  ;;  %v6320_v43 = vpack.c.bf16 %v555_v33, %v553_v9  ;;  %v446_v31 = vadd.f32 %v445_v0, %v6276_v25  ;;  %v559_v32 = vadd.f32 %v558_v35, %v6280_v26 }
 0x13a   :  { %v447_v52 = vpop.f32.mrf.mxu0  ;;  %v560_v17 = vpop.f32.mrf.mxu1 }
 0x13b   :  { %7649 = vst [vmem:[#allocation21_spill] sm:$0xff] %v6318_v11  ;;  %7650 = vst [vmem:[#allocation22_spill] sm:$0xff] %v6320_v43  ;;  %v448_v61 = vadd.f32 %v447_v52, %v6284_v29  ;;  %v561_v10 = vadd.f32 %v560_v17, %v6288_v30 }
 0x13c   :  { %v449_v18 = vpop.f32.mrf.mxu0  ;;  %v562_v27 = vpop.f32.mrf.mxu1 }
 0x13d   :  { %v6326_v16 = vpack.c.bf16 %v448_v61, %v446_v31  ;;  %v6328_v22 = vpack.c.bf16 %v561_v10, %v559_v32  ;;  %v450_v8 = vadd.f32 %v449_v18, %v6276_v25  ;;  %v563_v9 = vadd.f32 %v562_v27, %v6280_v26 }
 0x13e   :  { %v451_v28 = vpop.f32.mrf.mxu0  ;;  %v564_v0 = vpop.f32.mrf.mxu1 }
 0x13f   :  { %7651 = vst [vmem:[#allocation23_spill] sm:$0xff] %v6326_v16  ;;  %7652 = vst [vmem:[#allocation24_spill] sm:$0xff] %v6328_v22  ;;  %v452_v33 = vadd.f32 %v451_v28, %v6284_v29  ;;  %v565_v35 = vadd.f32 %v564_v0, %v6288_v30 }
 0x140   :  { %v455_v43 = vpop.f32.mrf.mxu0  ;;  %v568_v52 = vpop.f32.mrf.mxu1 }
 0x141   :  { %v6334_v11 = vpack.c.bf16 %v452_v33, %v450_v8  ;;  %v6336_v17 = vpack.c.bf16 %v565_v35, %v563_v9  ;;  %v456_v31 = vadd.f32 %v455_v43, %v6276_v25  ;;  %v569_v32 = vadd.f32 %v568_v52, %v6280_v26 }
 0x142   :  { %v457_v61 = vpop.f32.mrf.mxu0  ;;  %v570_v18 = vpop.f32.mrf.mxu1 }
 0x143   :  { %7653 = vst [vmem:[#allocation25_spill] sm:$0xff] %v6334_v11  ;;  %7654 = vst [vmem:[#allocation26_spill] sm:$0xff] %v6336_v17  ;;  %v458_v10 = vadd.f32 %v457_v61, %v6284_v29  ;;  %v571_v27 = vadd.f32 %v570_v18, %v6288_v30 }
 0x144   :  { %v459_v22 = vpop.f32.mrf.mxu0  ;;  %v572_v28 = vpop.f32.mrf.mxu1 }
 0x145   :  { %v6342_v16 = vpack.c.bf16 %v458_v10, %v456_v31  ;;  %v6344_v0 = vpack.c.bf16 %v571_v27, %v569_v32  ;;  %v460_v8 = vadd.f32 %v459_v22, %v6276_v25  ;;  %v573_v9 = vadd.f32 %v572_v28, %v6280_v26 }
 0x146   :  { %v461_v33 = vpop.f32.mrf.mxu0  ;;  %v574_v43 = vpop.f32.mrf.mxu1 }
 0x147   :  { %7655 = vst [vmem:[#allocation27_spill] sm:$0xff] %v6342_v16  ;;  %7656 = vst [vmem:[#allocation28_spill] sm:$0xff] %v6344_v0  ;;  %v462_v35 = vadd.f32 %v461_v33, %v6284_v29  ;;  %v575_v52 = vadd.f32 %v574_v43, %v6288_v30 }
 0x148   :  { %v465_v17 = vpop.f32.mrf.mxu0  ;;  %v578_v61 = vpop.f32.mrf.mxu1 }
 0x149   :  { %v6350_v11 = vpack.c.bf16 %v462_v35, %v460_v8  ;;  %v6352_v18 = vpack.c.bf16 %v575_v52, %v573_v9  ;;  %v466_v31 = vadd.f32 %v465_v17, %v6276_v25  ;;  %v579_v32 = vadd.f32 %v578_v61, %v6280_v26 }
 0x14a   :  { %v467_v10 = vpop.f32.mrf.mxu0  ;;  %v580_v22 = vpop.f32.mrf.mxu1 }
 0x14b   :  { %7657 = vst [vmem:[#allocation29_spill] sm:$0xff] %v6350_v11  ;;  %7658 = vst [vmem:[#allocation30_spill] sm:$0xff] %v6352_v18  ;;  %v468_v27 = vadd.f32 %v467_v10, %v6284_v29  ;;  %v581_v28 = vadd.f32 %v580_v22, %v6288_v30 }
 0x14c   :  { %v469_v0 = vpop.f32.mrf.mxu0  ;;  %v582_v33 = vpop.f32.mrf.mxu1 }
 0x14d   :  { %v6358_v16 = vpack.c.bf16 %v468_v27, %v466_v31  ;;  %v6360_v43 = vpack.c.bf16 %v581_v28, %v579_v32  ;;  %v470_v8 = vadd.f32 %v469_v0, %v6276_v25  ;;  %v583_v9 = vadd.f32 %v582_v33, %v6280_v26 }
 0x14e   :  { %v471_v35 = vpop.f32.mrf.mxu0  ;;  %v584_v17 = vpop.f32.mrf.mxu1 }
 0x14f   :  { %7659 = vst [vmem:[#allocation31_spill] sm:$0xff] %v6358_v16  ;;  %7660 = vst [vmem:[#allocation32_spill] sm:$0xff] %v6360_v43  ;;  %v472_v52 = vadd.f32 %v471_v35, %v6284_v29  ;;  %v585_v61 = vadd.f32 %v584_v17, %v6288_v30 }
 0x150   :  { %v475_v18 = vpop.f32.mrf.mxu0  ;;  %v588_v10 = vpop.f32.mrf.mxu1 }
 0x151   :  { %v6366_v11 = vpack.c.bf16 %v472_v52, %v470_v8  ;;  %v6368_v22 = vpack.c.bf16 %v585_v61, %v583_v9  ;;  %v476_v31 = vadd.f32 %v475_v18, %v6276_v25  ;;  %v589_v32 = vadd.f32 %v588_v10, %v6280_v26 }
 0x152   :  { %v477_v27 = vpop.f32.mrf.mxu0  ;;  %v590_v0 = vpop.f32.mrf.mxu1  ;;  %v418_v61 = vadd.f32 %v6255_v14, %v6284_v29 }
 0x153   :  { %7661 = vst [vmem:[#allocation33_spill] sm:$0xff] %v6366_v11  ;;  %7662 = vst [vmem:[#allocation34_spill] sm:$0xff] %v6368_v22  ;;  %v478_v28 = vadd.f32 %v477_v27, %v6284_v29  ;;  %v591_v33 = vadd.f32 %v590_v0, %v6288_v30  ;;  %v416_v0 = vadd.f32 %v6251_v12, %v6276_v25 }
 0x154   :  { %v479_v43 = vpop.f32.mrf.mxu0  ;;  %v592_v35 = vpop.f32.mrf.mxu1 }
 0x155   :  { %v6374_v16 = vpack.c.bf16 %v478_v28, %v476_v31  ;;  %v6376_v17 = vpack.c.bf16 %v591_v33, %v589_v32  ;;  %v480_v8 = vadd.f32 %v479_v43, %v6276_v25  ;;  %v593_v9 = vadd.f32 %v592_v35, %v6280_v26 }
 0x156   :  { %v481_v52 = vpop.f32.mrf.mxu0  ;;  %v594_v18 = vpop.f32.mrf.mxu1  ;;  %v4963_v14 = vpack.c.bf16 %v418_v61, %v416_v0 }
 0x157   :  { %7663 = vst [vmem:[#allocation35_spill] sm:$0xff] %v6374_v16  ;;  %7664 = vst [vmem:[#allocation36_spill] sm:$0xff] %v6376_v17  ;;  %v482_v10 = vadd.f32 %v481_v52, %v6284_v29  ;;  %v595_v27 = vadd.f32 %v594_v18, %v6288_v30  ;;  %v422_v52 = vadd.f32 %v6270_v23, %v6284_v29 }
 0x158   :  { %v485_v31 = vpop.f32.mrf.mxu0  ;;  %v598_v28 = vpop.f32.mrf.mxu1 }
 0x159   :  { %v6386_v32 = vpack.c.bf16 %v482_v10, %v480_v8  ;;  %v6388_v33 = vpack.c.bf16 %v595_v27, %v593_v9  ;;  %v486_v43 = vadd.f32 %v485_v31, %v6276_v25  ;;  %v599_v35 = vadd.f32 %v598_v28, %v6280_v26 }
 0x15a   :  { %v487_v17 = vpop.f32.mrf.mxu0  ;;  %v600_v16 = vpop.f32.mrf.mxu1  ;;  %v420_v8 = vadd.f32 %v6264_v19, %v6276_v25 }
 0x15b   :  { %7665 = vst [vmem:[#allocation37_spill] sm:$0xff] %v6386_v32  ;;  %7666 = vst [vmem:[#allocation38_spill] sm:$0xff] %v6388_v33  ;;  %v488_v18 = vadd.f32 %v487_v17, %v6284_v29  ;;  %v601_v12 = vadd.f32 %v600_v16, %v6288_v30  ;;  %v867_v32 = vunpack.c.l.bf16 %v4963_v14 }
 0x15c   :  { %v489_v10 = vpop.f32.mrf.mxu0  ;;  %v602_v9 = vpop.f32.mrf.mxu1  ;;  %v4965_v23 = vpack.c.bf16 %v422_v52, %v420_v8  ;;  %v529_v52 = vadd.f32 %v6253_v13, %v6280_v26 }
 0x15d   :  { %v6398_v27 = vpack.c.bf16 %v488_v18, %v486_v43  ;;  %v6400_v31 = vpack.c.bf16 %v601_v12, %v599_v35  ;;  %v490_v28 = vadd.f32 %v489_v10, %v6276_v25  ;;  %v603_v61 = vadd.f32 %v602_v9, %v6280_v26 }
 0x15e   :  { %v491_v0 = vpop.f32.mrf.mxu0  ;;  %v604_v33 = vpop.f32.mrf.mxu1  ;;  %v868_v18 = vunpack.c.h.bf16 %v4963_v14  ;;  %v871_v9 = vunpack.c.l.bf16 %v4965_v23 }
 0x15f   :  { %v492_v17 = vadd.f32 %v491_v0, %v6284_v29  ;;  %v605_v16 = vadd.f32 %v604_v33, %v6288_v30  ;;  %v531_v29 = vadd.f32 %v6257_v15, %v6288_v30 }
 0x160   :  { %v1069_v22 = vpop.f32.mrf.mxu0  ;;  %v1112_v35 = vpop.f32.mrf.mxu1 }
 0x161   :  { %v6406_v19 = vpack.c.bf16 %v492_v17, %v490_v28  ;;  %v6408_v11 = vpack.c.bf16 %v605_v16, %v603_v61  ;;  %v1121_v43 = vadd.f32 %v1069_v22, %v867_v32  ;;  %v872_v61 = vunpack.c.h.bf16 %v4965_v23 }
 0x162   :  { %v1071_v12 = vpop.f32.mrf.mxu0  ;;  %v1114_v28 = vpop.f32.mrf.mxu1  ;;  %v533_v22 = vadd.f32 %v6266_v20, %v6280_v26  ;;  %v535_v32 = vadd.f32 %v6272_v24, %v6288_v30  ;;  %v4964_v13 = vpack.c.bf16 %v531_v29, %v529_v52 }
 0x163   :  { %7667 = vst [vmem:[#allocation39_spill] sm:$0xff] %v6408_v11  ;;  %v4747_v25 = vmul.f32 -1.442695, %v1121_v43  ;;  %v1122_v10 = vadd.f32 %v1071_v12, %v868_v18 }
 0x164   :  { %v1073_v33 = vpop.f32.mrf.mxu0  ;;  %v1116_v43 = vpop.f32.mrf.mxu1  ;;  %v4966_v18 = vpack.c.bf16 %v535_v32, %v533_v22  ;;  %v870_v12 = vunpack.c.h.bf16 %v4964_v13 }
 0x165   :  { %5306 = vpow2.f32 %v4747_v25  ;;  %v4749_v8 = vmul.f32 -1.442695, %v1122_v10  ;;  %v1125_v0 = vadd.f32 %v1073_v33, %v871_v9  ;;  %v869_v10 = vunpack.c.l.bf16 %v4964_v13 }
 0x166   :  { %v1075_v14 = vpop.f32.mrf.mxu0  ;;  %v1118_v25 = vpop.f32.mrf.mxu1  ;;  %v1124_v23 = vadd.f32 %v1114_v28, %v870_v12  ;;  %v874_v9 = vunpack.c.h.bf16 %v4966_v18 }
 0x167   :  { %5308 = vpow2.f32 %v4749_v8  ;;  %v4748_v17 = vmul.f32 -1.442695, %v1125_v0  ;;  %v1126_v16 = vadd.f32 %v1075_v14, %v872_v61  ;;  %v1123_v33 = vadd.f32 %v1112_v35, %v869_v10 }
 0x168   :  { %v1128_v20 = vadd.f32 %v1118_v25, %v874_v9  ;;  %v4751_v11 = vmul.f32 -1.442695, %v1124_v23  ;;  %v873_v8 = vunpack.c.l.bf16 %v4966_v18 }
 0x169   :  { %5310 = vpow2.f32 %v4748_v17  ;;  %v4750_v15 = vmul.f32 -1.442695, %v1126_v16 }
 0x16a   :  { %v4752_v0 = vmul.f32 -1.442695, %v1128_v20  ;;  %v1127_v61 = vadd.f32 %v1116_v43, %v873_v8 }
 0x16b   :  { %5312 = vpow2.f32 %v4750_v15 }
 0x16c   :  { %5314 = vtanh.f32 %v1123_v33 }
 0x172   :  { %v5307_v26 = vpop.eup %5306 }
 0x173   :  { %v1135_v24 = vadd.f32 1.0, %v5307_v26 }
 0x174   :  { %v5309_v30 = vpop.eup %5308 }
 0x175   :  { %5316 = vrcp.f32 %v1135_v24  ;;  %v1147_v52 = vadd.f32 1.0, %v5309_v30 }
 0x176   :  { %v5311_v29 = vpop.eup %5310  ;;  %5318 = vpow2.f32 %v4751_v11 }
 0x177   :  { %5320 = vrcp.f32 %v1147_v52  ;;  %v1136_v22 = vadd.f32 1.0, %v5311_v29 }
 0x178   :  { %v5313_v32 = vpop.eup %5312  ;;  %5322 = vpow2.f32 %v4752_v0 }
 0x179   :  { %5324 = vrcp.f32 %v1136_v22  ;;  %v1148_v28 = vadd.f32 1.0, %v5313_v32  ;;  %v5315_v35 = vpop.eup %5314 }
 0x17a   :  { %5326 = vtanh.f32 %v1127_v61  ;;  %v7668_v61 = vmov 0  }
 0x17b   :  { %5328 = vrcp.f32 %v1148_v28 }
 0x182   :  { %v5317_v14 = vpop.eup %5316 }
 0x183   :  { %v5319_v17 = vpop.eup %5318  ;;  %v1169_v16 = vmul.f32 %v5317_v14, %v5315_v35 }
 0x184   :  { %v5321_v13 = vpop.eup %5320  ;;  %v1161_v25 = vadd.f32 1.0, %v5319_v17 }
 0x185   :  { %v5323_v15 = vpop.eup %5322  ;;  %v1167_v18 = vmul.f32 0.0, %v5321_v13 }
 0x186   :  { %v5325_v12 = vpop.eup %5324  ;;  %v1162_v23 = vadd.f32 1.0, %v5323_v15  ;;  %5330 = vrcp.f32 %v1161_v25 }
 0x187   :  { %v5327_v10 = vpop.eup %5326  ;;  %v6418_v11 = vadd.f32 %v1169_v16, %v1167_v18 }
 0x188   :  { %v5329_v43 = vpop.eup %5328  ;;  %v1170_v33 = vmul.f32 %v5327_v10, %v5325_v12 }
 0x189   :  { %v1168_v9 = vmul.f32 0.0, %v5329_v43  ;;  %5332 = vtanh.f32 %v6418_v11 }
 0x18a   :  { %5334 = vrcp.f32 %v1162_v23 }
 0x18b   :  { %v6421_v20 = vadd.f32 %v1170_v33, %v1168_v9 }
 0x18d   :  { %5336 = vtanh.f32 %v6421_v20 }
 0x193   :  { %v5331_v26 = vpop.eup %5330 }
 0x196   :  { %v5333_v24 = vpop.eup %5332 }
 0x197   :  { %v5335_v30 = vpop.eup %5334  ;;  %v1175_v0 = vmul.f32 %v5333_v24, %v5331_v26 }
 0x19a   :  { %v5337_v8 = vpop.eup %5336 }
 0x19b   :  { %v1176_v52 = vmul.f32 %v5337_v8, %v5335_v30 }
 0x19d   :  { %v1177_v29 = vpack.c.bf16 %v1176_v52, %v1175_v0 }
 0x19f   :  { %5047 = vst [vmem:[#allocation2] sm:$0xff] %v1177_v29   ;;  %1233 = vmatmul.mubr.bf16.vlgmr.msra.gmra.mxu0 %v1177_v29  ;;  %1276 = vmatmul.mubr.bf16.vlgmr.msra.gmra.mxu1 %v1177_v29 }
 0x1a0   :  { %1367 = vmatpush1.bf16.msra.mxu0 %v6103_v36  ;;  %1410 = vmatpush1.bf16.msra.mxu1 %v6109_v38  ;;  %v6456_v36 = vld [vmem:[#allocation9 + $0xe4] ss:$16 sps:$4 sm:$0xff]   ;;  %v1192_v38 = vunpack.c.l.bf16 %v6294_v6 }
 0x1a1   :  { %1368 = vmatprep.subr.bf16.mxu0 %v6106_v37  ;;  %1411 = vmatprep.subr.bf16.mxu1 %v6111_v39  ;;  %v6459_v37 = vld [vmem:[#allocation9 + $0xec] ss:$16 sps:$4 sm:$0xff]  }
 0x1a2   :  { %1398 = vmatprep.mubr.bf16.mxu0 %v7668_v61  ;;  %1441 = vmatprep.mubr.bf16.mxu1 %v7668_v61 }
 0x1a4   :  { %1369 = vmatpush1.bf16.msra.mxu0 %v6115_v40  ;;  %1412 = vmatpush1.bf16.msra.mxu1 %v6122_v42  ;;  %v1193_v42 = vunpack.c.h.bf16 %v6294_v6 }
 0x1a5   :  { %1370 = vmatprep.subr.bf16.mxu0 %v6119_v41  ;;  %1413 = vmatprep.subr.bf16.mxu1 %v6131_v46 }
 0x1a8   :  { %1371 = vmatpush1.bf16.msra.mxu0 %v6126_v44  ;;  %1414 = vmatpush1.bf16.msra.mxu1 %v6134_v47  ;;  %v1196_v47 = vunpack.c.l.bf16 %v6302_v21 }
 0x1a9   :  { %1372 = vmatprep.subr.bf16.mxu0 %v6128_v45  ;;  %1415 = vmatprep.subr.bf16.mxu1 %v6136_v48 }
 0x1ac   :  { %1373 = vmatpush1.bf16.msra.mxu0 %v6141_v49  ;;  %1416 = vmatpush1.bf16.msra.mxu1 %v6148_v51 }
 0x1ad   :  { %1374 = vmatprep.subr.bf16.mxu0 %v6143_v50  ;;  %1417 = vmatprep.subr.bf16.mxu1 %v6154_v54 }
 0x1b0   :  { %1375 = vmatpush1.bf16.msra.mxu0 %v6151_v53  ;;  %1418 = vmatpush1.bf16.msra.mxu1 %v6160_v56  ;;  %v1197_v53 = vunpack.c.h.bf16 %v6302_v21  ;;  %v1198_v21 = vunpack.c.l.bf16 %v6304_v34 }
 0x1b1   :  { %1376 = vmatprep.subr.bf16.mxu0 %v6157_v55  ;;  %1419 = vmatprep.subr.bf16.mxu1 %v6162_v57 }
 0x1b4   :  { %1377 = vmatpush1.bf16.msra.mxu0 %v6164_v58  ;;  %1420 = vmatpush1.bf16.msra.mxu1 %v6170_v60 }
 0x1b5   :  { %1378 = vmatprep.subr.bf16.mxu0 %v6168_v59  ;;  %1421 = vmatprep.subr.bf16.mxu1 %v6179_v63  ;;  %v1195_v59 = vunpack.c.h.bf16 %v6296_v7 }
 0x1b8   :  { %1379 = vmatpush1.bf16.msra.mxu0 %v6176_v62  ;;  %1422 = vmatpush1.bf16.msra.mxu1 %v6183_v2  ;;  %v1194_v62 = vunpack.c.l.bf16 %v6296_v7 }
 0x1b9   :  { %1380 = vmatprep.subr.bf16.mxu0 %v6181_v1  ;;  %1423 = vmatprep.subr.bf16.mxu1 %v6186_v3  ;;  %v1199_v1 = vunpack.c.h.bf16 %v6304_v34 }
 0x1bc   :  { %1381 = vmatpush1.bf16.msra.mxu0 %v6190_v4  ;;  %1424 = vmatpush1.bf16.msra.mxu1 %v6194_v5 }
 0x1bd   :  { %1532 = vmatprep.subr.bf16.mxu0 %v6456_v36  ;;  %1575 = vmatprep.subr.bf16.mxu1 %v6459_v37 }
 0x25f   :  { %v1234_v39 = vpop.f32.mrf.mxu0  ;;  %v1277_v41 = vpop.f32.mrf.mxu1 }
 0x260   :  { %v1286_v40 = vadd.f32 %v1234_v39, %v1192_v38  ;;  %v1288_v2 = vadd.f32 %v1277_v41, %v1194_v62  ;;  %v6528_v62 = vld [vmem:[#allocation9 + $0x60] ss:$16 sps:$4 sm:$0xff]  }
 0x261   :  { %v1236_v44 = vpop.f32.mrf.mxu0  ;;  %v1279_v50 = vpop.f32.mrf.mxu1 }
 0x262   :  { %v4755_v45 = vmul.f32 -1.442695, %v1286_v40  ;;  %v1287_v46 = vadd.f32 %v1236_v44, %v1193_v42  ;;  %v1289_v60 = vadd.f32 %v1279_v50, %v1195_v59  ;;  %v6498_v50 = vld [vmem:[#allocation9 + $0xa4] ss:$16 sps:$4 sm:$0xff]  }
 0x263   :  { %v1238_v48 = vpop.f32.mrf.mxu0  ;;  %v1281_v57 = vpop.f32.mrf.mxu1  ;;  %v6522_v59 = vld [vmem:[#allocation9 + $0x64] ss:$16 sps:$4 sm:$0xff]  }
 0x264   :  { %5338 = vpow2.f32 %v4755_v45  ;;  %v4757_v49 = vmul.f32 -1.442695, %v1287_v46  ;;  %v1290_v51 = vadd.f32 %v1238_v48, %v1196_v47  ;;  %v4759_v3 = vmul.f32 -1.442695, %v1289_v60  ;;  %v6478_v45 = vld [vmem:[#allocation9 + $0xe0] ss:$16 sps:$4 sm:$0xff]  }
 0x265   :  { %v1240_v54 = vpop.f32.mrf.mxu0  ;;  %v1283_v63 = vpop.f32.mrf.mxu1  ;;  %v1292_v32 = vadd.f32 %v1281_v57, %v1198_v21  ;;  %v6484_v46 = vld [vmem:[#allocation9 + $0xc4] ss:$16 sps:$4 sm:$0xff]   ;;  %v6487_v47 = vld [vmem:[#allocation9 + $0xcc] ss:$16 sps:$4 sm:$0xff]   ;;  %v6492_v48 = vld [vmem:[#allocation9 + $0xc0] ss:$16 sps:$4 sm:$0xff]  }
 0x266   :  { %5340 = vpow2.f32 %v4757_v49  ;;  %v4756_v55 = vmul.f32 -1.442695, %v1290_v51  ;;  %v1291_v56 = vadd.f32 %v1240_v54, %v1197_v53  ;;  %v1293_v6 = vadd.f32 %v1283_v63, %v1199_v1  ;;  %v6495_v49 = vld [vmem:[#allocation9 + $0xc8] ss:$16 sps:$4 sm:$0xff]   ;;  %v6501_v51 = vld [vmem:[#allocation9 + $0xac] ss:$16 sps:$4 sm:$0xff]  }
 0x267   :  { %v6504_v53 = vld [vmem:[#allocation9 + $0xa0] ss:$16 sps:$4 sm:$0xff]   ;;  %v6507_v54 = vld [vmem:[#allocation9 + $0xa8] ss:$16 sps:$4 sm:$0xff]   ;;  %v6525_v60 = vld [vmem:[#allocation9 + $0x6c] ss:$16 sps:$4 sm:$0xff]  }
 0x268   :  { %5342 = vpow2.f32 %v4756_v55  ;;  %v4758_v58 = vmul.f32 -1.442695, %v1291_v56  ;;  %v4760_v14 = vmul.f32 -1.442695, %v1293_v6  ;;  %v6510_v55 = vld [vmem:[#allocation9 + $0x84] ss:$16 sps:$4 sm:$0xff]  }
 0x269   :  { %v6513_v56 = vld [vmem:[#allocation9 + $0x8c] ss:$16 sps:$4 sm:$0xff]   ;;  %v6516_v57 = vld [vmem:[#allocation9 + $0x80] ss:$16 sps:$4 sm:$0xff]   ;;  %v6531_v63 = vld [vmem:[#allocation9 + $0x68] ss:$16 sps:$4 sm:$0xff]  }
 0x26a   :  { %5344 = vpow2.f32 %v4758_v58  ;;  %v6519_v58 = vld [vmem:[#allocation9 + $0x88] ss:$16 sps:$4 sm:$0xff]   ;;  %v6534_v1 = vld [vmem:[#allocation9 + $0x44] ss:$16 sps:$4 sm:$0xff]  }
 0x26b   :  { %5346 = vtanh.f32 %v1288_v2  ;;  %v6537_v2 = vld [vmem:[#allocation9 + $0x4c] ss:$16 sps:$4 sm:$0xff]   ;;  %v6543_v21 = vld [vmem:[#allocation9 + $0x48] ss:$16 sps:$4 sm:$0xff]   ;;  %v6546_v6 = vld [vmem:[#allocation9 + $0x24] ss:$16 sps:$4 sm:$0xff]  }
 0x26c   :  { %5348 = vpow2.f32 %v4759_v3  ;;  %v6540_v3 = vld [vmem:[#allocation9 + $0x40] ss:$16 sps:$4 sm:$0xff]  }
 0x271   :  { %v5339_v22 = vpop.eup %5338 }
 0x272   :  { %v1300_v28 = vadd.f32 1.0, %v5339_v22  ;;  %v6549_v22 = vld [vmem:[#allocation9 + $0x2c] ss:$16 sps:$4 sm:$0xff]  }
 0x273   :  { %v5341_v35 = vpop.eup %5340 }
 0x274   :  { %5350 = vrcp.f32 %v1300_v28  ;;  %v1312_v17 = vadd.f32 1.0, %v5341_v35  ;;  %v6555_v28 = vld [vmem:[#allocation9 + $0x28] ss:$16 sps:$4 sm:$0xff]   ;;  %v6558_v35 = vld [vmem:[#allocation9 + $0x4] ss:$16 sps:$4 sm:$0xff]  }
 0x275   :  { %v5343_v16 = vpop.eup %5342  ;;  %5352 = vtanh.f32 %v1292_v32  ;;  %v6552_v32 = vld [vmem:[#allocation9 + $0x20] ss:$16 sps:$4 sm:$0xff]  }
 0x276   :  { %5354 = vrcp.f32 %v1312_v17  ;;  %v1301_v7 = vadd.f32 1.0, %v5343_v16  ;;  %v7669_v17 = vld [vmem:[#allocation19_spill] sm:$0xff] }
 0x277   :  { %v5345_v13 = vpop.eup %5344  ;;  %5356 = vpow2.f32 %v4760_v14  ;;  %v6561_v14 = vld [vmem:[#allocation9 + $0xc] ss:$16 sps:$4 sm:$0xff]   ;;  %v1358_v16 = vunpack.c.l.bf16 %v7669_v17 }
 0x278   :  { %5358 = vrcp.f32 %v1301_v7  ;;  %v1313_v15 = vadd.f32 1.0, %v5345_v13  ;;  %v5347_v34 = vpop.eup %5346 }
 0x279   :  { %v5349_v18 = vpop.eup %5348 }
 0x27a   :  { %5360 = vrcp.f32 %v1313_v15  ;;  %v1326_v26 = vadd.f32 1.0, %v5349_v18 }
 0x27c   :  { %5362 = vrcp.f32 %v1326_v26 }
 0x281   :  { %v5351_v12 = vpop.eup %5350 }
 0x282   :  { %v5353_v25 = vpop.eup %5352  ;;  %v1334_v10 = vmul.f32 %v5351_v12, %v5347_v34  ;;  %v1359_v34 = vunpack.c.h.bf16 %v7669_v17 }
 0x283   :  { %v5355_v43 = vpop.eup %5354 }
 0x284   :  { %v5357_v23 = vpop.eup %5356  ;;  %v1332_v9 = vmul.f32 %v5355_v43, %v6418_v11 }
 0x285   :  { %v5359_v33 = vpop.eup %5358  ;;  %v1327_v0 = vadd.f32 1.0, %v5357_v23 }
 0x286   :  { %v6471_v24 = vadd.f32 %v1334_v10, %v1332_v9  ;;  %v1335_v30 = vmul.f32 %v5359_v33, %v5353_v25  ;;  %v7670_v10 = vld [vmem:[#allocation21_spill] sm:$0xff] }
 0x287   :  { %v5361_v8 = vpop.eup %5360  ;;  %v1362_v43 = vunpack.c.l.bf16 %v7670_v10  ;;  %v1363_v33 = vunpack.c.h.bf16 %v7670_v10 }
 0x288   :  { %v1333_v52 = vmul.f32 %v5361_v8, %v6421_v20  ;;  %5364 = vtanh.f32 %v6471_v24  ;;  %v6481_v20 = vld [vmem:[#allocation9 + $0xe8] ss:$16 sps:$4 sm:$0xff]  }
 0x289   :  { %5366 = vrcp.f32 %v1327_v0  ;;  %v5363_v38 = vpop.eup %5362 }
 0x28a   :  { %v6474_v29 = vadd.f32 %v1335_v30, %v1333_v52 }
 0x28c   :  { %5368 = vtanh.f32 %v6474_v29 }
 0x295   :  { %v5365_v39 = vpop.eup %5364 }
 0x296   :  { %v5367_v11 = vpop.eup %5366  ;;  %v1340_v41 = vmul.f32 %v5365_v39, %v5363_v38  ;;  %v7671_v38 = vld [vmem:[#allocation20_spill] sm:$0xff] }
 0x297   :  { %v1361_v39 = vunpack.c.h.bf16 %v7671_v38 }
 0x299   :  { %v5369_v40 = vpop.eup %5368 }
 0x29a   :  { %v1341_v42 = vmul.f32 %v5369_v40, %v5367_v11  ;;  %v1360_v40 = vunpack.c.l.bf16 %v7671_v38 }
 0x29c   :  { %v1342_v44 = vpack.c.bf16 %v1341_v42, %v1340_v41  ;;  %v7672_v42 = vld [vmem:[#allocation22_spill] sm:$0xff] }
 0x29e   :  { %5052 = vst [vmem:[#allocation2 + $0x8] sm:$0xff] %v1342_v44   ;;  %1399 = vmatmul.mubr.bf16.vlgmr.msra.gmra.mxu0 %v1342_v44  ;;  %1442 = vmatmul.mubr.bf16.vlgmr.msra.gmra.mxu1 %v1342_v44  ;;  %v1365_v44 = vunpack.c.h.bf16 %v7672_v42 }
 0x29f   :  { %1533 = vmatpush1.bf16.msra.mxu0 %v6478_v45  ;;  %1576 = vmatpush1.bf16.msra.mxu1 %v6481_v20 }
 0x2a0   :  { %1534 = vmatprep.subr.bf16.mxu0 %v6484_v46  ;;  %1577 = vmatprep.subr.bf16.mxu1 %v6487_v47 }
 0x2a1   :  { %1564 = vmatprep.mubr.bf16.mxu0 %v7668_v61  ;;  %1607 = vmatprep.mubr.bf16.mxu1 %v7668_v61 }
 0x2a3   :  { %1535 = vmatpush1.bf16.msra.mxu0 %v6492_v48  ;;  %1578 = vmatpush1.bf16.msra.mxu1 %v6495_v49 }
 0x2a4   :  { %1536 = vmatprep.subr.bf16.mxu0 %v6498_v50  ;;  %1579 = vmatprep.subr.bf16.mxu1 %v6501_v51 }
 0x2a7   :  { %1537 = vmatpush1.bf16.msra.mxu0 %v6504_v53  ;;  %1580 = vmatpush1.bf16.msra.mxu1 %v6507_v54 }
 0x2a8   :  { %1538 = vmatprep.subr.bf16.mxu0 %v6510_v55  ;;  %1581 = vmatprep.subr.bf16.mxu1 %v6513_v56 }
 0x2ab   :  { %1539 = vmatpush1.bf16.msra.mxu0 %v6516_v57  ;;  %1582 = vmatpush1.bf16.msra.mxu1 %v6519_v58 }
 0x2ac   :  { %1540 = vmatprep.subr.bf16.mxu0 %v6522_v59  ;;  %1583 = vmatprep.subr.bf16.mxu1 %v6525_v60 }
 0x2af   :  { %1541 = vmatpush1.bf16.msra.mxu0 %v6528_v62  ;;  %1584 = vmatpush1.bf16.msra.mxu1 %v6531_v63 }
 0x2b0   :  { %1542 = vmatprep.subr.bf16.mxu0 %v6534_v1  ;;  %1585 = vmatprep.subr.bf16.mxu1 %v6537_v2 }
 0x2b3   :  { %1543 = vmatpush1.bf16.msra.mxu0 %v6540_v3  ;;  %1586 = vmatpush1.bf16.msra.mxu1 %v6543_v21 }
 0x2b4   :  { %1544 = vmatprep.subr.bf16.mxu0 %v6546_v6  ;;  %1587 = vmatprep.subr.bf16.mxu1 %v6549_v22 }
 0x2b7   :  { %1545 = vmatpush1.bf16.msra.mxu0 %v6552_v32  ;;  %1588 = vmatpush1.bf16.msra.mxu1 %v6555_v28 }
 0x2b8   :  { %1546 = vmatprep.subr.bf16.mxu0 %v6558_v35  ;;  %1589 = vmatprep.subr.bf16.mxu1 %v6561_v14 }
 0x2bb   :  { %1547 = vmatpush1.bf16.msra.mxu0 %v6190_v4  ;;  %1590 = vmatpush1.bf16.msra.mxu1 %v6194_v5 }
 0x2bc   :  { %1698 = vmatprep.subr.bf16.mxu0 %v6456_v36  ;;  %1741 = vmatprep.subr.bf16.mxu1 %v6459_v37 }
 0x35e   :  { %v1400_v7 = vpop.f32.mrf.mxu0  ;;  %v1443_v15 = vpop.f32.mrf.mxu1 }
 0x35f   :  { %v1452_v13 = vadd.f32 %v1400_v7, %v1358_v16  ;;  %v1454_v17 = vadd.f32 %v1443_v15, %v1360_v40  ;;  %v1364_v7 = vunpack.c.l.bf16 %v7672_v42 }
 0x360   :  { %v1402_v18 = vpop.f32.mrf.mxu0  ;;  %v1445_v5 = vpop.f32.mrf.mxu1 }
 0x361   :  { %v4763_v12 = vmul.f32 -1.442695, %v1452_v13  ;;  %v1453_v25 = vadd.f32 %v1402_v18, %v1359_v34  ;;  %v1455_v11 = vadd.f32 %v1445_v5, %v1361_v39 }
 0x362   :  { %v1404_v23 = vpop.f32.mrf.mxu0  ;;  %v1447_v0 = vpop.f32.mrf.mxu1 }
 0x363   :  { %5370 = vpow2.f32 %v4763_v12  ;;  %v4765_v4 = vmul.f32 -1.442695, %v1453_v25  ;;  %v1456_v9 = vadd.f32 %v1404_v23, %v1362_v43  ;;  %v4767_v16 = vmul.f32 -1.442695, %v1455_v11 }
 0x364   :  { %v1406_v26 = vpop.f32.mrf.mxu0  ;;  %v1449_v41 = vpop.f32.mrf.mxu1  ;;  %v1458_v18 = vadd.f32 %v1447_v0, %v1364_v7 }
 0x365   :  { %5372 = vpow2.f32 %v4765_v4  ;;  %v4764_v30 = vmul.f32 -1.442695, %v1456_v9  ;;  %v1457_v8 = vadd.f32 %v1406_v26, %v1363_v33  ;;  %v1459_v13 = vadd.f32 %v1449_v41, %v1365_v44 }
 0x367   :  { %5374 = vpow2.f32 %v4764_v30  ;;  %v4766_v52 = vmul.f32 -1.442695, %v1457_v8  ;;  %v4768_v10 = vmul.f32 -1.442695, %v1459_v13 }
 0x369   :  { %5376 = vpow2.f32 %v4766_v52 }
 0x36a   :  { %5378 = vtanh.f32 %v1454_v17 }
 0x36b   :  { %5380 = vpow2.f32 %v4767_v16 }
 0x370   :  { %v5371_v34 = vpop.eup %5370 }
 0x371   :  { %v1466_v12 = vadd.f32 1.0, %v5371_v34 }
 0x372   :  { %v5373_v25 = vpop.eup %5372 }
 0x373   :  { %5382 = vrcp.f32 %v1466_v12  ;;  %v1478_v43 = vadd.f32 1.0, %v5373_v25 }
 0x374   :  { %v5375_v23 = vpop.eup %5374  ;;  %5384 = vtanh.f32 %v1458_v18 }
 0x375   :  { %5386 = vrcp.f32 %v1478_v43  ;;  %v1467_v4 = vadd.f32 1.0, %v5375_v23  ;;  %v7673_v43 = vld [vmem:[#allocation23_spill] sm:$0xff] }
 0x376   :  { %v5377_v5 = vpop.eup %5376  ;;  %5388 = vpow2.f32 %v4768_v10  ;;  %v6617_v10 = vld [vmem:[#allocation9 + $0x8] ss:$16 sps:$4 sm:$0xff]   ;;  %v1524_v23 = vunpack.c.l.bf16 %v7673_v43 }
 0x377   :  { %5390 = vrcp.f32 %v1467_v4  ;;  %v1479_v15 = vadd.f32 1.0, %v5377_v5  ;;  %v5379_v9 = vpop.eup %5378 }
 0x378   :  { %v5381_v33 = vpop.eup %5380 }
 0x379   :  { %5392 = vrcp.f32 %v1479_v15  ;;  %v1492_v11 = vadd.f32 1.0, %v5381_v33 }
 0x37b   :  { %5394 = vrcp.f32 %v1492_v11 }
 0x380   :  { %v5383_v26 = vpop.eup %5382 }
 0x381   :  { %v5385_v30 = vpop.eup %5384  ;;  %v1500_v8 = vmul.f32 %v5383_v26, %v5379_v9  ;;  %v1525_v9 = vunpack.c.h.bf16 %v7673_v43  ;;  %v7676_v43 = vld [vmem:[#allocation26_spill] sm:$0xff] }
 0x382   :  { %v5387_v0 = vpop.eup %5386 }
 0x383   :  { %v5389_v52 = vpop.eup %5388  ;;  %v1498_v38 = vmul.f32 %v5387_v0, %v6471_v24 }
 0x384   :  { %v5391_v39 = vpop.eup %5390  ;;  %v1493_v44 = vadd.f32 1.0, %v5389_v52 }
 0x385   :  { %v6577_v40 = vadd.f32 %v1500_v8, %v1498_v38  ;;  %v1501_v41 = vmul.f32 %v5391_v39, %v5385_v30  ;;  %v7674_v8 = vld [vmem:[#allocation25_spill] sm:$0xff] }
 0x386   :  { %v5393_v42 = vpop.eup %5392  ;;  %v1528_v0 = vunpack.c.l.bf16 %v7674_v8 }
 0x387   :  { %v1499_v17 = vmul.f32 %v5393_v42, %v6474_v29  ;;  %5396 = vtanh.f32 %v6577_v40  ;;  %v6614_v29 = vld [vmem:[#allocation9] ss:$16 sps:$4 sm:$0xff]  }
 0x388   :  { %5398 = vrcp.f32 %v1493_v44  ;;  %v5395_v7 = vpop.eup %5394 }
 0x389   :  { %v6580_v16 = vadd.f32 %v1501_v41, %v1499_v17  ;;  %v1529_v41 = vunpack.c.h.bf16 %v7674_v8 }
 0x38b   :  { %5400 = vtanh.f32 %v6580_v16 }
 0x394   :  { %v5397_v13 = vpop.eup %5396 }
 0x395   :  { %v5399_v24 = vpop.eup %5398  ;;  %v1506_v18 = vmul.f32 %v5397_v13, %v5395_v7 }
 0x398   :  { %v5401_v34 = vpop.eup %5400 }
 0x399   :  { %v1507_v12 = vmul.f32 %v5401_v34, %v5399_v24  ;;  %v7675_v24 = vld [vmem:[#allocation24_spill] sm:$0xff] }
 0x39a   :  { %v1527_v34 = vunpack.c.h.bf16 %v7675_v24 }
 0x39b   :  { %v1508_v25 = vpack.c.bf16 %v1507_v12, %v1506_v18  ;;  %v1526_v12 = vunpack.c.l.bf16 %v7675_v24 }
 0x39d   :  { %5057 = vst [vmem:[#allocation2 + $0x10] sm:$0xff] %v1508_v25   ;;  %1565 = vmatmul.mubr.bf16.vlgmr.msra.gmra.mxu0 %v1508_v25  ;;  %1608 = vmatmul.mubr.bf16.vlgmr.msra.gmra.mxu1 %v1508_v25 }
 0x39e   :  { %1699 = vmatpush1.bf16.msra.mxu0 %v6478_v45  ;;  %1742 = vmatpush1.bf16.msra.mxu1 %v6481_v20 }
 0x39f   :  { %1700 = vmatprep.subr.bf16.mxu0 %v6484_v46  ;;  %1743 = vmatprep.subr.bf16.mxu1 %v6487_v47 }
 0x3a0   :  { %1730 = vmatprep.mubr.bf16.mxu0 %v7668_v61  ;;  %1773 = vmatprep.mubr.bf16.mxu1 %v7668_v61 }
 0x3a2   :  { %1701 = vmatpush1.bf16.msra.mxu0 %v6492_v48  ;;  %1744 = vmatpush1.bf16.msra.mxu1 %v6495_v49 }
 0x3a3   :  { %1702 = vmatprep.subr.bf16.mxu0 %v6498_v50  ;;  %1745 = vmatprep.subr.bf16.mxu1 %v6501_v51 }
 0x3a6   :  { %1703 = vmatpush1.bf16.msra.mxu0 %v6504_v53  ;;  %1746 = vmatpush1.bf16.msra.mxu1 %v6507_v54 }
 0x3a7   :  { %1704 = vmatprep.subr.bf16.mxu0 %v6510_v55  ;;  %1747 = vmatprep.subr.bf16.mxu1 %v6513_v56 }
 0x3aa   :  { %1705 = vmatpush1.bf16.msra.mxu0 %v6516_v57  ;;  %1748 = vmatpush1.bf16.msra.mxu1 %v6519_v58 }
 0x3ab   :  { %1706 = vmatprep.subr.bf16.mxu0 %v6522_v59  ;;  %1749 = vmatprep.subr.bf16.mxu1 %v6525_v60 }
 0x3ae   :  { %1707 = vmatpush1.bf16.msra.mxu0 %v6528_v62  ;;  %1750 = vmatpush1.bf16.msra.mxu1 %v6531_v63 }
 0x3af   :  { %1708 = vmatprep.subr.bf16.mxu0 %v6534_v1  ;;  %1751 = vmatprep.subr.bf16.mxu1 %v6537_v2 }
 0x3b2   :  { %1709 = vmatpush1.bf16.msra.mxu0 %v6540_v3  ;;  %1752 = vmatpush1.bf16.msra.mxu1 %v6543_v21 }
 0x3b3   :  { %1710 = vmatprep.subr.bf16.mxu0 %v6546_v6  ;;  %1753 = vmatprep.subr.bf16.mxu1 %v6549_v22 }
 0x3b6   :  { %1711 = vmatpush1.bf16.msra.mxu0 %v6552_v32  ;;  %1754 = vmatpush1.bf16.msra.mxu1 %v6555_v28 }
 0x3b7   :  { %1712 = vmatprep.subr.bf16.mxu0 %v6558_v35  ;;  %1755 = vmatprep.subr.bf16.mxu1 %v6561_v14 }
 0x3ba   :  { %1713 = vmatpush1.bf16.msra.mxu0 %v6614_v29  ;;  %1756 = vmatpush1.bf16.msra.mxu1 %v6617_v10 }
 0x3bb   :  { %1864 = vmatprep.subr.bf16.mxu0 %v6456_v36  ;;  %1907 = vmatprep.subr.bf16.mxu1 %v6459_v37 }
 0x45d   :  { %v1566_v4 = vpop.f32.mrf.mxu0  ;;  %v1609_v15 = vpop.f32.mrf.mxu1 }
 0x45e   :  { %v1618_v5 = vadd.f32 %v1566_v4, %v1524_v23  ;;  %v1531_v23 = vunpack.c.h.bf16 %v7676_v43  ;;  %v1620_v4 = vadd.f32 %v1609_v15, %v1526_v12 }
 0x45f   :  { %v1568_v33 = vpop.f32.mrf.mxu0  ;;  %v1611_v39 = vpop.f32.mrf.mxu1 }
 0x460   :  { %v4771_v26 = vmul.f32 -1.442695, %v1618_v5  ;;  %v1619_v30 = vadd.f32 %v1568_v33, %v1525_v9  ;;  %v1621_v18 = vadd.f32 %v1611_v39, %v1527_v34  ;;  %v1530_v9 = vunpack.c.l.bf16 %v7676_v43 }
 0x461   :  { %v1570_v52 = vpop.f32.mrf.mxu0  ;;  %v1613_v7 = vpop.f32.mrf.mxu1 }
 0x462   :  { %5402 = vpow2.f32 %v4771_v26  ;;  %v4773_v38 = vmul.f32 -1.442695, %v1619_v30  ;;  %v1622_v11 = vadd.f32 %v1570_v52, %v1528_v0  ;;  %v4775_v5 = vmul.f32 -1.442695, %v1621_v18 }
 0x463   :  { %v1572_v42 = vpop.f32.mrf.mxu0  ;;  %v1615_v25 = vpop.f32.mrf.mxu1  ;;  %v1624_v30 = vadd.f32 %v1613_v7, %v1530_v9 }
 0x464   :  { %5404 = vpow2.f32 %v4773_v38  ;;  %v4772_v44 = vmul.f32 -1.442695, %v1622_v11  ;;  %v1623_v17 = vadd.f32 %v1572_v42, %v1529_v41  ;;  %v1625_v33 = vadd.f32 %v1615_v25, %v1531_v23 }
 0x466   :  { %5406 = vpow2.f32 %v4772_v44  ;;  %v4774_v13 = vmul.f32 -1.442695, %v1623_v17  ;;  %v4776_v52 = vmul.f32 -1.442695, %v1625_v33 }
 0x468   :  { %5408 = vpow2.f32 %v4774_v13 }
 0x469   :  { %5410 = vtanh.f32 %v1620_v4 }
 0x46a   :  { %5412 = vpow2.f32 %v4775_v5 }
 0x46f   :  { %v5403_v26 = vpop.eup %5402 }
 0x470   :  { %v1632_v8 = vadd.f32 1.0, %v5403_v26 }
 0x471   :  { %v5405_v0 = vpop.eup %5404 }
 0x472   :  { %5414 = vrcp.f32 %v1632_v8  ;;  %v1644_v38 = vadd.f32 1.0, %v5405_v0 }
 0x473   :  { %v5407_v39 = vpop.eup %5406  ;;  %5416 = vtanh.f32 %v1624_v30 }
 0x474   :  { %5418 = vrcp.f32 %v1644_v38  ;;  %v1633_v11 = vadd.f32 1.0, %v5407_v39 }
 0x475   :  { %v5409_v41 = vpop.eup %5408  ;;  %5420 = vpow2.f32 %v4776_v52 }
 0x476   :  { %5422 = vrcp.f32 %v1633_v11  ;;  %v1645_v15 = vadd.f32 1.0, %v5409_v41  ;;  %v5411_v42 = vpop.eup %5410 }
 0x477   :  { %v5413_v44 = vpop.eup %5412 }
 0x478   :  { %5424 = vrcp.f32 %v1645_v15  ;;  %v1658_v25 = vadd.f32 1.0, %v5413_v44 }
 0x47a   :  { %5426 = vrcp.f32 %v1658_v25 }
 0x47f   :  { %v5415_v17 = vpop.eup %5414 }
 0x480   :  { %v5417_v7 = vpop.eup %5416  ;;  %v1666_v13 = vmul.f32 %v5415_v17, %v5411_v42 }
 0x481   :  { %v5419_v24 = vpop.eup %5418 }
 0x482   :  { %v5421_v34 = vpop.eup %5420  ;;  %v1664_v18 = vmul.f32 %v5419_v24, %v6577_v40 }
 0x483   :  { %v5423_v12 = vpop.eup %5422  ;;  %v1659_v5 = vadd.f32 1.0, %v5421_v34 }
 0x484   :  { %v6631_v43 = vadd.f32 %v1666_v13, %v1664_v18  ;;  %v1667_v23 = vmul.f32 %v5423_v12, %v5417_v7  ;;  %v7678_v13 = vld [vmem:[#allocation29_spill] sm:$0xff] }
 0x485   :  { %v5425_v4 = vpop.eup %5424  ;;  %v1694_v24 = vunpack.c.l.bf16 %v7678_v13 }
 0x486   :  { %v1665_v9 = vmul.f32 %v5425_v4, %v6580_v16  ;;  %5428 = vtanh.f32 %v6631_v43  ;;  %v7677_v16 = vld [vmem:[#allocation27_spill] sm:$0xff] }
 0x487   :  { %5430 = vrcp.f32 %v1659_v5  ;;  %v5427_v26 = vpop.eup %5426  ;;  %v1690_v39 = vunpack.c.l.bf16 %v7677_v16  ;;  %v1691_v42 = vunpack.c.h.bf16 %v7677_v16  ;;  %v7680_v16 = vld [vmem:[#allocation30_spill] sm:$0xff] }
 0x488   :  { %v6634_v33 = vadd.f32 %v1667_v23, %v1665_v9  ;;  %v1695_v23 = vunpack.c.h.bf16 %v7678_v13 }
 0x48a   :  { %5432 = vtanh.f32 %v6634_v33 }
 0x493   :  { %v5429_v30 = vpop.eup %5428 }
 0x494   :  { %v5431_v40 = vpop.eup %5430  ;;  %v1672_v0 = vmul.f32 %v5429_v30, %v5427_v26 }
 0x497   :  { %v5433_v8 = vpop.eup %5432 }
 0x498   :  { %v1673_v52 = vmul.f32 %v5433_v8, %v5431_v40  ;;  %v7679_v40 = vld [vmem:[#allocation28_spill] sm:$0xff] }
 0x499   :  { %v1693_v8 = vunpack.c.h.bf16 %v7679_v40 }
 0x49a   :  { %v1674_v38 = vpack.c.bf16 %v1673_v52, %v1672_v0  ;;  %v1692_v52 = vunpack.c.l.bf16 %v7679_v40 }
 0x49c   :  { %5062 = vst [vmem:[#allocation2 + $0x18] sm:$0xff] %v1674_v38   ;;  %1731 = vmatmul.mubr.bf16.vlgmr.msra.gmra.mxu0 %v1674_v38  ;;  %1774 = vmatmul.mubr.bf16.vlgmr.msra.gmra.mxu1 %v1674_v38 }
 0x49d   :  { %1865 = vmatpush1.bf16.msra.mxu0 %v6478_v45  ;;  %1908 = vmatpush1.bf16.msra.mxu1 %v6481_v20 }
 0x49e   :  { %1866 = vmatprep.subr.bf16.mxu0 %v6484_v46  ;;  %1909 = vmatprep.subr.bf16.mxu1 %v6487_v47 }
 0x49f   :  { %1896 = vmatprep.mubr.bf16.mxu0 %v7668_v61  ;;  %1939 = vmatprep.mubr.bf16.mxu1 %v7668_v61 }
 0x4a1   :  { %1867 = vmatpush1.bf16.msra.mxu0 %v6492_v48  ;;  %1910 = vmatpush1.bf16.msra.mxu1 %v6495_v49 }
 0x4a2   :  { %1868 = vmatprep.subr.bf16.mxu0 %v6498_v50  ;;  %1911 = vmatprep.subr.bf16.mxu1 %v6501_v51 }
 0x4a5   :  { %1869 = vmatpush1.bf16.msra.mxu0 %v6504_v53  ;;  %1912 = vmatpush1.bf16.msra.mxu1 %v6507_v54 }
 0x4a6   :  { %1870 = vmatprep.subr.bf16.mxu0 %v6510_v55  ;;  %1913 = vmatprep.subr.bf16.mxu1 %v6513_v56 }
 0x4a9   :  { %1871 = vmatpush1.bf16.msra.mxu0 %v6516_v57  ;;  %1914 = vmatpush1.bf16.msra.mxu1 %v6519_v58 }
 0x4aa   :  { %1872 = vmatprep.subr.bf16.mxu0 %v6522_v59  ;;  %1915 = vmatprep.subr.bf16.mxu1 %v6525_v60 }
 0x4ad   :  { %1873 = vmatpush1.bf16.msra.mxu0 %v6528_v62  ;;  %1916 = vmatpush1.bf16.msra.mxu1 %v6531_v63 }
 0x4ae   :  { %1874 = vmatprep.subr.bf16.mxu0 %v6534_v1  ;;  %1917 = vmatprep.subr.bf16.mxu1 %v6537_v2 }
 0x4b1   :  { %1875 = vmatpush1.bf16.msra.mxu0 %v6540_v3  ;;  %1918 = vmatpush1.bf16.msra.mxu1 %v6543_v21 }
 0x4b2   :  { %1876 = vmatprep.subr.bf16.mxu0 %v6546_v6  ;;  %1919 = vmatprep.subr.bf16.mxu1 %v6549_v22 }
 0x4b5   :  { %1877 = vmatpush1.bf16.msra.mxu0 %v6552_v32  ;;  %1920 = vmatpush1.bf16.msra.mxu1 %v6555_v28 }
 0x4b6   :  { %1878 = vmatprep.subr.bf16.mxu0 %v6558_v35  ;;  %1921 = vmatprep.subr.bf16.mxu1 %v6561_v14 }
 0x4b9   :  { %1879 = vmatpush1.bf16.msra.mxu0 %v6614_v29  ;;  %1922 = vmatpush1.bf16.msra.mxu1 %v6617_v10 }
 0x4ba   :  { %2030 = vmatprep.subr.bf16.mxu0 %v6456_v36  ;;  %2073 = vmatprep.subr.bf16.mxu1 %v6459_v37 }
 0x55c   :  { %v1732_v11 = vpop.f32.mrf.mxu0  ;;  %v1775_v15 = vpop.f32.mrf.mxu1 }
 0x55d   :  { %v1784_v41 = vadd.f32 %v1732_v11, %v1690_v39  ;;  %v1697_v39 = vunpack.c.h.bf16 %v7680_v16  ;;  %v1786_v11 = vadd.f32 %v1775_v15, %v1692_v52 }
 0x55e   :  { %v1734_v44 = vpop.f32.mrf.mxu0  ;;  %v1777_v12 = vpop.f32.mrf.mxu1 }
 0x55f   :  { %v4779_v17 = vmul.f32 -1.442695, %v1784_v41  ;;  %v1785_v7 = vadd.f32 %v1734_v44, %v1691_v42  ;;  %v1787_v0 = vadd.f32 %v1777_v12, %v1693_v8  ;;  %v1696_v42 = vunpack.c.l.bf16 %v7680_v16 }
 0x560   :  { %v1736_v34 = vpop.f32.mrf.mxu0  ;;  %v1779_v26 = vpop.f32.mrf.mxu1 }
 0x561   :  { %5434 = vpow2.f32 %v4779_v17  ;;  %v4781_v18 = vmul.f32 -1.442695, %v1785_v7  ;;  %v1788_v25 = vadd.f32 %v1736_v34, %v1694_v24  ;;  %v4783_v41 = vmul.f32 -1.442695, %v1787_v0 }
 0x562   :  { %v1738_v4 = vpop.f32.mrf.mxu0  ;;  %v1781_v38 = vpop.f32.mrf.mxu1  ;;  %v1790_v7 = vadd.f32 %v1779_v26, %v1696_v42 }
 0x563   :  { %5436 = vpow2.f32 %v4781_v18  ;;  %v4780_v5 = vmul.f32 -1.442695, %v1788_v25  ;;  %v1789_v9 = vadd.f32 %v1738_v4, %v1695_v23  ;;  %v1791_v44 = vadd.f32 %v1781_v38, %v1697_v39 }
 0x565   :  { %5438 = vpow2.f32 %v4780_v5  ;;  %v4782_v30 = vmul.f32 -1.442695, %v1789_v9  ;;  %v4784_v34 = vmul.f32 -1.442695, %v1791_v44 }
 0x567   :  { %5440 = vpow2.f32 %v4782_v30 }
 0x568   :  { %5442 = vtanh.f32 %v1786_v11 }
 0x569   :  { %5444 = vpow2.f32 %v4783_v41 }
 0x56e   :  { %v5435_v17 = vpop.eup %5434 }
 0x56f   :  { %v1798_v13 = vadd.f32 1.0, %v5435_v17 }
 0x570   :  { %v5437_v24 = vpop.eup %5436 }
 0x571   :  { %5446 = vrcp.f32 %v1798_v13  ;;  %v1810_v18 = vadd.f32 1.0, %v5437_v24 }
 0x572   :  { %v5439_v12 = vpop.eup %5438  ;;  %5448 = vtanh.f32 %v1790_v7 }
 0x573   :  { %5450 = vrcp.f32 %v1810_v18  ;;  %v1799_v25 = vadd.f32 1.0, %v5439_v12 }
 0x574   :  { %v5441_v23 = vpop.eup %5440  ;;  %5452 = vpow2.f32 %v4784_v34 }
 0x575   :  { %5454 = vrcp.f32 %v1799_v25  ;;  %v1811_v15 = vadd.f32 1.0, %v5441_v23  ;;  %v5443_v4 = vpop.eup %5442 }
 0x576   :  { %v5445_v5 = vpop.eup %5444 }
 0x577   :  { %5456 = vrcp.f32 %v1811_v15  ;;  %v1824_v38 = vadd.f32 1.0, %v5445_v5 }
 0x579   :  { %5458 = vrcp.f32 %v1824_v38 }
 0x57e   :  { %v5447_v9 = vpop.eup %5446 }
 0x57f   :  { %v5449_v26 = vpop.eup %5448  ;;  %v1832_v30 = vmul.f32 %v5447_v9, %v5443_v4 }
 0x580   :  { %v5451_v40 = vpop.eup %5450 }
 0x581   :  { %v5453_v8 = vpop.eup %5452  ;;  %v1830_v0 = vmul.f32 %v5451_v40, %v6631_v43 }
 0x582   :  { %v5455_v52 = vpop.eup %5454  ;;  %v1825_v41 = vadd.f32 1.0, %v5453_v8 }
 0x583   :  { %v6681_v16 = vadd.f32 %v1832_v30, %v1830_v0  ;;  %v1833_v39 = vmul.f32 %v5455_v52, %v5449_v26  ;;  %v7682_v30 = vld [vmem:[#allocation33_spill] sm:$0xff] }
 0x584   :  { %v5457_v11 = vpop.eup %5456  ;;  %v1860_v40 = vunpack.c.l.bf16 %v7682_v30 }
 0x585   :  { %v1831_v42 = vmul.f32 %v5457_v11, %v6634_v33  ;;  %5460 = vtanh.f32 %v6681_v16  ;;  %v7681_v33 = vld [vmem:[#allocation31_spill] sm:$0xff] }
 0x586   :  { %5462 = vrcp.f32 %v1825_v41  ;;  %v5459_v17 = vpop.eup %5458  ;;  %v1856_v12 = vunpack.c.l.bf16 %v7681_v33  ;;  %v1857_v4 = vunpack.c.h.bf16 %v7681_v33 }
 0x587   :  { %v6684_v44 = vadd.f32 %v1833_v39, %v1831_v42 }
 0x589   :  { %5464 = vtanh.f32 %v6684_v44 }
 0x592   :  { %v5461_v7 = vpop.eup %5460 }
 0x593   :  { %v5463_v43 = vpop.eup %5462  ;;  %v1838_v24 = vmul.f32 %v5461_v7, %v5459_v17  ;;  %v7683_v17 = vld [vmem:[#allocation32_spill] sm:$0xff] }
 0x594   :  { %v1859_v7 = vunpack.c.h.bf16 %v7683_v17 }
 0x596   :  { %v5465_v13 = vpop.eup %5464 }
 0x597   :  { %v1839_v34 = vmul.f32 %v5465_v13, %v5463_v43  ;;  %v1858_v13 = vunpack.c.l.bf16 %v7683_v17 }
 0x599   :  { %v1840_v18 = vpack.c.bf16 %v1839_v34, %v1838_v24  ;;  %v7684_v34 = vld [vmem:[#allocation34_spill] sm:$0xff] }
 0x59b   :  { %5067 = vst [vmem:[#allocation2 + $0x20] sm:$0xff] %v1840_v18   ;;  %1897 = vmatmul.mubr.bf16.vlgmr.msra.gmra.mxu0 %v1840_v18  ;;  %1940 = vmatmul.mubr.bf16.vlgmr.msra.gmra.mxu1 %v1840_v18  ;;  %v1863_v18 = vunpack.c.h.bf16 %v7684_v34 }
 0x59c   :  { %2031 = vmatpush1.bf16.msra.mxu0 %v6478_v45  ;;  %2074 = vmatpush1.bf16.msra.mxu1 %v6481_v20 }
 0x59d   :  { %2032 = vmatprep.subr.bf16.mxu0 %v6484_v46  ;;  %2075 = vmatprep.subr.bf16.mxu1 %v6487_v47 }
 0x59e   :  { %2062 = vmatprep.mubr.bf16.mxu0 %v7668_v61  ;;  %2105 = vmatprep.mubr.bf16.mxu1 %v7668_v61 }
 0x5a0   :  { %2033 = vmatpush1.bf16.msra.mxu0 %v6492_v48  ;;  %2076 = vmatpush1.bf16.msra.mxu1 %v6495_v49 }
 0x5a1   :  { %2034 = vmatprep.subr.bf16.mxu0 %v6498_v50  ;;  %2077 = vmatprep.subr.bf16.mxu1 %v6501_v51 }
 0x5a4   :  { %2035 = vmatpush1.bf16.msra.mxu0 %v6504_v53  ;;  %2078 = vmatpush1.bf16.msra.mxu1 %v6507_v54 }
 0x5a5   :  { %2036 = vmatprep.subr.bf16.mxu0 %v6510_v55  ;;  %2079 = vmatprep.subr.bf16.mxu1 %v6513_v56 }
 0x5a8   :  { %2037 = vmatpush1.bf16.msra.mxu0 %v6516_v57  ;;  %2080 = vmatpush1.bf16.msra.mxu1 %v6519_v58 }
 0x5a9   :  { %2038 = vmatprep.subr.bf16.mxu0 %v6522_v59  ;;  %2081 = vmatprep.subr.bf16.mxu1 %v6525_v60 }
 0x5ac   :  { %2039 = vmatpush1.bf16.msra.mxu0 %v6528_v62  ;;  %2082 = vmatpush1.bf16.msra.mxu1 %v6531_v63 }
 0x5ad   :  { %2040 = vmatprep.subr.bf16.mxu0 %v6534_v1  ;;  %2083 = vmatprep.subr.bf16.mxu1 %v6537_v2 }
 0x5b0   :  { %2041 = vmatpush1.bf16.msra.mxu0 %v6540_v3  ;;  %2084 = vmatpush1.bf16.msra.mxu1 %v6543_v21 }
 0x5b1   :  { %2042 = vmatprep.subr.bf16.mxu0 %v6546_v6  ;;  %2085 = vmatprep.subr.bf16.mxu1 %v6549_v22 }
 0x5b4   :  { %2043 = vmatpush1.bf16.msra.mxu0 %v6552_v32  ;;  %2086 = vmatpush1.bf16.msra.mxu1 %v6555_v28 }
 0x5b5   :  { %2044 = vmatprep.subr.bf16.mxu0 %v6558_v35  ;;  %2087 = vmatprep.subr.bf16.mxu1 %v6561_v14 }
 0x5b8   :  { %2045 = vmatpush1.bf16.msra.mxu0 %v6614_v29  ;;  %2088 = vmatpush1.bf16.msra.mxu1 %v6617_v10 }
 0x5b9   :  { %2196 = vmatprep.subr.bf16.mxu0 %v6456_v36  ;;  %2239 = vmatprep.subr.bf16.mxu1 %v6459_v37  ;;  %v1861_v36 = vunpack.c.h.bf16 %v7682_v30 }
 0x65b   :  { %v1898_v25 = vpop.f32.mrf.mxu0  ;;  %v1941_v15 = vpop.f32.mrf.mxu1 }
 0x65c   :  { %v1950_v23 = vadd.f32 %v1898_v25, %v1856_v12  ;;  %v1952_v33 = vadd.f32 %v1941_v15, %v1858_v13  ;;  %v1862_v25 = vunpack.c.l.bf16 %v7684_v34 }
 0x65d   :  { %v1900_v5 = vpop.f32.mrf.mxu0  ;;  %v1943_v52 = vpop.f32.mrf.mxu1 }
 0x65e   :  { %v4787_v9 = vmul.f32 -1.442695, %v1950_v23  ;;  %v1951_v26 = vadd.f32 %v1900_v5, %v1857_v4  ;;  %v1953_v43 = vadd.f32 %v1943_v52, %v1859_v7 }
 0x65f   :  { %v1902_v8 = vpop.f32.mrf.mxu0  ;;  %v1945_v41 = vpop.f32.mrf.mxu1 }
 0x660   :  { %5466 = vpow2.f32 %v4787_v9  ;;  %v4789_v0 = vmul.f32 -1.442695, %v1951_v26  ;;  %v1954_v38 = vadd.f32 %v1902_v8, %v1860_v40  ;;  %v4791_v12 = vmul.f32 -1.442695, %v1953_v43 }
 0x661   :  { %v1904_v37 = vpop.f32.mrf.mxu0  ;;  %v1947_v24 = vpop.f32.mrf.mxu1  ;;  %v1956_v5 = vadd.f32 %v1945_v41, %v1862_v25 }
 0x662   :  { %5468 = vpow2.f32 %v4789_v0  ;;  %v4788_v39 = vmul.f32 -1.442695, %v1954_v38  ;;  %v1955_v11 = vadd.f32 %v1904_v37, %v1861_v36  ;;  %v1957_v23 = vadd.f32 %v1947_v24, %v1863_v18 }
 0x664   :  { %5470 = vpow2.f32 %v4788_v39  ;;  %v4790_v42 = vmul.f32 -1.442695, %v1955_v11  ;;  %v4792_v30 = vmul.f32 -1.442695, %v1957_v23 }
 0x666   :  { %5472 = vpow2.f32 %v4790_v42 }
 0x667   :  { %5474 = vtanh.f32 %v1952_v33 }
 0x668   :  { %5476 = vpow2.f32 %v4791_v12 }
 0x66d   :  { %v5467_v4 = vpop.eup %5466 }
 0x66e   :  { %v1964_v9 = vadd.f32 1.0, %v5467_v4 }
 0x66f   :  { %v5469_v26 = vpop.eup %5468 }
 0x670   :  { %5478 = vrcp.f32 %v1964_v9  ;;  %v1976_v40 = vadd.f32 1.0, %v5469_v26 }
 0x671   :  { %v5471_v8 = vpop.eup %5470  ;;  %5480 = vtanh.f32 %v1956_v5 }
 0x672   :  { %5482 = vrcp.f32 %v1976_v40  ;;  %v1965_v0 = vadd.f32 1.0, %v5471_v8 }
 0x673   :  { %v5473_v52 = vpop.eup %5472  ;;  %5484 = vpow2.f32 %v4792_v30 }
 0x674   :  { %5486 = vrcp.f32 %v1965_v0  ;;  %v1977_v15 = vadd.f32 1.0, %v5473_v52  ;;  %v5475_v38 = vpop.eup %5474 }
 0x675   :  { %v5477_v36 = vpop.eup %5476 }
 0x676   :  { %5488 = vrcp.f32 %v1977_v15  ;;  %v1990_v43 = vadd.f32 1.0, %v5477_v36 }
 0x678   :  { %5490 = vrcp.f32 %v1990_v43 }
 0x67d   :  { %v5479_v37 = vpop.eup %5478 }
 0x67e   :  { %v5481_v39 = vpop.eup %5480  ;;  %v1998_v11 = vmul.f32 %v5479_v37, %v5475_v38 }
 0x67f   :  { %v5483_v41 = vpop.eup %5482 }
 0x680   :  { %v5485_v42 = vpop.eup %5484  ;;  %v1996_v17 = vmul.f32 %v5483_v41, %v6681_v16 }
 0x681   :  { %v5487_v7 = vpop.eup %5486  ;;  %v1991_v18 = vadd.f32 1.0, %v5485_v42 }
 0x682   :  { %v6731_v13 = vadd.f32 %v1998_v11, %v1996_v17  ;;  %v1999_v24 = vmul.f32 %v5487_v7, %v5481_v39 }
 0x683   :  { %v5489_v34 = vpop.eup %5488 }
 0x684   :  { %v1997_v33 = vmul.f32 %v5489_v34, %v6684_v44  ;;  %5492 = vtanh.f32 %v6731_v13 }
 0x685   :  { %5494 = vrcp.f32 %v1991_v18  ;;  %v5491_v25 = vpop.eup %5490 }
 0x686   :  { %v6734_v12 = vadd.f32 %v1999_v24, %v1997_v33 }
 0x688   :  { %5496 = vtanh.f32 %v6734_v12 }
 0x691   :  { %v5493_v23 = vpop.eup %5492 }
 0x692   :  { %v5495_v16 = vpop.eup %5494  ;;  %v2004_v5 = vmul.f32 %v5493_v23, %v5491_v25 }
 0x695   :  { %v5497_v4 = vpop.eup %5496 }
 0x696   :  { %v2005_v9 = vmul.f32 %v5497_v4, %v5495_v16 }
 0x698   :  { %v2006_v26 = vpack.c.bf16 %v2005_v9, %v2004_v5 }
 0x69a   :  { %5072 = vst [vmem:[#allocation2 + $0x28] sm:$0xff] %v2006_v26   ;;  %2063 = vmatmul.mubr.bf16.vlgmr.msra.gmra.mxu0 %v2006_v26  ;;  %2106 = vmatmul.mubr.bf16.vlgmr.msra.gmra.mxu1 %v2006_v26 }
 0x69b   :  { %2197 = vmatpush1.bf16.msra.mxu0 %v6478_v45  ;;  %2240 = vmatpush1.bf16.msra.mxu1 %v6481_v20  ;;  %v5204_v45 = vld [vmem:[#allocation10 + $0xe4] ss:$16 sps:$4 sm:$0xff]   ;;  %v5207_v20 = vld [vmem:[#allocation10 + $0xec] ss:$16 sps:$4 sm:$0xff]  }
 0x69c   :  { %2198 = vmatprep.subr.bf16.mxu0 %v6484_v46  ;;  %2241 = vmatprep.subr.bf16.mxu1 %v6487_v47  ;;  %v7685_v46 = vld [vmem:[#allocation35_spill] sm:$0xff] }
 0x69d   :  { %2228 = vmatprep.mubr.bf16.mxu0 %v7668_v61  ;;  %2271 = vmatprep.mubr.bf16.mxu1 %v7668_v61  ;;  %v2022_v47 = vunpack.c.l.bf16 %v7685_v46 }
 0x69f   :  { %2199 = vmatpush1.bf16.msra.mxu0 %v6492_v48  ;;  %2242 = vmatpush1.bf16.msra.mxu1 %v6495_v49 }
 0x6a0   :  { %2200 = vmatprep.subr.bf16.mxu0 %v6498_v50  ;;  %2243 = vmatprep.subr.bf16.mxu1 %v6501_v51  ;;  %v2023_v51 = vunpack.c.h.bf16 %v7685_v46 }
 0x6a3   :  { %2201 = vmatpush1.bf16.msra.mxu0 %v6504_v53  ;;  %2244 = vmatpush1.bf16.msra.mxu1 %v6507_v54 }
 0x6a4   :  { %2202 = vmatprep.subr.bf16.mxu0 %v6510_v55  ;;  %2245 = vmatprep.subr.bf16.mxu1 %v6513_v56  ;;  %v7686_v56 = vld [vmem:[#allocation37_spill] sm:$0xff] }
 0x6a7   :  { %2203 = vmatpush1.bf16.msra.mxu0 %v6516_v57  ;;  %2246 = vmatpush1.bf16.msra.mxu1 %v6519_v58  ;;  %v2026_v57 = vunpack.c.l.bf16 %v7686_v56 }
 0x6a8   :  { %2204 = vmatprep.subr.bf16.mxu0 %v6522_v59  ;;  %2247 = vmatprep.subr.bf16.mxu1 %v6525_v60 }
 0x6ab   :  { %2205 = vmatpush1.bf16.msra.mxu0 %v6528_v62  ;;  %2248 = vmatpush1.bf16.msra.mxu1 %v6531_v63  ;;  %v2027_v63 = vunpack.c.h.bf16 %v7686_v56  ;;  %v5213_v56 = vld [vmem:[#allocation10 + $0xcc] ss:$16 sps:$4 sm:$0xff]  }
 0x6ac   :  { %2206 = vmatprep.subr.bf16.mxu0 %v6534_v1  ;;  %2249 = vmatprep.subr.bf16.mxu1 %v6537_v2 }
 0x6af   :  { %2207 = vmatpush1.bf16.msra.mxu0 %v6540_v3  ;;  %2250 = vmatpush1.bf16.msra.mxu1 %v6543_v21 }
 0x6b0   :  { %2208 = vmatprep.subr.bf16.mxu0 %v6546_v6  ;;  %2251 = vmatprep.subr.bf16.mxu1 %v6549_v22  ;;  %v7687_v22 = vld [vmem:[#allocation36_spill] sm:$0xff] }
 0x6b3   :  { %2209 = vmatpush1.bf16.msra.mxu0 %v6552_v32  ;;  %2252 = vmatpush1.bf16.msra.mxu1 %v6555_v28  ;;  %v2025_v32 = vunpack.c.h.bf16 %v7687_v22 }
 0x6b4   :  { %2210 = vmatprep.subr.bf16.mxu0 %v6558_v35  ;;  %2253 = vmatprep.subr.bf16.mxu1 %v6561_v14  ;;  %v2024_v35 = vunpack.c.l.bf16 %v7687_v22  ;;  %v5226_v22 = vld [vmem:[#allocation10 + $0x60] ss:$16 sps:$4 sm:$0xff]  }
 0x6b7   :  { %2211 = vmatpush1.bf16.msra.mxu0 %v6614_v29  ;;  %2254 = vmatpush1.bf16.msra.mxu1 %v6617_v10  ;;  %v7688_v29 = vld [vmem:[#allocation38_spill] sm:$0xff] }
 0x6b8   :  { %2627 = vmatprep.subr.bf16.mxu0 %v5204_v45  ;;  %2740 = vmatprep.subr.bf16.mxu1 %v5207_v20  ;;  %v2029_v10 = vunpack.c.h.bf16 %v7688_v29  ;;  %v2028_v40 = vunpack.c.l.bf16 %v7688_v29  ;;  %v5235_v29 = vld [vmem:[#allocation10 + $0x48] ss:$16 sps:$4 sm:$0xff]  }
 0x75a   :  { %v2064_v48 = vpop.f32.mrf.mxu0  ;;  %v2107_v50 = vpop.f32.mrf.mxu1 }
 0x75b   :  { %v2116_v49 = vadd.f32 %v2064_v48, %v2022_v47  ;;  %v2118_v44 = vadd.f32 %v2107_v50, %v2024_v35  ;;  %v5237_v35 = vld [vmem:[#allocation10 + $0x4c] ss:$16 sps:$4 sm:$0xff]  }
 0x75c   :  { %v2066_v53 = vpop.f32.mrf.mxu0  ;;  %v2109_v60 = vpop.f32.mrf.mxu1 }
 0x75d   :  { %v4795_v54 = vmul.f32 -1.442695, %v2116_v49  ;;  %v2117_v55 = vadd.f32 %v2066_v53, %v2023_v51  ;;  %v2119_v28 = vadd.f32 %v2109_v60, %v2025_v32  ;;  %v5202_v51 = vld [vmem:[#allocation10 + $0xe0] ss:$16 sps:$4 sm:$0xff]   ;;  %v5205_v53 = vld [vmem:[#allocation10 + $0xe8] ss:$16 sps:$4 sm:$0xff]  }
 0x75e   :  { %v2068_v58 = vpop.f32.mrf.mxu0  ;;  %v2111_v21 = vpop.f32.mrf.mxu1  ;;  %v5214_v60 = vld [vmem:[#allocation10 + $0xa0] ss:$16 sps:$4 sm:$0xff]   ;;  %v5229_v32 = vld [vmem:[#allocation10 + $0x68] ss:$16 sps:$4 sm:$0xff]  }
 0x75f   :  { %5498 = vpow2.f32 %v4795_v54  ;;  %v4797_v59 = vmul.f32 -1.442695, %v2117_v55  ;;  %v2120_v62 = vadd.f32 %v2068_v58, %v2026_v57  ;;  %v4799_v30 = vmul.f32 -1.442695, %v2119_v28  ;;  %v5210_v55 = vld [vmem:[#allocation10 + $0xc4] ss:$16 sps:$4 sm:$0xff]  }
 0x760   :  { %v2070_v1 = vpop.f32.mrf.mxu0  ;;  %v2113_v14 = vpop.f32.mrf.mxu1  ;;  %v2122_v52 = vadd.f32 %v2111_v21, %v2028_v40  ;;  %v5211_v57 = vld [vmem:[#allocation10 + $0xc8] ss:$16 sps:$4 sm:$0xff]   ;;  %v5216_v58 = vld [vmem:[#allocation10 + $0xa4] ss:$16 sps:$4 sm:$0xff]  }
 0x761   :  { %5500 = vpow2.f32 %v4797_v59  ;;  %v4796_v2 = vmul.f32 -1.442695, %v2120_v62  ;;  %v2121_v3 = vadd.f32 %v2070_v1, %v2027_v63  ;;  %v2123_v8 = vadd.f32 %v2113_v14, %v2029_v10  ;;  %v5219_v59 = vld [vmem:[#allocation10 + $0xac] ss:$16 sps:$4 sm:$0xff]   ;;  %v5217_v62 = vld [vmem:[#allocation10 + $0xa8] ss:$16 sps:$4 sm:$0xff]  }
 0x762   :  { %v5222_v63 = vld [vmem:[#allocation10 + $0x84] ss:$16 sps:$4 sm:$0xff]   ;;  %v5225_v1 = vld [vmem:[#allocation10 + $0x8c] ss:$16 sps:$4 sm:$0xff]   ;;  %v5232_v14 = vld [vmem:[#allocation10 + $0x40] ss:$16 sps:$4 sm:$0xff]  }
 0x763   :  { %5502 = vpow2.f32 %v4796_v2  ;;  %v4798_v6 = vmul.f32 -1.442695, %v2121_v3  ;;  %v4800_v36 = vmul.f32 -1.442695, %v2123_v8  ;;  %v5220_v2 = vld [vmem:[#allocation10 + $0x80] ss:$16 sps:$4 sm:$0xff]  }
 0x764   :  { %v5223_v3 = vld [vmem:[#allocation10 + $0x88] ss:$16 sps:$4 sm:$0xff]   ;;  %v5228_v21 = vld [vmem:[#allocation10 + $0x64] ss:$16 sps:$4 sm:$0xff]  }
 0x765   :  { %5504 = vpow2.f32 %v4798_v6  ;;  %v5231_v6 = vld [vmem:[#allocation10 + $0x6c] ss:$16 sps:$4 sm:$0xff]   ;;  %v5234_v28 = vld [vmem:[#allocation10 + $0x44] ss:$16 sps:$4 sm:$0xff]   ;;  %v5241_v40 = vld [vmem:[#allocation10 + $0x28] ss:$16 sps:$4 sm:$0xff]  }
 0x766   :  { %5506 = vtanh.f32 %v2118_v44  ;;  %v5240_v10 = vld [vmem:[#allocation10 + $0x24] ss:$16 sps:$4 sm:$0xff]   ;;  %v5243_v44 = vld [vmem:[#allocation10 + $0x2c] ss:$16 sps:$4 sm:$0xff]  }
 0x767   :  { %5508 = vpow2.f32 %v4799_v30  ;;  %v5238_v30 = vld [vmem:[#allocation10 + $0x20] ss:$16 sps:$4 sm:$0xff]   ;;  %v5246_v8 = vld [vmem:[#allocation10 + $0x4] ss:$16 sps:$4 sm:$0xff]  }
 0x76c   :  { %v5499_v0 = vpop.eup %5498 }
 0x76d   :  { %v2130_v15 = vadd.f32 1.0, %v5499_v0  ;;  %v5249_v0 = vld [vmem:[#allocation10 + $0xc] ss:$16 sps:$4 sm:$0xff]  }
 0x76e   :  { %v5501_v38 = vpop.eup %5500 }
 0x76f   :  { %5510 = vrcp.f32 %v2130_v15  ;;  %v2142_v37 = vadd.f32 1.0, %v5501_v38  ;;  %v5247_v15 = vld [vmem:[#allocation10 + $0x8] ss:$16 sps:$4 sm:$0xff]   ;;  %v5250_v38 = vld [vmem:[#allocation2] sm:$0xff]  }
 0x770   :  { %v5503_v39 = vpop.eup %5502  ;;  %5512 = vtanh.f32 %v2122_v52  ;;  %v5244_v52 = vld [vmem:[#allocation10] ss:$16 sps:$4 sm:$0xff]  }
 0x771   :  { %5514 = vrcp.f32 %v2142_v37  ;;  %v2131_v11 = vadd.f32 1.0, %v5503_v39  ;;  %v5252_v37 = vld [vmem:[#allocation2 + $0x10] sm:$0xff]   ;;  %v5253_v39 = vld [vmem:[#allocation2 + $0x18] sm:$0xff]  }
 0x772   :  { %v5505_v41 = vpop.eup %5504  ;;  %5516 = vpow2.f32 %v4800_v36  ;;  %v5251_v36 = vld [vmem:[#allocation2 + $0x8] sm:$0xff]  }
 0x773   :  { %5518 = vrcp.f32 %v2131_v11  ;;  %v2143_v42 = vadd.f32 1.0, %v5505_v41  ;;  %v5507_v17 = vpop.eup %5506  ;;  %v5254_v11 = vld [vmem:[#allocation2 + $0x20] sm:$0xff]   ;;  %v5255_v41 = vld [vmem:[#allocation2 + $0x28] sm:$0xff]  }
 0x774   :  { %v5509_v7 = vpop.eup %5508 }
 0x775   :  { %5520 = vrcp.f32 %v2143_v42  ;;  %v2156_v16 = vadd.f32 1.0, %v5509_v7  ;;  %v6804_v7 = vld [vmem:[#allocation12 + $0xec] ss:$16 sps:$4 sm:$0xff]  }
 0x777   :  { %5522 = vrcp.f32 %v2156_v16  ;;  %v6828_v16 = vld [vmem:[#allocation12 + $0xac] ss:$16 sps:$4 sm:$0xff]  }
 0x77c   :  { %v5511_v43 = vpop.eup %5510 }
 0x77d   :  { %v5513_v24 = vpop.eup %5512  ;;  %v2164_v34 = vmul.f32 %v5511_v43, %v5507_v17  ;;  %v6802_v17 = vld [vmem:[#allocation12 + $0xe4] ss:$16 sps:$4 sm:$0xff]   ;;  %v6806_v43 = vld [vmem:[#allocation12 + $0xe0] ss:$16 sps:$4 sm:$0xff]  }
 0x77e   :  { %v5515_v18 = vpop.eup %5514 }
 0x77f   :  { %v5517_v33 = vpop.eup %5516  ;;  %v2162_v25 = vmul.f32 %v5515_v18, %v6731_v13  ;;  %v6816_v18 = vld [vmem:[#allocation12 + $0xcc] ss:$16 sps:$4 sm:$0xff]  }
 0x780   :  { %v5519_v23 = vpop.eup %5518  ;;  %v2157_v26 = vadd.f32 1.0, %v5517_v33  ;;  %v6818_v33 = vld [vmem:[#allocation12 + $0xc0] ss:$16 sps:$4 sm:$0xff]  }
 0x781   :  { %v6779_v4 = vadd.f32 %v2164_v34, %v2162_v25  ;;  %v2165_v5 = vmul.f32 %v5519_v23, %v5513_v24  ;;  %v6808_v24 = vld [vmem:[#allocation12 + $0xe8] ss:$16 sps:$4 sm:$0xff]   ;;  %v6814_v34 = vld [vmem:[#allocation12 + $0xc4] ss:$16 sps:$4 sm:$0xff]  }
 0x782   :  { %v5521_v9 = vpop.eup %5520  ;;  %v6820_v25 = vld [vmem:[#allocation12 + $0xc8] ss:$16 sps:$4 sm:$0xff]   ;;  %v6826_v23 = vld [vmem:[#allocation12 + $0xa4] ss:$16 sps:$4 sm:$0xff]  }
 0x783   :  { %v2163_v45 = vmul.f32 %v5521_v9, %v6734_v12  ;;  %5524 = vtanh.f32 %v6779_v4  ;;  %v5208_v12 = vld [vmem:[#allocation10 + $0xc0] ss:$16 sps:$4 sm:$0xff]   ;;  %v6832_v9 = vld [vmem:[#allocation12 + $0xa8] ss:$16 sps:$4 sm:$0xff]  }
 0x784   :  { %5526 = vrcp.f32 %v2157_v26  ;;  %v5523_v46 = vpop.eup %5522  ;;  %v6838_v26 = vld [vmem:[#allocation12 + $0x84] ss:$16 sps:$4 sm:$0xff]  }
 0x785   :  { %v6782_v20 = vadd.f32 %v2165_v5, %v2163_v45  ;;  %v6830_v5 = vld [vmem:[#allocation12 + $0xa0] ss:$16 sps:$4 sm:$0xff]   ;;  %v6840_v45 = vld [vmem:[#allocation12 + $0x8c] ss:$16 sps:$4 sm:$0xff]  }
 0x787   :  { %5528 = vtanh.f32 %v6782_v20 }
 0x790   :  { %v5525_v47 = vpop.eup %5524 }
 0x791   :  { %v5527_v13 = vpop.eup %5526  ;;  %v2170_v49 = vmul.f32 %v5525_v47, %v5523_v46  ;;  %v6842_v46 = vld [vmem:[#allocation12 + $0x80] ss:$16 sps:$4 sm:$0xff]   ;;  %v6844_v47 = vld [vmem:[#allocation12 + $0x88] ss:$16 sps:$4 sm:$0xff]  }
 0x794   :  { %v5529_v48 = vpop.eup %5528 }
 0x795   :  { %v2171_v50 = vmul.f32 %v5529_v48, %v5527_v13  ;;  %v6847_v13 = vld [vmem:[#allocation12 + $0x64] ss:$16 sps:$4 sm:$0xff]   ;;  %v6851_v48 = vld [vmem:[#allocation12 + $0x60] ss:$16 sps:$4 sm:$0xff]  }
 0x797   :  { %v2172_v54 = vpack.c.bf16 %v2171_v50, %v2170_v49  ;;  %v6855_v49 = vld [vmem:[#allocation12 + $0x44] ss:$16 sps:$4 sm:$0xff]   ;;  %v6857_v50 = vld [vmem:[#allocation12 + $0x6c] ss:$16 sps:$4 sm:$0xff]  }
 0x799   :  { %5077 = vst [vmem:[#allocation2 + $0x30] sm:$0xff] %v2172_v54   ;;  %2229 = vmatmul.mubr.bf16.vlgmr.msra.gmra.mxu0 %v2172_v54  ;;  %2272 = vmatmul.mubr.bf16.vlgmr.msra.gmra.mxu1 %v2172_v54  ;;  %v6867_v54 = vld [vmem:[#allocation12 + $0x24] ss:$16 sps:$4 sm:$0xff]  }
 0x79a   :  { %2628 = vmatpush1.bf16.msra.mxu0 %v5202_v51  ;;  %2741 = vmatpush1.bf16.msra.mxu1 %v5205_v53  ;;  %v6859_v51 = vld [vmem:[#allocation12 + $0x68] ss:$16 sps:$4 sm:$0xff]   ;;  %v6863_v53 = vld [vmem:[#allocation12 + $0x40] ss:$16 sps:$4 sm:$0xff]  }
 0x79b   :  { %2629 = vmatprep.subr.bf16.mxu0 %v5210_v55  ;;  %2742 = vmatprep.subr.bf16.mxu1 %v5213_v56  ;;  %v6869_v55 = vld [vmem:[#allocation12 + $0x4c] ss:$16 sps:$4 sm:$0xff]   ;;  %v6871_v56 = vld [vmem:[#allocation12 + $0x48] ss:$16 sps:$4 sm:$0xff]  }
 0x79c   :  { %2659 = vmatprep.mubr.bf16.mxu0 %v7668_v61  ;;  %2772 = vmatprep.mubr.bf16.mxu1 %v7668_v61 }
 0x79e   :  { %2630 = vmatpush1.bf16.msra.mxu0 %v5208_v12  ;;  %2743 = vmatpush1.bf16.msra.mxu1 %v5211_v57  ;;  %v6875_v12 = vld [vmem:[#allocation12 + $0x20] ss:$16 sps:$4 sm:$0xff]   ;;  %v6879_v57 = vld [vmem:[#allocation12 + $0x2c] ss:$16 sps:$4 sm:$0xff]  }
 0x79f   :  { %2631 = vmatprep.subr.bf16.mxu0 %v5216_v58  ;;  %2744 = vmatprep.subr.bf16.mxu1 %v5219_v59  ;;  %v6881_v58 = vld [vmem:[#allocation12 + $0x28] ss:$16 sps:$4 sm:$0xff]   ;;  %v6886_v59 = vld [vmem:[#allocation12 + $0x4] ss:$16 sps:$4 sm:$0xff]  }
 0x7a0   :  { %v5256_v42 = vld [vmem:[#allocation2 + $0x30] sm:$0xff]  }
 0x7a2   :  { %2632 = vmatpush1.bf16.msra.mxu0 %v5214_v60  ;;  %2745 = vmatpush1.bf16.msra.mxu1 %v5217_v62  ;;  %v6888_v60 = vld [vmem:[#allocation12] ss:$16 sps:$4 sm:$0xff]   ;;  %v6890_v62 = vld [vmem:[#allocation12 + $0xc] ss:$16 sps:$4 sm:$0xff]  }
 0x7a3   :  { %2633 = vmatprep.subr.bf16.mxu0 %v5222_v63  ;;  %2746 = vmatprep.subr.bf16.mxu1 %v5225_v1  ;;  %v6892_v63 = vld [vmem:[#allocation12 + $0x8] ss:$16 sps:$4 sm:$0xff]   ;;  %v99_v1 = vld [vmem:[%s7582_s0] sm:$0xff] }
 0x7a6   :  { %2634 = vmatpush1.bf16.msra.mxu0 %v5220_v2  ;;  %2747 = vmatpush1.bf16.msra.mxu1 %v5223_v3  ;;  %v100_v2 = vld [vmem:[%s7582_s0 + $0x8] sm:$0xff]  ;;  %v6906_v3 = vadd.s32 4294967295, %v99_v1  ;;  %v2190_v1 = vunpack.c.l.bf16 %v6400_v31 }
 0x7a7   :  { %2635 = vmatprep.subr.bf16.mxu0 %v5228_v21  ;;  %2748 = vmatprep.subr.bf16.mxu1 %v5231_v6  ;;  %v6908_v21 = vadd.s32 4294967295, %v100_v2 }
 0x7a8   :  { %vm3423_vm0 = vcmp.eq.s32.totalorder %v6906_v3, 0  ;;  %vm3592_vm2 = vcmp.eq.s32.totalorder %v6906_v3, 1  ;;  %vm3761_vm4 = vcmp.eq.s32.totalorder %v6906_v3, 2  ;;  %vm3930_vm10 = vcmp.eq.s32.totalorder %v6906_v3, 3 }
 0x7a9   :  { %vm3424_vm1 = vcmp.eq.s32.totalorder %v6908_v21, 0  ;;  %v3425_v6 = vsel %vm3423_vm0, 1, %v7668_v61  ;;  %vm3593_vm3 = vcmp.eq.s32.totalorder %v6908_v21, 1  ;;  %vm3762_vm5 = vcmp.eq.s32.totalorder %v6908_v21, 2 }
 0x7aa   :  { %2636 = vmatpush1.bf16.msra.mxu0 %v5226_v22  ;;  %2749 = vmatpush1.bf16.msra.mxu1 %v5229_v32  ;;  %v3426_v22 = vsel %vm3424_vm1, 1, %v7668_v61  ;;  %v2188_v32 = vunpack.c.l.bf16 %v6398_v27  ;;  %vm3931_vm11 = vcmp.eq.s32.totalorder %v6908_v21, 3  ;;  %vm4099_vm14 = vcmp.eq.s32.totalorder %v6906_v3, 4 }
 0x7ab   :  { %2637 = vmatprep.subr.bf16.mxu0 %v5234_v28  ;;  %2750 = vmatprep.subr.bf16.mxu1 %v5237_v35  ;;  %vm4100_vm15 = vcmp.eq.s32.totalorder %v6908_v21, 4 }
 0x7ac   :  { %3428 = vperm.xlu0 %5096, %v3425_v6   ;;  %v7689_v6 = vld [vmem:[#allocation39_spill] sm:$0xff] }
 0x7ae   :  { %2638 = vmatpush1.bf16.msra.mxu0 %v5232_v14  ;;  %2751 = vmatpush1.bf16.msra.mxu1 %v5235_v29  ;;  %v2189_v29 = vunpack.c.h.bf16 %v6398_v27  ;;  %v2191_v27 = vunpack.c.h.bf16 %v6400_v31 }
 0x7af   :  { %2639 = vmatprep.subr.bf16.mxu0 %v5240_v10  ;;  %2752 = vmatprep.subr.bf16.mxu1 %v5243_v44 }
 0x7b0   :  { %3431 = vperm.xlu0 %5096, %v3426_v22   ;;  %v2195_v22 = vunpack.c.h.bf16 %v7689_v6 }
 0x7b2   :  { %2640 = vmatpush1.bf16.msra.mxu0 %v5238_v30  ;;  %2753 = vmatpush1.bf16.msra.mxu1 %v5241_v40  ;;  %v2192_v40 = vunpack.c.l.bf16 %v6406_v19 }
 0x7b3   :  { %2641 = vmatprep.subr.bf16.mxu0 %v5246_v8  ;;  %2754 = vmatprep.subr.bf16.mxu1 %v5249_v0 }
 0x7b6   :  { %2642 = vmatpush1.bf16.msra.mxu0 %v5244_v52  ;;  %2755 = vmatpush1.bf16.msra.mxu1 %v5247_v15 }
 0x7b7   :  { %3281 = vmatprep.subr.bf16.mxu0 %v6802_v17  ;;  %3324 = vmatprep.subr.bf16.mxu1 %v6804_v7 }
 0x7b9   :  { %2660 = vmatmul.mubr.bf16.vlgmr.msra.gmra.mxu0 %v5250_v38  ;;  %2773 = vmatmul.mubr.bf16.vlgmr.msra.gmra.mxu1 %v5250_v38  ;;  %v2193_v38 = vunpack.c.h.bf16 %v6406_v19  ;;  %v2194_v19 = vunpack.c.l.bf16 %v7689_v6 }
 0x7ba   :  { %2669 = vmatprep.mubr.bf16.mxu0 %v7668_v61  ;;  %2782 = vmatprep.mubr.bf16.mxu1 %v7668_v61 }
 0x7bb   :  { %3282 = vmatpush1.bf16.msra.mxu0 %v6806_v43  ;;  %3325 = vmatpush1.bf16.msra.mxu1 %v6808_v24 }
 0x7bc   :  { %3283 = vmatprep.subr.bf16.mxu0 %v6814_v34  ;;  %3326 = vmatprep.subr.bf16.mxu1 %v6816_v18 }
 0x7bf   :  { %3284 = vmatpush1.bf16.msra.mxu0 %v6818_v33  ;;  %3327 = vmatpush1.bf16.msra.mxu1 %v6820_v25 }
 0x7c0   :  { %3285 = vmatprep.subr.bf16.mxu0 %v6826_v23  ;;  %3328 = vmatprep.subr.bf16.mxu1 %v6828_v16 }
 0x7c1   :  { %2670 = vmatmul.mubr.bf16.gmra.mxu0 %v5251_v36  ;;  %2783 = vmatmul.mubr.bf16.gmra.mxu1 %v5251_v36 }
 0x7c2   :  { %2679 = vmatprep.mubr.bf16.mxu0 %v7668_v61  ;;  %2792 = vmatprep.mubr.bf16.mxu1 %v7668_v61 }
 0x7c3   :  { %3286 = vmatpush1.bf16.msra.mxu0 %v6830_v5  ;;  %3329 = vmatpush1.bf16.msra.mxu1 %v6832_v9 }
 0x7c4   :  { %3287 = vmatprep.subr.bf16.mxu0 %v6838_v26  ;;  %3330 = vmatprep.subr.bf16.mxu1 %v6840_v45 }
 0x7c7   :  { %3288 = vmatpush1.bf16.msra.mxu0 %v6842_v46  ;;  %3331 = vmatpush1.bf16.msra.mxu1 %v6844_v47 }
 0x7c8   :  { %3289 = vmatprep.subr.bf16.mxu0 %v6847_v13  ;;  %3332 = vmatprep.subr.bf16.mxu1 %v6857_v50 }
 0x7c9   :  { %2680 = vmatmul.mubr.bf16.gmra.mxu0 %v5252_v37  ;;  %2793 = vmatmul.mubr.bf16.gmra.mxu1 %v5252_v37 }
 0x7ca   :  { %2689 = vmatprep.mubr.bf16.mxu0 %v7668_v61  ;;  %2802 = vmatprep.mubr.bf16.mxu1 %v7668_v61 }
 0x7cb   :  { %3290 = vmatpush1.bf16.msra.mxu0 %v6851_v48  ;;  %3333 = vmatpush1.bf16.msra.mxu1 %v6859_v51 }
 0x7cc   :  { %3291 = vmatprep.subr.bf16.mxu0 %v6855_v49  ;;  %3334 = vmatprep.subr.bf16.mxu1 %v6869_v55 }
 0x7cf   :  { %3292 = vmatpush1.bf16.msra.mxu0 %v6863_v53  ;;  %3335 = vmatpush1.bf16.msra.mxu1 %v6871_v56 }
 0x7d0   :  { %3293 = vmatprep.subr.bf16.mxu0 %v6867_v54  ;;  %3336 = vmatprep.subr.bf16.mxu1 %v6879_v57 }
 0x7d1   :  { %2690 = vmatmul.mubr.bf16.gmra.mxu0 %v5253_v39  ;;  %2803 = vmatmul.mubr.bf16.gmra.mxu1 %v5253_v39 }
 0x7d2   :  { %2699 = vmatprep.mubr.bf16.mxu0 %v7668_v61  ;;  %2812 = vmatprep.mubr.bf16.mxu1 %v7668_v61 }
 0x7d3   :  { %3294 = vmatpush1.bf16.msra.mxu0 %v6875_v12  ;;  %3337 = vmatpush1.bf16.msra.mxu1 %v6881_v58 }
 0x7d4   :  { %3295 = vmatprep.subr.bf16.mxu0 %v6886_v59  ;;  %3338 = vmatprep.subr.bf16.mxu1 %v6890_v62 }
 0x7d7   :  { %3296 = vmatpush1.bf16.msra.mxu0 %v6888_v60  ;;  %3339 = vmatpush1.bf16.msra.mxu1 %v6892_v63 }
 0x7d8   :  { %3450 = vmatprep.subr.bf16.mxu0 %v6802_v17  ;;  %3493 = vmatprep.subr.bf16.mxu1 %v6804_v7 }
 0x7d9   :  { %2700 = vmatmul.mubr.bf16.gmra.mxu0 %v5254_v11  ;;  %2813 = vmatmul.mubr.bf16.gmra.mxu1 %v5254_v11 }
 0x7da   :  { %2709 = vmatprep.mubr.bf16.mxu0 %v7668_v61  ;;  %2822 = vmatprep.mubr.bf16.mxu1 %v7668_v61 }
 0x7e1   :  { %2710 = vmatmul.mubr.bf16.gmra.mxu0 %v5255_v41  ;;  %2823 = vmatmul.mubr.bf16.gmra.mxu1 %v5255_v41 }
 0x7e2   :  { %2719 = vmatprep.mubr.bf16.mxu0 %v7668_v61  ;;  %2832 = vmatprep.mubr.bf16.mxu1 %v7668_v61 }
 0x7e9   :  { %2720 = vmatmul.mubr.bf16.gmra.mxu0 %v5256_v42  ;;  %2833 = vmatmul.mubr.bf16.gmra.mxu1 %v5256_v42 }
 0x7ea   :  { %2729 = vmatprep.mubr.bf16.mxu0 %v7668_v61  ;;  %2842 = vmatprep.mubr.bf16.mxu1 %v7668_v61 }
 0x859   :  { %v2230_v28 = vpop.f32.mrf.mxu0  ;;  %v2273_v14 = vpop.f32.mrf.mxu1 }
 0x85a   :  { %v2282_v35 = vadd.f32 %v2230_v28, %v2188_v32  ;;  %v2284_v32 = vadd.f32 %v2273_v14, %v2190_v1 }
 0x85b   :  { %v2232_v10 = vpop.f32.mrf.mxu0  ;;  %v2275_v52 = vpop.f32.mrf.mxu1 }
 0x85c   :  { %v4803_v44 = vmul.f32 -1.442695, %v2282_v35  ;;  %v2283_v30 = vadd.f32 %v2232_v10, %v2189_v29  ;;  %v2285_v42 = vadd.f32 %v2275_v52, %v2191_v27 }
 0x85d   :  { %v2234_v8 = vpop.f32.mrf.mxu0  ;;  %v2277_v11 = vpop.f32.mrf.mxu1 }
 0x85e   :  { %5530 = vpow2.f32 %v4803_v44  ;;  %v4805_v0 = vmul.f32 -1.442695, %v2283_v30  ;;  %v2286_v15 = vadd.f32 %v2234_v8, %v2192_v40  ;;  %v4807_v28 = vmul.f32 -1.442695, %v2285_v42 }
 0x85f   :  { %v2236_v36 = vpop.f32.mrf.mxu0  ;;  %v2279_v2 = vpop.f32.mrf.mxu1  ;;  %v2288_v10 = vadd.f32 %v2277_v11, %v2194_v19  ;;  %v2397_v19 = vld [vmem:[%s7589_s7] sm:$0xf]  ;;  %s6020_s7 = smov [#allocation13]  }
 0x860   :  { %5532 = vpow2.f32 %v4805_v0  ;;  %v4804_v37 = vmul.f32 -1.442695, %v2286_v15  ;;  %v2287_v39 = vadd.f32 %v2236_v36, %v2193_v38  ;;  %v2289_v35 = vadd.f32 %v2279_v2, %v2195_v22  ;;  %s4627_s13 = sshll.u32 %s6020_s7, 4  ;;  %s4628_s13 = int_to_ptr.vmem [resolvable:$true] %s4627_s13 }
 0x861   :  { %s5982_s14 = scalar_lea.vmem %s4628_s13, 256  ;;  %p5987_p12 = scmp.lt.s32.totalorder %s4628_s13, %s4628_s13 }
 0x862   :  { %5534 = vpow2.f32 %v4804_v37  ;;  %v4806_v41 = vmul.f32 -1.442695, %v2287_v39  ;;  %v4808_v40 = vmul.f32 -1.442695, %v2289_v35  ;;  %p5983_p11 = scmp.ne.s32.totalorder %s4628_s13, %s5982_s14  ;;  %p5988_p13 = scmp.lt.s32.totalorder %s5982_s14, %s5982_s14 }
 0x864   :  { %5536 = vpow2.f32 %v4806_v41  ;;  %p5989_p0 = por %p5988_p13, %p5987_p12 }
 0x865   :  { %5538 = vtanh.f32 %v2284_v32 }
 0x866   :  { %5540 = vpow2.f32 %v4807_v28  ;;  %p5990_p1 = pnand %p5989_p0, %p5983_p11 }
 0x86b   :  { %v5531_v29 = vpop.eup %5530 }
 0x86c   :  { %v2296_v44 = vadd.f32 1.0, %v5531_v29 }
 0x86d   :  { %v5533_v30 = vpop.eup %5532 }
 0x86e   :  { %5542 = vrcp.f32 %v2296_v44  ;;  %v2308_v8 = vadd.f32 1.0, %v5533_v30 }
 0x86f   :  { %v5535_v0 = vpop.eup %5534  ;;  %5544 = vtanh.f32 %v2288_v10 }
 0x870   :  { %5546 = vrcp.f32 %v2308_v8  ;;  %v2297_v31 = vadd.f32 1.0, %v5535_v0  ;;  %v7695_v0 = vld [vmem:[#allocation18_spill] sm:$0xff] }
 0x871   :  { %v5537_v52 = vpop.eup %5536  ;;  %5548 = vpow2.f32 %v4808_v40 }
 0x872   :  { %5550 = vrcp.f32 %v2297_v31  ;;  %v2309_v14 = vadd.f32 1.0, %v5537_v52  ;;  %v5539_v15 = vpop.eup %5538  ;;  %v7696_v31 = vsub.s32 0, %v7695_v0 }
 0x873   :  { %v5541_v37 = vpop.eup %5540 }
 0x874   :  { %5552 = vrcp.f32 %v2309_v14  ;;  %v2322_v2 = vadd.f32 1.0, %v5541_v37  ;;  %v6944_v52 = vrot.slane %v2397_v19, %v7696_v31 }
 0x876   :  { %5554 = vrcp.f32 %v2322_v2  ;;  %7697 = vst [vmem:[#allocation25_spill] sm:$0xff] %v6944_v52 }
 0x879   :  { %v6922_v38 = vpop.f32.mrf.mxu0  ;;  %v6924_v36 = vpop.f32.mrf.mxu1 }
 0x87a   :  { %7690 = vst [vmem:[#allocation19_spill] sm:$0xff] %v6924_v36 }
 0x87b   :  { %v5543_v39 = vpop.eup %5542  ;;  %v6926_v11 = vpop.f32.mrf.mxu0 }
 0x87c   :  { %v6928_v41 = vpop.f32.mrf.mxu1  ;;  %v5545_v27 = vpop.eup %5544  ;;  %v2330_v42 = vmul.f32 %v5543_v39, %v5539_v15 }
 0x87d   :  { %7691 = vst [vmem:[#allocation21_spill] sm:$0xff] %v6928_v41  ;;  %v5547_v1 = vpop.eup %5546  ;;  %v6930_v6 = vpop.f32.mrf.mxu0 }
 0x87e   :  { %7692 = vst [vmem:[#allocation20_spill] sm:$0xff] %v6930_v6  ;;  %v6932_v22 = vpop.f32.mrf.mxu1  ;;  %v5549_v32 = vpop.eup %5548  ;;  %v2328_v28 = vmul.f32 %v5547_v1, %v6779_v4  ;;  %v7698_v4 = vsub.s32 2, %v7695_v0  ;;  %v7699_v1 = vsub.s32 1, %v7695_v0 }
 0x87f   :  { %7693 = vst [vmem:[#allocation22_spill] sm:$0xff] %v6932_v22  ;;  %v5551_v35 = vpop.eup %5550  ;;  %v6938_v29 = vpop.f32.mrf.mxu0  ;;  %v2323_v8 = vadd.f32 1.0, %v5549_v32 }
 0x880   :  { %v6940_v10 = vpop.f32.mrf.mxu1  ;;  %v2332_v44 = vadd.f32 %v2330_v42, %v2328_v28  ;;  %v2331_v30 = vmul.f32 %v5551_v35, %v5545_v27  ;;  %v6948_v14 = vrot.slane %v2397_v19, %v7698_v4  ;;  %v6953_v42 = vrot.slane %v2397_v19, %v7699_v1 }
 0x881   :  { %7694 = vst [vmem:[#allocation23_spill] sm:$0xff] %v6940_v10  ;;  %v5553_v40 = vpop.eup %5552  ;;  %v2671_v15 = vpop.f32.mrf.mxu0  ;;  %v7701_v27 = vsub.s32 3, %v7695_v0 }
 0x882   :  { %v2784_v37 = vpop.f32.mrf.mxu1  ;;  %5556 = vtanh.f32 %v2332_v44  ;;  %v2329_v39 = vmul.f32 %v5553_v40, %v6782_v20  ;;  %7700 = vst [vmem:[#allocation24_spill] sm:$0xff] %v6953_v42  ;;  %v2672_v32 = vadd.f32 %v2671_v15, %v6944_v52 }
 0x883   :  { %v6957_v2 = vrot.slane %v2397_v19, %v7701_v27  ;;  %v2673_v28 = vpop.f32.mrf.mxu0  ;;  %v2785_v4 = vadd.f32 %v2784_v37, %v6948_v14  ;;  %5558 = vrcp.f32 %v2323_v8 }
 0x884   :  { %v2786_v35 = vpop.f32.mrf.mxu1  ;;  %v2333_v31 = vadd.f32 %v2331_v30, %v2329_v39  ;;  %v2674_v22 = vadd.f32 %v2673_v28, %v6953_v42 }
 0x885   :  { %7702 = vst [vmem:[#allocation26_spill] sm:$0xff] %v6957_v2  ;;  %v2787_v44 = vadd.f32 %v2786_v35, %v6957_v2  ;;  %v2675_v20 = vpop.f32.mrf.mxu0 }
 0x886   :  { %v2788_v40 = vpop.f32.mrf.mxu1  ;;  %5560 = vtanh.f32 %v2333_v31  ;;  %v6963_v1 = vpack.c.bf16 %v2674_v22, %v2672_v32  ;;  %v2676_v15 = vadd.f32 %v2675_v20, %v6944_v52 }
 0x887   :  { %v6965_v0 = vpack.c.bf16 %v2787_v44, %v2785_v4  ;;  %v2677_v19 = vpop.f32.mrf.mxu0  ;;  %v2789_v30 = vadd.f32 %v2788_v40, %v6948_v14 }
 0x888   :  { %7703 = vst [vmem:[#allocation27_spill] sm:$0xff] %v6963_v1  ;;  %v2790_v27 = vpop.f32.mrf.mxu1  ;;  %v2678_v37 = vadd.f32 %v2677_v19, %v6953_v42 }
 0x889   :  { %7704 = vst [vmem:[#allocation29_spill] sm:$0xff] %v6965_v0  ;;  %v2791_v39 = vadd.f32 %v2790_v27, %v6957_v2  ;;  %v2681_v28 = vpop.f32.mrf.mxu0  ;;  %v5555_v0 = vpop.eup %5554 }
 0x88a   :  { %v2794_v35 = vpop.f32.mrf.mxu1  ;;  %v6971_v8 = vpack.c.bf16 %v2678_v37, %v2676_v15  ;;  %v2682_v31 = vadd.f32 %v2681_v28, %v6944_v52 }
 0x88b   :  { %v6973_v10 = vpack.c.bf16 %v2791_v39, %v2789_v30  ;;  %v2683_v22 = vpop.f32.mrf.mxu0  ;;  %v2795_v4 = vadd.f32 %v2794_v35, %v6948_v14 }
 0x88c   :  { %7705 = vst [vmem:[#allocation28_spill] sm:$0xff] %v6971_v8  ;;  %v2796_v32 = vpop.f32.mrf.mxu1  ;;  %v2684_v44 = vadd.f32 %v2683_v22, %v6953_v42 }
 0x88d   :  { %7706 = vst [vmem:[#allocation30_spill] sm:$0xff] %v6973_v10  ;;  %v2797_v20 = vadd.f32 %v2796_v32, %v6957_v2  ;;  %v2685_v40 = vpop.f32.mrf.mxu0 }
 0x88e   :  { %v2798_v19 = vpop.f32.mrf.mxu1  ;;  %v6979_v27 = vpack.c.bf16 %v2684_v44, %v2682_v31  ;;  %v2686_v30 = vadd.f32 %v2685_v40, %v6944_v52 }
 0x88f   :  { %v6981_v1 = vpack.c.bf16 %v2797_v20, %v2795_v4  ;;  %v5557_v15 = vpop.eup %5556  ;;  %v2687_v37 = vpop.f32.mrf.mxu0  ;;  %v2799_v28 = vadd.f32 %v2798_v19, %v6948_v14 }
 0x890   :  { %7707 = vst [vmem:[#allocation31_spill] sm:$0xff] %v6979_v27  ;;  %v2800_v39 = vpop.f32.mrf.mxu1  ;;  %v2336_v10 = vmul.f32 %v5557_v15, %v5555_v0  ;;  %v2688_v35 = vadd.f32 %v2687_v37, %v6953_v42  ;;  %v5559_v36 = vpop.eup %5558 }
 0x891   :  { %7708 = vst [vmem:[#allocation33_spill] sm:$0xff] %v6981_v1  ;;  %v2801_v22 = vadd.f32 %v2800_v39, %v6957_v2  ;;  %v2691_v32 = vpop.f32.mrf.mxu0 }
 0x892   :  { %v2804_v8 = vpop.f32.mrf.mxu1  ;;  %v6987_v41 = vpack.c.bf16 %v2688_v35, %v2686_v30  ;;  %v2692_v44 = vadd.f32 %v2691_v32, %v6944_v52 }
 0x893   :  { %v6989_v31 = vpack.c.bf16 %v2801_v22, %v2799_v28  ;;  %v5561_v4 = vpop.eup %5560  ;;  %v2693_v20 = vpop.f32.mrf.mxu0  ;;  %v2805_v0 = vadd.f32 %v2804_v8, %v6948_v14 }
 0x894   :  { %v2806_v40 = vpop.f32.mrf.mxu1  ;;  %v2337_v1 = vmul.f32 %v5561_v4, %v5559_v36  ;;  %v2694_v19 = vadd.f32 %v2693_v20, %v6953_v42 }
 0x895   :  { %v2807_v15 = vadd.f32 %v2806_v40, %v6957_v2  ;;  %v2695_v37 = vpop.f32.mrf.mxu0 }
 0x896   :  { %v2808_v39 = vpop.f32.mrf.mxu1  ;;  %v5081_v27 = vpack.c.bf16 %v2337_v1, %v2336_v10  ;;  %v6995_v6 = vpack.c.bf16 %v2694_v19, %v2692_v44  ;;  %v2696_v22 = vadd.f32 %v2695_v37, %v6944_v52 }
 0x897   :  { %v6997_v30 = vpack.c.bf16 %v2807_v15, %v2805_v0  ;;  %v2697_v28 = vpop.f32.mrf.mxu0  ;;  %v2809_v36 = vadd.f32 %v2808_v39, %v6948_v14 }
 0x898   :  { %v2810_v35 = vpop.f32.mrf.mxu1  ;;  %5082 = vst [vmem:[#allocation2 + $0x38] sm:$0xff] %v5081_v27   ;;  %v2698_v8 = vadd.f32 %v2697_v28, %v6953_v42 }
 0x899   :  { %7709 = vst [vmem:[#allocation32_spill] sm:$0xff] %v6997_v30  ;;  %v2811_v32 = vadd.f32 %v2810_v35, %v6957_v2  ;;  %v2701_v4 = vpop.f32.mrf.mxu0 }
 0x89a   :  { %v2814_v20 = vpop.f32.mrf.mxu1  ;;  %v7003_v40 = vpack.c.bf16 %v2698_v8, %v2696_v22  ;;  %v2702_v0 = vadd.f32 %v2701_v4, %v6944_v52 }
 0x89b   :  { %v7005_v10 = vpack.c.bf16 %v2811_v32, %v2809_v36  ;;  %v2703_v1 = vpop.f32.mrf.mxu0  ;;  %v2815_v27 = vadd.f32 %v2814_v20, %v6948_v14 }
 0x89c   :  { %7710 = vst [vmem:[#allocation34_spill] sm:$0xff] %v7003_v40  ;;  %v2816_v44 = vpop.f32.mrf.mxu1  ;;  %v2704_v19 = vadd.f32 %v2703_v1, %v6953_v42 }
 0x89d   :  { %7711 = vst [vmem:[#allocation35_spill] sm:$0xff] %v7005_v10  ;;  %v2817_v15 = vadd.f32 %v2816_v44, %v6957_v2  ;;  %v2705_v37 = vpop.f32.mrf.mxu0 }
 0x89e   :  { %v2818_v39 = vpop.f32.mrf.mxu1  ;;  %v7011_v28 = vpack.c.bf16 %v2704_v19, %v2702_v0  ;;  %v2706_v32 = vadd.f32 %v2705_v37, %v6944_v52 }
 0x89f   :  { %v7013_v35 = vpack.c.bf16 %v2817_v15, %v2815_v27  ;;  %v2707_v22 = vpop.f32.mrf.mxu0  ;;  %v5296_v36 = vld [vmem:[#allocation2 + $0x38] sm:$0xff]   ;;  %v2819_v10 = vadd.f32 %v2818_v39, %v6948_v14 }
 0x8a0   :  { %7712 = vst [vmem:[#allocation37_spill] sm:$0xff] %v7011_v28  ;;  %v2820_v8 = vpop.f32.mrf.mxu1  ;;  %v2708_v4 = vadd.f32 %v2707_v22, %v6953_v42  ;;  %2730 = vmatmul.mubr.bf16.gmra.mxu0 %v5296_v36  ;;  %2843 = vmatmul.mubr.bf16.gmra.mxu1 %v5296_v36 }
 0x8a1   :  { %7713 = vst [vmem:[#allocation36_spill] sm:$0xff] %v7013_v35  ;;  %v2821_v20 = vadd.f32 %v2820_v8, %v6957_v2  ;;  %v2711_v1 = vpop.f32.mrf.mxu0  ;;  %3313 = vmatprep.mubr.bf16.mxu0 %v7668_v61  ;;  %3356 = vmatprep.mubr.bf16.mxu1 %v7668_v61 }
 0x8a2   :  { %v2824_v30 = vpop.f32.mrf.mxu1  ;;  %v7019_v44 = vpack.c.bf16 %v2708_v4, %v2706_v32  ;;  %v2712_v15 = vadd.f32 %v2711_v1, %v6944_v52 }
 0x8a3   :  { %v7021_v0 = vpack.c.bf16 %v2821_v20, %v2819_v10  ;;  %v2713_v27 = vpop.f32.mrf.mxu0  ;;  %v2825_v37 = vadd.f32 %v2824_v30, %v6948_v14 }
 0x8a4   :  { %7714 = vst [vmem:[#allocation38_spill] sm:$0xff] %v7019_v44  ;;  %v2826_v19 = vpop.f32.mrf.mxu1  ;;  %v2714_v39 = vadd.f32 %v2713_v27, %v6953_v42 }
 0x8a5   :  { %7715 = vst [vmem:[#allocation39_spill] sm:$0xff] %v7021_v0  ;;  %v2827_v22 = vadd.f32 %v2826_v19, %v6957_v2  ;;  %v2715_v8 = vpop.f32.mrf.mxu0 }
 0x8a6   :  { %v2828_v36 = vpop.f32.mrf.mxu1  ;;  %v7029_v32 = vpack.c.bf16 %v2714_v39, %v2712_v15  ;;  %v2716_v0 = vadd.f32 %v2715_v8, %v6944_v52 }
 0x8a7   :  { %v7031_v10 = vpack.c.bf16 %v2827_v22, %v2825_v37  ;;  %v2717_v4 = vpop.f32.mrf.mxu0  ;;  %v2829_v35 = vadd.f32 %v2828_v36, %v6948_v14 }
 0x8a8   :  { %7716 = vst [vmem:[#allocation18_spill] sm:$0xff] %v7029_v32  ;;  %v2830_v20 = vpop.f32.mrf.mxu1  ;;  %v2718_v1 = vadd.f32 %v2717_v4, %v6953_v42  ;;  %3314 = vmatmul.mubr.bf16.vlgmr.msra.gmra.mxu0 %v7668_v61  ;;  %3357 = vmatmul.mubr.bf16.vlgmr.msra.gmra.mxu1 %v7668_v61 }
 0x8a9   :  { %7717 = vst [vmem:[#allocation40_spill] sm:$0xff] %v7031_v10  ;;  %v2831_v30 = vadd.f32 %v2830_v20, %v6957_v2  ;;  %v2721_v44 = vpop.f32.mrf.mxu0  ;;  %3451 = vmatpush1.bf16.msra.mxu0 %v6806_v43  ;;  %3494 = vmatpush1.bf16.msra.mxu1 %v6808_v24  ;;  %v3595_v20 = vsel %vm3593_vm3, 1, %v7668_v61  ;;  %vm4269_vm3 = vcmp.eq.s32.totalorder %v6908_v21, 5 }
 0x8aa   :  { %v2834_v27 = vpop.f32.mrf.mxu1  ;;  %v7039_v19 = vpack.c.bf16 %v2718_v1, %v2716_v0  ;;  %v2722_v37 = vadd.f32 %v2721_v44, %v6944_v52  ;;  %3452 = vmatprep.subr.bf16.mxu0 %v6814_v34  ;;  %3495 = vmatprep.subr.bf16.mxu1 %v6816_v18  ;;  %v3594_v0 = vsel %vm3592_vm2, 1, %v7668_v61  ;;  %vm4268_vm2 = vcmp.eq.s32.totalorder %v6906_v3, 5 }
 0x8ab   :  { %v7041_v15 = vpack.c.bf16 %v2831_v30, %v2829_v35  ;;  %v2723_v39 = vpop.f32.mrf.mxu0  ;;  %v2835_v8 = vadd.f32 %v2834_v27, %v6948_v14  ;;  %3482 = vmatprep.mubr.bf16.mxu0 %v7668_v61  ;;  %3525 = vmatprep.mubr.bf16.mxu1 %v7668_v61  ;;  %v2664_v27 = vadd.f32 %v6926_v11, %v6953_v42 }
 0x8ac   :  { %7718 = vst [vmem:[#allocation41_spill] sm:$0xff] %v7039_v19  ;;  %v2836_v22 = vpop.f32.mrf.mxu1  ;;  %v2724_v36 = vadd.f32 %v2723_v39, %v6953_v42  ;;  %3597 = vperm.xlu1 %5097, %v3594_v0   ;;  %v2668_v0 = vadd.f32 %v6938_v29, %v6953_v42 }
 0x8ad   :  { %7719 = vst [vmem:[#allocation42_spill] sm:$0xff] %v7041_v15  ;;  %v2837_v4 = vadd.f32 %v2836_v22, %v6957_v2  ;;  %3453 = vmatpush1.bf16.msra.mxu0 %v6818_v33  ;;  %3496 = vmatpush1.bf16.msra.mxu1 %v6820_v25  ;;  %v7089_v1 = vpop.f32.mrf.mxu0  ;;  %v2662_v22 = vadd.f32 %v6922_v38, %v6944_v52 }
 0x8ae   :  { %v7053_v35 = vpack.c.bf16 %v2724_v36, %v2722_v37  ;;  %3454 = vmatprep.subr.bf16.mxu0 %v6826_v23  ;;  %3497 = vmatprep.subr.bf16.mxu1 %v6828_v16  ;;  %7722 = vst [vmem:[#allocation45_spill] sm:$0xff] %v7089_v1  ;;  %v7091_v30 = vpop.f32.mrf.mxu1 }
 0x8af   :  { %v7055_v44 = vpack.c.bf16 %v2837_v4, %v2835_v8  ;;  %7723 = vst [vmem:[#allocation46_spill] sm:$0xff] %v7091_v30  ;;  %v7095_v37 = vpop.f32.mrf.mxu0  ;;  %v5011_v4 = vpack.c.bf16 %v2664_v27, %v2662_v22 }
 0x8b0   :  { %7720 = vst [vmem:[#allocation43_spill] sm:$0xff] %v7053_v35  ;;  %3600 = vperm.xlu1 %5097, %v3595_v20   ;;  %7724 = vst [vmem:[#allocation47_spill] sm:$0xff] %v7095_v37  ;;  %v7097_v39 = vpop.f32.mrf.mxu1 }
 0x8b1   :  { %7721 = vst [vmem:[#allocation44_spill] sm:$0xff] %v7055_v44  ;;  %3455 = vmatpush1.bf16.msra.mxu0 %v6830_v5  ;;  %3498 = vmatpush1.bf16.msra.mxu1 %v6832_v9  ;;  %7725 = vst [vmem:[#allocation48_spill] sm:$0xff] %v7097_v39  ;;  %v7726_v39 = vld [vmem:[#allocation20_spill] sm:$0xff]  ;;  %v3113_v32 = vunpack.c.l.bf16 %v5011_v4 }
 0x8b2   :  { %3456 = vmatprep.subr.bf16.mxu0 %v6838_v26  ;;  %3499 = vmatprep.subr.bf16.mxu1 %v6840_v45  ;;  %v2666_v37 = vadd.f32 %v7726_v39, %v6944_v52 }
 0x8b4   :  { %v5013_v29 = vpack.c.bf16 %v2668_v0, %v2666_v37 }
 0x8b5   :  { %3457 = vmatpush1.bf16.msra.mxu0 %v6842_v46  ;;  %3500 = vmatpush1.bf16.msra.mxu1 %v6844_v47 }
 0x8b6   :  { %3458 = vmatprep.subr.bf16.mxu0 %v6847_v13  ;;  %3501 = vmatprep.subr.bf16.mxu1 %v6857_v50 }
 0x8b9   :  { %3459 = vmatpush1.bf16.msra.mxu0 %v6851_v48  ;;  %3502 = vmatpush1.bf16.msra.mxu1 %v6859_v51 }
 0x8ba   :  { %3460 = vmatprep.subr.bf16.mxu0 %v6855_v49  ;;  %3503 = vmatprep.subr.bf16.mxu1 %v6869_v55 }
 0x8bd   :  { %3461 = vmatpush1.bf16.msra.mxu0 %v6863_v53  ;;  %3504 = vmatpush1.bf16.msra.mxu1 %v6871_v56 }
 0x8be   :  { %3462 = vmatprep.subr.bf16.mxu0 %v6867_v54  ;;  %3505 = vmatprep.subr.bf16.mxu1 %v6879_v57 }
 0x8c1   :  { %3463 = vmatpush1.bf16.msra.mxu0 %v6875_v12  ;;  %3506 = vmatpush1.bf16.msra.mxu1 %v6881_v58 }
 0x8c2   :  { %3464 = vmatprep.subr.bf16.mxu0 %v6886_v59  ;;  %3507 = vmatprep.subr.bf16.mxu1 %v6890_v62 }
 0x8c5   :  { %3465 = vmatpush1.bf16.msra.mxu0 %v6888_v60  ;;  %3508 = vmatpush1.bf16.msra.mxu1 %v6892_v63 }
 0x8c6   :  { %3619 = vmatprep.subr.bf16.mxu0 %v6802_v17  ;;  %3662 = vmatprep.subr.bf16.mxu1 %v6804_v7 }
 0x960   :  { %v2731_v8 = vpop.f32.mrf.mxu0  ;;  %v2844_v36 = vpop.f32.mrf.mxu1 }
 0x961   :  { %v2732_v30 = vadd.f32 %v2731_v8, %v6944_v52  ;;  %v2845_v35 = vadd.f32 %v2844_v36, %v6948_v14 }
 0x962   :  { %v2733_v20 = vpop.f32.mrf.mxu0  ;;  %v2846_v44 = vpop.f32.mrf.mxu1 }
 0x963   :  { %v2734_v11 = vadd.f32 %v2733_v20, %v6953_v42  ;;  %v2847_v1 = vadd.f32 %v2846_v44, %v6957_v2 }
 0x964   :  { %v2735_v38 = vpop.f32.mrf.mxu0  ;;  %v2848_v15 = vpop.f32.mrf.mxu1 }
 0x965   :  { %v7109_v10 = vpack.c.bf16 %v2734_v11, %v2732_v30  ;;  %v7111_v27 = vpack.c.bf16 %v2847_v1, %v2845_v35  ;;  %v2736_v8 = vadd.f32 %v2735_v38, %v6944_v52  ;;  %v2849_v36 = vadd.f32 %v2848_v15, %v6948_v14  ;;  %v7731_v38 = vld [vmem:[#allocation21_spill] sm:$0xff] }
 0x966   :  { %v2737_v22 = vpop.f32.mrf.mxu0  ;;  %v2850_v19 = vpop.f32.mrf.mxu1  ;;  %v3114_v1 = vunpack.c.h.bf16 %v5011_v4 }
 0x967   :  { %7727 = vst [vmem:[#allocation20_spill] sm:$0xff] %v7109_v10  ;;  %7728 = vst [vmem:[#allocation49_spill] sm:$0xff] %v7111_v27  ;;  %v2738_v20 = vadd.f32 %v2737_v22, %v6953_v42  ;;  %v2851_v44 = vadd.f32 %v2850_v19, %v6957_v2  ;;  %v3117_v27 = vunpack.c.l.bf16 %v5013_v29  ;;  %v2777_v10 = vadd.f32 %v7731_v38, %v6957_v2 }
 0x968   :  { %v3315_v28 = vpop.f32.mrf.mxu0  ;;  %v3358_v35 = vpop.f32.mrf.mxu1  ;;  %v3118_v42 = vunpack.c.h.bf16 %v5013_v29 }
 0x969   :  { %v7117_v39 = vpack.c.bf16 %v2738_v20, %v2736_v8  ;;  %v7119_v40 = vpack.c.bf16 %v2851_v44, %v2849_v36  ;;  %v3367_v30 = vadd.f32 %v3315_v28, %v3113_v32  ;;  %v7732_v8 = vld [vmem:[#allocation19_spill] sm:$0xff] }
 0x96a   :  { %v3317_v37 = vpop.f32.mrf.mxu0  ;;  %v3360_v52 = vpop.f32.mrf.mxu1  ;;  %v2775_v36 = vadd.f32 %v7732_v8, %v6948_v14  ;;  %v7733_v28 = vld [vmem:[#allocation23_spill] sm:$0xff] }
 0x96b   :  { %7729 = vst [vmem:[#allocation50_spill] sm:$0xff] %v7117_v39  ;;  %7730 = vst [vmem:[#allocation51_spill] sm:$0xff] %v7119_v40  ;;  %v4915_v0 = vmul.f32 -1.442695, %v3367_v30  ;;  %v3368_v11 = vadd.f32 %v3317_v37, %v3114_v1  ;;  %v2781_v32 = vadd.f32 %v7733_v28, %v6957_v2  ;;  %v7734_v1 = vld [vmem:[#allocation22_spill] sm:$0xff] }
 0x96c   :  { %v3319_v15 = vpop.f32.mrf.mxu0  ;;  %v5012_v30 = vpack.c.bf16 %v2777_v10, %v2775_v36  ;;  %v2779_v37 = vadd.f32 %v7734_v1, %v6948_v14 }
 0x96d   :  { %5562 = vpow2.f32 %v4915_v0  ;;  %v4917_v22 = vmul.f32 -1.442695, %v3368_v11  ;;  %v3371_v19 = vadd.f32 %v3319_v15, %v3117_v27  ;;  %v3362_v0 = vpop.f32.mrf.mxu1 }
 0x96e   :  { %v3321_v4 = vpop.f32.mrf.mxu0  ;;  %v5014_v38 = vpack.c.bf16 %v2781_v32, %v2779_v37  ;;  %v3116_v27 = vunpack.c.h.bf16 %v5012_v30  ;;  %v3115_v15 = vunpack.c.l.bf16 %v5012_v30 }
 0x96f   :  { %5564 = vpow2.f32 %v4917_v22  ;;  %v4916_v20 = vmul.f32 -1.442695, %v3371_v19  ;;  %v3372_v44 = vadd.f32 %v3321_v4, %v3118_v42  ;;  %v3364_v29 = vpop.f32.mrf.mxu1 }
 0x970   :  { %v3370_v8 = vadd.f32 %v3360_v52, %v3116_v27  ;;  %v3120_v40 = vunpack.c.h.bf16 %v5014_v38  ;;  %v3369_v39 = vadd.f32 %v3358_v35, %v3115_v15  ;;  %v3119_v10 = vunpack.c.l.bf16 %v5014_v38 }
 0x971   :  { %5566 = vpow2.f32 %v4916_v20  ;;  %v4918_v11 = vmul.f32 -1.442695, %v3372_v44 }
 0x972   :  { %v3374_v28 = vadd.f32 %v3364_v29, %v3120_v40  ;;  %v4919_v22 = vmul.f32 -1.442695, %v3370_v8  ;;  %v3373_v32 = vadd.f32 %v3362_v0, %v3119_v10 }
 0x973   :  { %5568 = vpow2.f32 %v4918_v11 }
 0x974   :  { %5570 = vtanh.f32 %v3369_v39  ;;  %v4920_v36 = vmul.f32 -1.442695, %v3374_v28 }
 0x97a   :  { %v5563_v2 = vpop.eup %5562 }
 0x97b   :  { %v3381_v19 = vadd.f32 1.0, %v5563_v2 }
 0x97c   :  { %v5565_v42 = vpop.eup %5564 }
 0x97d   :  { %5572 = vrcp.f32 %v3381_v19  ;;  %v3393_v4 = vadd.f32 1.0, %v5565_v42 }
 0x97e   :  { %v5567_v20 = vpop.eup %5566  ;;  %5574 = vpow2.f32 %v4919_v22 }
 0x97f   :  { %5576 = vrcp.f32 %v3393_v4  ;;  %v3382_v44 = vadd.f32 1.0, %v5567_v20 }
 0x980   :  { %v5569_v1 = vpop.eup %5568  ;;  %5578 = vpow2.f32 %v4920_v36 }
 0x981   :  { %5580 = vrcp.f32 %v3382_v44  ;;  %v3394_v52 = vadd.f32 1.0, %v5569_v1  ;;  %v5571_v40 = vpop.eup %5570 }
 0x982   :  { %5582 = vtanh.f32 %v3373_v32 }
 0x983   :  { %5584 = vrcp.f32 %v3394_v52 }
 0x98a   :  { %v5573_v35 = vpop.eup %5572 }
 0x98b   :  { %v5575_v2 = vpop.eup %5574  ;;  %v3415_v30 = vmul.f32 %v5573_v35, %v5571_v40 }
 0x98c   :  { %v5577_v39 = vpop.eup %5576  ;;  %v3407_v27 = vadd.f32 1.0, %v5575_v2 }
 0x98d   :  { %v5579_v37 = vpop.eup %5578  ;;  %v3413_v11 = vmul.f32 0.0, %v5577_v39 }
 0x98e   :  { %v5581_v38 = vpop.eup %5580  ;;  %v3408_v8 = vadd.f32 1.0, %v5579_v37  ;;  %5586 = vrcp.f32 %v3407_v27 }
 0x98f   :  { %v5583_v29 = vpop.eup %5582  ;;  %v7129_v15 = vadd.f32 %v3415_v30, %v3413_v11 }
 0x990   :  { %v5585_v0 = vpop.eup %5584  ;;  %v3416_v22 = vmul.f32 %v5583_v29, %v5581_v38 }
 0x991   :  { %v3414_v28 = vmul.f32 0.0, %v5585_v0  ;;  %5588 = vtanh.f32 %v7129_v15 }
 0x992   :  { %5590 = vrcp.f32 %v3408_v8 }
 0x993   :  { %v7132_v19 = vadd.f32 %v3416_v22, %v3414_v28 }
 0x995   :  { %5592 = vtanh.f32 %v7132_v19 }
 0x99b   :  { %v5587_v42 = vpop.eup %5586 }
 0x99e   :  { %v5589_v10 = vpop.eup %5588 }
 0x99f   :  { %v5591_v36 = vpop.eup %5590  ;;  %v7135_v20 = vmul.f32 %v5589_v10, %v5587_v42 }
 0x9a2   :  { %v5593_v4 = vpop.eup %5592 }
 0x9a3   :  { %v7137_v32 = vmul.f32 %v5593_v4, %v5591_v36 }
 0x9a5   :  { %v3437_v44 = vpack.c.bf16 %v7137_v32, %v7135_v20 }
 0x9a7   :  { %3483 = vmatmul.mubr.bf16.vlgmr.msra.gmra.mxu0 %v3437_v44  ;;  %3526 = vmatmul.mubr.bf16.vlgmr.msra.gmra.mxu1 %v3437_v44 }
 0x9a8   :  { %3620 = vmatpush1.bf16.msra.mxu0 %v6806_v43  ;;  %3663 = vmatpush1.bf16.msra.mxu1 %v6808_v24  ;;  %v3763_v43 = vsel %vm3761_vm4, 1, %v7668_v61  ;;  %v3764_v24 = vsel %vm3762_vm5, 1, %v7668_v61 }
 0x9a9   :  { %3621 = vmatprep.subr.bf16.mxu0 %v6814_v34  ;;  %3664 = vmatprep.subr.bf16.mxu1 %v6816_v18  ;;  %v7735_v34 = vld [vmem:[#allocation27_spill] sm:$0xff] }
 0x9aa   :  { %3651 = vmatprep.mubr.bf16.mxu0 %v7668_v61  ;;  %3694 = vmatprep.mubr.bf16.mxu1 %v7668_v61  ;;  %v3442_v18 = vunpack.c.l.bf16 %v7735_v34 }
 0x9ab   :  { %3766 = vperm.xlu0 %5096, %v3763_v43   ;;  %3769 = vperm.xlu1 %5097, %v3764_v24  }
 0x9ac   :  { %3622 = vmatpush1.bf16.msra.mxu0 %v6818_v33  ;;  %3665 = vmatpush1.bf16.msra.mxu1 %v6820_v25 }
 0x9ad   :  { %3623 = vmatprep.subr.bf16.mxu0 %v6826_v23  ;;  %3666 = vmatprep.subr.bf16.mxu1 %v6828_v16  ;;  %v3443_v16 = vunpack.c.h.bf16 %v7735_v34 }
 0x9b0   :  { %3624 = vmatpush1.bf16.msra.mxu0 %v6830_v5  ;;  %3667 = vmatpush1.bf16.msra.mxu1 %v6832_v9  ;;  %v7736_v9 = vld [vmem:[#allocation28_spill] sm:$0xff] }
 0x9b1   :  { %3625 = vmatprep.subr.bf16.mxu0 %v6838_v26  ;;  %3668 = vmatprep.subr.bf16.mxu1 %v6840_v45  ;;  %v3446_v26 = vunpack.c.l.bf16 %v7736_v9 }
 0x9b4   :  { %3626 = vmatpush1.bf16.msra.mxu0 %v6842_v46  ;;  %3669 = vmatpush1.bf16.msra.mxu1 %v6844_v47 }
 0x9b5   :  { %3627 = vmatprep.subr.bf16.mxu0 %v6847_v13  ;;  %3670 = vmatprep.subr.bf16.mxu1 %v6857_v50 }
 0x9b8   :  { %3628 = vmatpush1.bf16.msra.mxu0 %v6851_v48  ;;  %3671 = vmatpush1.bf16.msra.mxu1 %v6859_v51  ;;  %v3447_v48 = vunpack.c.h.bf16 %v7736_v9 }
 0x9b9   :  { %3629 = vmatprep.subr.bf16.mxu0 %v6855_v49  ;;  %3672 = vmatprep.subr.bf16.mxu1 %v6869_v55  ;;  %v7737_v55 = vld [vmem:[#allocation29_spill] sm:$0xff] }
 0x9bc   :  { %3630 = vmatpush1.bf16.msra.mxu0 %v6863_v53  ;;  %3673 = vmatpush1.bf16.msra.mxu1 %v6871_v56  ;;  %v3445_v56 = vunpack.c.h.bf16 %v7737_v55 }
 0x9bd   :  { %3631 = vmatprep.subr.bf16.mxu0 %v6867_v54  ;;  %3674 = vmatprep.subr.bf16.mxu1 %v6879_v57  ;;  %v3444_v57 = vunpack.c.l.bf16 %v7737_v55  ;;  %v7218_v55 = vld [vmem:[#allocation12 + $0xc8] ss:$16 sps:$4 sm:$0xff]  }
 0x9c0   :  { %3632 = vmatpush1.bf16.msra.mxu0 %v6875_v12  ;;  %3675 = vmatpush1.bf16.msra.mxu1 %v6881_v58 }
 0x9c1   :  { %3633 = vmatprep.subr.bf16.mxu0 %v6886_v59  ;;  %3676 = vmatprep.subr.bf16.mxu1 %v6890_v62  ;;  %v7738_v59 = vld [vmem:[#allocation30_spill] sm:$0xff] }
 0x9c2   :  { %v3448_v1 = vunpack.c.l.bf16 %v7738_v59 }
 0x9c4   :  { %3634 = vmatpush1.bf16.msra.mxu0 %v6888_v60  ;;  %3677 = vmatpush1.bf16.msra.mxu1 %v6892_v63  ;;  %v3449_v60 = vunpack.c.h.bf16 %v7738_v59  ;;  %v7233_v59 = vld [vmem:[#allocation12 + $0x84] ss:$16 sps:$4 sm:$0xff]  }
 0x9c5   :  { %3788 = vmatprep.subr.bf16.mxu0 %v6802_v17  ;;  %3831 = vmatprep.subr.bf16.mxu1 %v6804_v7 }
 0xa67   :  { %v3484_v33 = vpop.f32.mrf.mxu0  ;;  %v3527_v23 = vpop.f32.mrf.mxu1 }
 0xa68   :  { %v3536_v25 = vadd.f32 %v3484_v33, %v3442_v18  ;;  %v3538_v62 = vadd.f32 %v3527_v23, %v3444_v57  ;;  %v7227_v57 = vld [vmem:[#allocation12 + $0xa0] ss:$16 sps:$4 sm:$0xff]  }
 0xa69   :  { %v3486_v17 = vpop.f32.mrf.mxu0  ;;  %v3529_v47 = vpop.f32.mrf.mxu1 }
 0xa6a   :  { %v4921_v5 = vmul.f32 -1.442695, %v3536_v25  ;;  %v3537_v7 = vadd.f32 %v3486_v17, %v3443_v16  ;;  %v3539_v12 = vadd.f32 %v3529_v47, %v3445_v56  ;;  %v3429_v16 = vpop.permute.xlu0 %3428  ;;  %v3598_v17 = vpop.permute.xlu1 %3597  ;;  %v7221_v56 = vld [vmem:[#allocation12 + $0xa4] ss:$16 sps:$4 sm:$0xff]  }
 0xa6b   :  { %v3488_v45 = vpop.f32.mrf.mxu0  ;;  %v3531_v53 = vpop.f32.mrf.mxu1  ;;  %vm3433_vm6 = vcmp.eq.s32.totalorder %v3429_v16, 1  ;;  %vm3602_vm7 = vcmp.eq.s32.totalorder %v3598_v17, 1 }
 0xa6c   :  { %5594 = vpow2.f32 %v4921_v5  ;;  %v4923_v46 = vmul.f32 -1.442695, %v3537_v7  ;;  %v3540_v13 = vadd.f32 %v3488_v45, %v3446_v26  ;;  %v4925_v63 = vmul.f32 -1.442695, %v3539_v12  ;;  %v7224_v12 = vld [vmem:[#allocation12 + $0xac] ss:$16 sps:$4 sm:$0xff]  }
 0xa6d   :  { %v3490_v49 = vpop.f32.mrf.mxu0  ;;  %v3533_v58 = vpop.f32.mrf.mxu1  ;;  %v3542_v35 = vadd.f32 %v3531_v53, %v3448_v1  ;;  %v3435_v45 = vsel %vm3433_vm6, %v7135_v20, 0.0  ;;  %v7204_v53 = vld [vmem:[#allocation12 + $0xe8] ss:$16 sps:$4 sm:$0xff]   ;;  %v7207_v20 = vld [vmem:[#allocation12 + $0xc4] ss:$16 sps:$4 sm:$0xff]   ;;  %vm4437_vm6 = vcmp.eq.s32.totalorder %v6906_v3, 6 }
 0xa6e   :  { %5596 = vpow2.f32 %v4923_v46  ;;  %v4922_v50 = vmul.f32 -1.442695, %v3540_v13  ;;  %v3541_v51 = vadd.f32 %v3490_v49, %v3447_v48  ;;  %v3543_v52 = vadd.f32 %v3533_v58, %v3449_v60  ;;  %v3432_v7 = vpop.permute.xlu0 %3431  ;;  %v3601_v26 = vpop.permute.xlu1 %3600  ;;  %v7230_v58 = vld [vmem:[#allocation12 + $0xa8] ss:$16 sps:$4 sm:$0xff]   ;;  %v7236_v60 = vld [vmem:[#allocation12 + $0x8c] ss:$16 sps:$4 sm:$0xff]  }
 0xa6f   :  { %vm3434_vm8 = vcmp.eq.s32.totalorder %v3432_v7, 1  ;;  %vm3603_vm9 = vcmp.eq.s32.totalorder %v3601_v26, 1  ;;  %v7245_v1 = vld [vmem:[#allocation12 + $0x64] ss:$16 sps:$4 sm:$0xff]  }
 0xa70   :  { %5598 = vpow2.f32 %v4922_v50  ;;  %v4924_v54 = vmul.f32 -1.442695, %v3541_v51  ;;  %v4926_v39 = vmul.f32 -1.442695, %v3543_v52  ;;  %v3436_v48 = vsel %vm3434_vm8, %v7137_v32, 0.0 }
 0xa71   :  { %v7201_v51 = vld [vmem:[#allocation12 + $0xe0] ss:$16 sps:$4 sm:$0xff]   ;;  %v7248_v52 = vld [vmem:[#allocation12 + $0x6c] ss:$16 sps:$4 sm:$0xff]  }
 0xa72   :  { %5600 = vpow2.f32 %v4924_v54  ;;  %v7210_v54 = vld [vmem:[#allocation12 + $0xcc] ss:$16 sps:$4 sm:$0xff]   ;;  %v7215_v32 = vld [vmem:[#allocation12 + $0xc0] ss:$16 sps:$4 sm:$0xff]  }
 0xa73   :  { %5602 = vtanh.f32 %v3538_v62  ;;  %v7239_v62 = vld [vmem:[#allocation12 + $0x80] ss:$16 sps:$4 sm:$0xff]  }
 0xa74   :  { %5604 = vpow2.f32 %v4925_v63  ;;  %v7242_v63 = vld [vmem:[#allocation12 + $0x88] ss:$16 sps:$4 sm:$0xff]  }
 0xa79   :  { %v5595_v40 = vpop.eup %5594 }
 0xa7a   :  { %v3550_v2 = vadd.f32 1.0, %v5595_v40  ;;  %v7251_v40 = vld [vmem:[#allocation12 + $0x60] ss:$16 sps:$4 sm:$0xff]  }
 0xa7b   :  { %v5597_v30 = vpop.eup %5596 }
 0xa7c   :  { %5606 = vrcp.f32 %v3550_v2  ;;  %v3562_v37 = vadd.f32 1.0, %v5597_v30  ;;  %v7257_v2 = vld [vmem:[#allocation12 + $0x44] ss:$16 sps:$4 sm:$0xff]   ;;  %v7260_v30 = vld [vmem:[#allocation12 + $0x4c] ss:$16 sps:$4 sm:$0xff]  }
 0xa7d   :  { %v5599_v11 = vpop.eup %5598  ;;  %5608 = vtanh.f32 %v3542_v35  ;;  %v7254_v35 = vld [vmem:[#allocation12 + $0x68] ss:$16 sps:$4 sm:$0xff]  }
 0xa7e   :  { %5610 = vrcp.f32 %v3562_v37  ;;  %v3551_v38 = vadd.f32 1.0, %v5599_v11  ;;  %v7266_v37 = vld [vmem:[#allocation12 + $0x48] ss:$16 sps:$4 sm:$0xff]   ;;  %v7269_v11 = vld [vmem:[#allocation12 + $0x24] ss:$16 sps:$4 sm:$0xff]  }
 0xa7f   :  { %v5601_v27 = vpop.eup %5600  ;;  %5612 = vpow2.f32 %v4926_v39  ;;  %v7263_v39 = vld [vmem:[#allocation12 + $0x40] ss:$16 sps:$4 sm:$0xff]  }
 0xa80   :  { %5614 = vrcp.f32 %v3551_v38  ;;  %v3563_v29 = vadd.f32 1.0, %v5601_v27  ;;  %v5603_v0 = vpop.eup %5602  ;;  %v7272_v38 = vld [vmem:[#allocation12 + $0x2c] ss:$16 sps:$4 sm:$0xff]   ;;  %v7275_v27 = vld [vmem:[#allocation12 + $0x20] ss:$16 sps:$4 sm:$0xff]  }
 0xa81   :  { %v5605_v8 = vpop.eup %5604 }
 0xa82   :  { %5616 = vrcp.f32 %v3563_v29  ;;  %v3576_v36 = vadd.f32 1.0, %v5605_v8  ;;  %v7278_v29 = vld [vmem:[#allocation12 + $0x28] ss:$16 sps:$4 sm:$0xff]   ;;  %v7284_v8 = vld [vmem:[#allocation12 + $0xc] ss:$16 sps:$4 sm:$0xff]  }
 0xa84   :  { %5618 = vrcp.f32 %v3576_v36  ;;  %v3932_v36 = vsel %vm3930_vm10, 1, %v7668_v61  ;;  %vm4607_vm10 = vcmp.eq.s32.totalorder %v6908_v21, 7 }
 0xa85   :  { %3935 = vperm.xlu0 %5096, %v3932_v36  }
 0xa89   :  { %v5607_v28 = vpop.eup %5606 }
 0xa8a   :  { %v5609_v22 = vpop.eup %5608  ;;  %v3584_v42 = vmul.f32 %v5607_v28, %v5603_v0  ;;  %v7281_v0 = vld [vmem:[#allocation12 + $0x4] ss:$16 sps:$4 sm:$0xff]   ;;  %v7287_v28 = vld [vmem:[#allocation12] ss:$16 sps:$4 sm:$0xff]  }
 0xa8b   :  { %v5611_v10 = vpop.eup %5610 }
 0xa8c   :  { %v5613_v4 = vpop.eup %5612  ;;  %v3582_v44 = vmul.f32 %v5611_v10, %v7129_v15  ;;  %v7296_v10 = vld [vmem:[#allocation12 + $0xec] ss:$16 sps:$4 sm:$0xff]  }
 0xa8d   :  { %v5615_v43 = vpop.eup %5614  ;;  %v3577_v33 = vadd.f32 1.0, %v5613_v4  ;;  %v3933_v4 = vsel %vm3931_vm11, 1, %v7668_v61  ;;  %vm4606_vm11 = vcmp.eq.s32.totalorder %v6906_v3, 7 }
 0xa8e   :  { %v7188_v24 = vadd.f32 %v3584_v42, %v3582_v44  ;;  %v3585_v34 = vmul.f32 %v5615_v43, %v5609_v22  ;;  %v7290_v22 = vld [vmem:[#allocation12 + $0x8] ss:$16 sps:$4 sm:$0xff]   ;;  %v7293_v42 = vld [vmem:[#allocation12 + $0xe4] ss:$16 sps:$4 sm:$0xff]   ;;  %3938 = vperm.xlu1 %5097, %v3933_v4  }
 0xa8f   :  { %v5617_v18 = vpop.eup %5616  ;;  %v7739_v44 = vld [vmem:[#allocation31_spill] sm:$0xff]  ;;  %v7740_v4 = vld [vmem:[#allocation33_spill] sm:$0xff] }
 0xa90   :  { %v3583_v25 = vmul.f32 %v5617_v18, %v7132_v19  ;;  %5620 = vtanh.f32 %v7188_v24  ;;  %v3611_v43 = vunpack.c.l.bf16 %v7739_v44 }
 0xa91   :  { %5622 = vrcp.f32 %v3577_v33  ;;  %v5619_v5 = vpop.eup %5618 }
 0xa92   :  { %v7192_v23 = vadd.f32 %v3585_v34, %v3583_v25  ;;  %v3612_v25 = vunpack.c.h.bf16 %v7739_v44  ;;  %v3614_v44 = vunpack.c.h.bf16 %v7740_v4 }
 0xa94   :  { %5624 = vtanh.f32 %v7192_v23 }
 0xa9d   :  { %v5621_v15 = vpop.eup %5620 }
 0xa9e   :  { %v3590_v9 = vmul.f32 %v5621_v15, %v5619_v5  ;;  %v5623_v46 = vpop.eup %5622  ;;  %v3615_v15 = vunpack.c.l.bf16 %v6987_v41 }
 0xaa0   :  { %v7196_v19 = vsel %vm3602_vm7, %v3590_v9, %v3435_v45  ;;  %vm4438_vm7 = vcmp.eq.s32.totalorder %v6908_v21, 6 }
 0xaa1   :  { %v5625_v47 = vpop.eup %5624 }
 0xaa2   :  { %v3591_v13 = vmul.f32 %v5625_v47, %v5623_v46  ;;  %v3616_v46 = vunpack.c.h.bf16 %v6987_v41  ;;  %v3617_v41 = vunpack.c.l.bf16 %v6989_v31 }
 0xaa4   :  { %v7199_v49 = vsel %vm3603_vm9, %v3591_v13, %v3436_v48  ;;  %v3606_v50 = vpack.c.bf16 %v3591_v13, %v3590_v9 }
 0xaa6   :  { %3652 = vmatmul.mubr.bf16.vlgmr.msra.gmra.mxu0 %v3606_v50  ;;  %3695 = vmatmul.mubr.bf16.vlgmr.msra.gmra.mxu1 %v3606_v50 }
 0xaa7   :  { %3789 = vmatpush1.bf16.msra.mxu0 %v7201_v51  ;;  %3832 = vmatpush1.bf16.msra.mxu1 %v7204_v53 }
 0xaa8   :  { %3790 = vmatprep.subr.bf16.mxu0 %v7207_v20  ;;  %3833 = vmatprep.subr.bf16.mxu1 %v7210_v54 }
 0xaa9   :  { %3820 = vmatprep.mubr.bf16.mxu0 %v7668_v61  ;;  %3863 = vmatprep.mubr.bf16.mxu1 %v7668_v61 }
 0xaab   :  { %3791 = vmatpush1.bf16.msra.mxu0 %v7215_v32  ;;  %3834 = vmatpush1.bf16.msra.mxu1 %v7218_v55 }
 0xaac   :  { %3792 = vmatprep.subr.bf16.mxu0 %v7221_v56  ;;  %3835 = vmatprep.subr.bf16.mxu1 %v7224_v12 }
 0xaaf   :  { %3793 = vmatpush1.bf16.msra.mxu0 %v7227_v57  ;;  %3836 = vmatpush1.bf16.msra.mxu1 %v7230_v58 }
 0xab0   :  { %3794 = vmatprep.subr.bf16.mxu0 %v7233_v59  ;;  %3837 = vmatprep.subr.bf16.mxu1 %v7236_v60 }
 0xab3   :  { %3795 = vmatpush1.bf16.msra.mxu0 %v7239_v62  ;;  %3838 = vmatpush1.bf16.msra.mxu1 %v7242_v63 }
 0xab4   :  { %3796 = vmatprep.subr.bf16.mxu0 %v7245_v1  ;;  %3839 = vmatprep.subr.bf16.mxu1 %v7248_v52 }
 0xab7   :  { %3797 = vmatpush1.bf16.msra.mxu0 %v7251_v40  ;;  %3840 = vmatpush1.bf16.msra.mxu1 %v7254_v35 }
 0xab8   :  { %3798 = vmatprep.subr.bf16.mxu0 %v7257_v2  ;;  %3841 = vmatprep.subr.bf16.mxu1 %v7260_v30 }
 0xabb   :  { %3799 = vmatpush1.bf16.msra.mxu0 %v7263_v39  ;;  %3842 = vmatpush1.bf16.msra.mxu1 %v7266_v37 }
 0xabc   :  { %3800 = vmatprep.subr.bf16.mxu0 %v7269_v11  ;;  %3843 = vmatprep.subr.bf16.mxu1 %v7272_v38 }
 0xabf   :  { %3801 = vmatpush1.bf16.msra.mxu0 %v7275_v27  ;;  %3844 = vmatpush1.bf16.msra.mxu1 %v7278_v29 }
 0xac0   :  { %3802 = vmatprep.subr.bf16.mxu0 %v7281_v0  ;;  %3845 = vmatprep.subr.bf16.mxu1 %v7284_v8 }
 0xac3   :  { %3803 = vmatpush1.bf16.msra.mxu0 %v7287_v28  ;;  %3846 = vmatpush1.bf16.msra.mxu1 %v7290_v22 }
 0xac4   :  { %3957 = vmatprep.subr.bf16.mxu0 %v7293_v42  ;;  %4000 = vmatprep.subr.bf16.mxu1 %v7296_v10 }
 0xb66   :  { %v3653_v34 = vpop.f32.mrf.mxu0  ;;  %v3696_v33 = vpop.f32.mrf.mxu1 }
 0xb67   :  { %v3705_v18 = vadd.f32 %v3653_v34, %v3611_v43  ;;  %v3613_v34 = vunpack.c.l.bf16 %v7740_v4 }
 0xb68   :  { %v3655_v16 = vpop.f32.mrf.mxu0  ;;  %v3698_v26 = vpop.f32.mrf.mxu1 }
 0xb69   :  { %v4927_v17 = vmul.f32 -1.442695, %v3705_v18  ;;  %v3706_v5 = vadd.f32 %v3655_v16, %v3612_v25  ;;  %v3708_v43 = vadd.f32 %v3698_v26, %v3614_v44  ;;  %v3618_v25 = vunpack.c.h.bf16 %v6989_v31 }
 0xb6a   :  { %v3657_v7 = vpop.f32.mrf.mxu0  ;;  %v3700_v50 = vpop.f32.mrf.mxu1  ;;  %v3707_v16 = vadd.f32 %v3696_v33, %v3613_v34 }
 0xb6b   :  { %5626 = vpow2.f32 %v4927_v17  ;;  %v4929_v9 = vmul.f32 -1.442695, %v3706_v5  ;;  %v3709_v45 = vadd.f32 %v3657_v7, %v3615_v15  ;;  %v4931_v17 = vmul.f32 -1.442695, %v3708_v43 }
 0xb6c   :  { %v3659_v47 = vpop.f32.mrf.mxu0  ;;  %v3702_v18 = vpop.f32.mrf.mxu1  ;;  %v3711_v7 = vadd.f32 %v3700_v50, %v3617_v41 }
 0xb6d   :  { %5628 = vpow2.f32 %v4929_v9  ;;  %v4928_v13 = vmul.f32 -1.442695, %v3709_v45  ;;  %v3710_v48 = vadd.f32 %v3659_v47, %v3616_v46  ;;  %v3712_v5 = vadd.f32 %v3702_v18, %v3618_v25 }
 0xb6f   :  { %5630 = vpow2.f32 %v4928_v13  ;;  %v4930_v36 = vmul.f32 -1.442695, %v3710_v48  ;;  %v4932_v46 = vmul.f32 -1.442695, %v3712_v5 }
 0xb71   :  { %5632 = vpow2.f32 %v4930_v36 }
 0xb72   :  { %5634 = vtanh.f32 %v3707_v16 }
 0xb73   :  { %5636 = vpow2.f32 %v4931_v17 }
 0xb78   :  { %v5627_v15 = vpop.eup %5626 }
 0xb79   :  { %v3719_v9 = vadd.f32 1.0, %v5627_v15 }
 0xb7a   :  { %v5629_v45 = vpop.eup %5628 }
 0xb7b   :  { %5638 = vrcp.f32 %v3719_v9  ;;  %v3731_v47 = vadd.f32 1.0, %v5629_v45  ;;  %v3767_v45 = vpop.permute.xlu0 %3766 }
 0xb7c   :  { %v5631_v26 = vpop.eup %5630  ;;  %5640 = vtanh.f32 %v3711_v7  ;;  %vm3771_vm12 = vcmp.eq.s32.totalorder %v3767_v45, 1 }
 0xb7d   :  { %5642 = vrcp.f32 %v3731_v47  ;;  %v3720_v13 = vadd.f32 1.0, %v5631_v26  ;;  %v3770_v26 = vpop.permute.xlu1 %3769 }
 0xb7e   :  { %v5633_v48 = vpop.eup %5632  ;;  %5644 = vpow2.f32 %v4932_v46  ;;  %vm3772_vm13 = vcmp.eq.s32.totalorder %v3770_v26, 1 }
 0xb7f   :  { %5646 = vrcp.f32 %v3720_v13  ;;  %v3732_v33 = vadd.f32 1.0, %v5633_v48  ;;  %v5635_v31 = vpop.eup %5634 }
 0xb80   :  { %v5637_v36 = vpop.eup %5636 }
 0xb81   :  { %5648 = vrcp.f32 %v3732_v33  ;;  %v3745_v34 = vadd.f32 1.0, %v5637_v36 }
 0xb83   :  { %5650 = vrcp.f32 %v3745_v34  ;;  %v3781_v34 = vunpack.c.h.bf16 %v6995_v6 }
 0xb88   :  { %v5639_v4 = vpop.eup %5638 }
 0xb89   :  { %v5641_v50 = vpop.eup %5640  ;;  %v3753_v44 = vmul.f32 %v5639_v4, %v5635_v31  ;;  %v3780_v4 = vunpack.c.l.bf16 %v6995_v6  ;;  %v7742_v6 = vld [vmem:[#allocation32_spill] sm:$0xff] }
 0xb8a   :  { %v5643_v43 = vpop.eup %5642 }
 0xb8b   :  { %v5645_v18 = vpop.eup %5644  ;;  %v3751_v25 = vmul.f32 %v5643_v43, %v7188_v24 }
 0xb8c   :  { %v5647_v16 = vpop.eup %5646  ;;  %v3746_v15 = vadd.f32 1.0, %v5645_v18 }
 0xb8d   :  { %v7312_v17 = vadd.f32 %v3753_v44, %v3751_v25  ;;  %v3754_v41 = vmul.f32 %v5647_v16, %v5641_v50 }
 0xb8e   :  { %v5649_v5 = vpop.eup %5648 }
 0xb8f   :  { %v3752_v7 = vmul.f32 %v5649_v5, %v7192_v23  ;;  %5652 = vtanh.f32 %v7312_v17 }
 0xb90   :  { %5654 = vrcp.f32 %v3746_v15  ;;  %v5651_v46 = vpop.eup %5650 }
 0xb91   :  { %v7316_v9 = vadd.f32 %v3754_v41, %v3752_v7  ;;  %v7741_v41 = vld [vmem:[#allocation34_spill] sm:$0xff] }
 0xb92   :  { %v3784_v5 = vunpack.c.l.bf16 %v7741_v41 }
 0xb93   :  { %5656 = vtanh.f32 %v7316_v9 }
 0xb9c   :  { %v5653_v47 = vpop.eup %5652 }
 0xb9d   :  { %v3759_v24 = vmul.f32 %v5653_v47, %v5651_v46  ;;  %v5655_v13 = vpop.eup %5654  ;;  %v3785_v47 = vunpack.c.h.bf16 %v7741_v41 }
 0xb9f   :  { %v7320_v48 = vsel %vm3771_vm12, %v3759_v24, %v7196_v19  ;;  %v4101_v19 = vsel %vm4099_vm14, 1, %v7668_v61 }
 0xba0   :  { %v5657_v33 = vpop.eup %5656  ;;  %4104 = vperm.xlu0 %5096, %v4101_v19  }
 0xba1   :  { %v3760_v23 = vmul.f32 %v5657_v33, %v5655_v13 }
 0xba3   :  { %v7323_v31 = vsel %vm3772_vm13, %v3760_v23, %v7199_v49  ;;  %v3775_v36 = vpack.c.bf16 %v3760_v23, %v3759_v24  ;;  %v4102_v49 = vsel %vm4100_vm15, 1, %v7668_v61 }
 0xba4   :  { %4107 = vperm.xlu1 %5097, %v4102_v49   ;;  %v3782_v49 = vunpack.c.l.bf16 %v7742_v6 }
 0xba5   :  { %3821 = vmatmul.mubr.bf16.vlgmr.msra.gmra.mxu0 %v3775_v36  ;;  %3864 = vmatmul.mubr.bf16.vlgmr.msra.gmra.mxu1 %v3775_v36  ;;  %v3783_v36 = vunpack.c.h.bf16 %v7742_v6 }
 0xba6   :  { %3958 = vmatpush1.bf16.msra.mxu0 %v7201_v51  ;;  %4001 = vmatpush1.bf16.msra.mxu1 %v7204_v53 }
 0xba7   :  { %3959 = vmatprep.subr.bf16.mxu0 %v7207_v20  ;;  %4002 = vmatprep.subr.bf16.mxu1 %v7210_v54 }
 0xba8   :  { %3989 = vmatprep.mubr.bf16.mxu0 %v7668_v61  ;;  %4032 = vmatprep.mubr.bf16.mxu1 %v7668_v61 }
 0xbaa   :  { %3960 = vmatpush1.bf16.msra.mxu0 %v7215_v32  ;;  %4003 = vmatpush1.bf16.msra.mxu1 %v7218_v55 }
 0xbab   :  { %3961 = vmatprep.subr.bf16.mxu0 %v7221_v56  ;;  %4004 = vmatprep.subr.bf16.mxu1 %v7224_v12 }
 0xbae   :  { %3962 = vmatpush1.bf16.msra.mxu0 %v7227_v57  ;;  %4005 = vmatpush1.bf16.msra.mxu1 %v7230_v58 }
 0xbaf   :  { %3963 = vmatprep.subr.bf16.mxu0 %v7233_v59  ;;  %4006 = vmatprep.subr.bf16.mxu1 %v7236_v60 }
 0xbb2   :  { %3964 = vmatpush1.bf16.msra.mxu0 %v7239_v62  ;;  %4007 = vmatpush1.bf16.msra.mxu1 %v7242_v63 }
 0xbb3   :  { %3965 = vmatprep.subr.bf16.mxu0 %v7245_v1  ;;  %4008 = vmatprep.subr.bf16.mxu1 %v7248_v52 }
 0xbb6   :  { %3966 = vmatpush1.bf16.msra.mxu0 %v7251_v40  ;;  %4009 = vmatpush1.bf16.msra.mxu1 %v7254_v35 }
 0xbb7   :  { %3967 = vmatprep.subr.bf16.mxu0 %v7257_v2  ;;  %4010 = vmatprep.subr.bf16.mxu1 %v7260_v30 }
 0xbba   :  { %3968 = vmatpush1.bf16.msra.mxu0 %v7263_v39  ;;  %4011 = vmatpush1.bf16.msra.mxu1 %v7266_v37 }
 0xbbb   :  { %3969 = vmatprep.subr.bf16.mxu0 %v7269_v11  ;;  %4012 = vmatprep.subr.bf16.mxu1 %v7272_v38 }
 0xbbe   :  { %3970 = vmatpush1.bf16.msra.mxu0 %v7275_v27  ;;  %4013 = vmatpush1.bf16.msra.mxu1 %v7278_v29 }
 0xbbf   :  { %3971 = vmatprep.subr.bf16.mxu0 %v7281_v0  ;;  %4014 = vmatprep.subr.bf16.mxu1 %v7284_v8 }
 0xbc2   :  { %3972 = vmatpush1.bf16.msra.mxu0 %v7287_v28  ;;  %4015 = vmatpush1.bf16.msra.mxu1 %v7290_v22 }
 0xbc3   :  { %4126 = vmatprep.subr.bf16.mxu0 %v7293_v42  ;;  %4169 = vmatprep.subr.bf16.mxu1 %v7296_v10 }
 0xc65   :  { %v3822_v50 = vpop.f32.mrf.mxu0  ;;  %v3865_v43 = vpop.f32.mrf.mxu1 }
 0xc66   :  { %v3874_v44 = vadd.f32 %v3822_v50, %v3780_v4  ;;  %v7743_v50 = vld [vmem:[#allocation35_spill] sm:$0xff] }
 0xc67   :  { %v3824_v18 = vpop.f32.mrf.mxu0  ;;  %v3867_v45 = vpop.f32.mrf.mxu1 }
 0xc68   :  { %v4933_v25 = vmul.f32 -1.442695, %v3874_v44  ;;  %v3875_v16 = vadd.f32 %v3824_v18, %v3781_v34  ;;  %v3877_v19 = vadd.f32 %v3867_v45, %v3783_v36  ;;  %v3787_v44 = vunpack.c.h.bf16 %v7743_v50 }
 0xc69   :  { %v3826_v15 = vpop.f32.mrf.mxu0  ;;  %v3869_v33 = vpop.f32.mrf.mxu1  ;;  %v3876_v34 = vadd.f32 %v3865_v43, %v3782_v49 }
 0xc6a   :  { %5658 = vpow2.f32 %v4933_v25  ;;  %v4935_v7 = vmul.f32 -1.442695, %v3875_v16  ;;  %v3878_v46 = vadd.f32 %v3826_v15, %v3784_v5  ;;  %v4937_v18 = vmul.f32 -1.442695, %v3877_v19 }
 0xc6b   :  { %v3828_v24 = vpop.f32.mrf.mxu0  ;;  %v3871_v4 = vpop.f32.mrf.mxu1  ;;  %v3786_v25 = vunpack.c.l.bf16 %v7743_v50 }
 0xc6c   :  { %5660 = vpow2.f32 %v4935_v7  ;;  %v4934_v26 = vmul.f32 -1.442695, %v3878_v46  ;;  %v3879_v13 = vadd.f32 %v3828_v24, %v3785_v47  ;;  %v3881_v16 = vadd.f32 %v3871_v4, %v3787_v44 }
 0xc6d   :  { %v3880_v5 = vadd.f32 %v3869_v33, %v3786_v25 }
 0xc6e   :  { %5662 = vpow2.f32 %v4934_v26  ;;  %v4936_v23 = vmul.f32 -1.442695, %v3879_v13  ;;  %v4938_v46 = vmul.f32 -1.442695, %v3881_v16 }
 0xc70   :  { %5664 = vpow2.f32 %v4936_v23 }
 0xc71   :  { %5666 = vtanh.f32 %v3876_v34 }
 0xc72   :  { %5668 = vpow2.f32 %v4937_v18 }
 0xc77   :  { %v5659_v41 = vpop.eup %5658 }
 0xc78   :  { %v3888_v15 = vadd.f32 1.0, %v5659_v41 }
 0xc79   :  { %v5661_v7 = vpop.eup %5660 }
 0xc7a   :  { %5670 = vrcp.f32 %v3888_v15  ;;  %v3900_v47 = vadd.f32 1.0, %v5661_v7  ;;  %v3936_v15 = vpop.permute.xlu0 %3935 }
 0xc7b   :  { %v5663_v45 = vpop.eup %5662  ;;  %5672 = vtanh.f32 %v3880_v5  ;;  %vm3940_vm0 = vcmp.eq.s32.totalorder %v3936_v15, 1 }
 0xc7c   :  { %5674 = vrcp.f32 %v3900_v47  ;;  %v3889_v24 = vadd.f32 1.0, %v5663_v45  ;;  %v3939_v47 = vpop.permute.xlu1 %3938 }
 0xc7d   :  { %v5665_v26 = vpop.eup %5664  ;;  %5676 = vpow2.f32 %v4938_v46  ;;  %vm3941_vm1 = vcmp.eq.s32.totalorder %v3939_v47, 1 }
 0xc7e   :  { %5678 = vrcp.f32 %v3889_v24  ;;  %v3901_v43 = vadd.f32 1.0, %v5665_v26  ;;  %v5667_v13 = vpop.eup %5666 }
 0xc7f   :  { %v5669_v23 = vpop.eup %5668 }
 0xc80   :  { %5680 = vrcp.f32 %v3901_v43  ;;  %v3914_v49 = vadd.f32 1.0, %v5669_v23  ;;  %v7744_v23 = vld [vmem:[#allocation37_spill] sm:$0xff] }
 0xc82   :  { %5682 = vrcp.f32 %v3914_v49  ;;  %v3950_v49 = vunpack.c.h.bf16 %v7744_v23 }
 0xc87   :  { %v5671_v6 = vpop.eup %5670 }
 0xc88   :  { %v5673_v33 = vpop.eup %5672  ;;  %v3922_v36 = vmul.f32 %v5671_v6, %v5667_v13  ;;  %v3949_v6 = vunpack.c.l.bf16 %v7744_v23 }
 0xc89   :  { %v5675_v19 = vpop.eup %5674 }
 0xc8a   :  { %v5677_v4 = vpop.eup %5676  ;;  %v3920_v50 = vmul.f32 %v5675_v19, %v7312_v17 }
 0xc8b   :  { %v5679_v44 = vpop.eup %5678  ;;  %v3915_v16 = vadd.f32 1.0, %v5677_v4 }
 0xc8c   :  { %v7372_v34 = vadd.f32 %v3922_v36, %v3920_v50  ;;  %v3923_v18 = vmul.f32 %v5679_v44, %v5673_v33 }
 0xc8d   :  { %v5681_v25 = vpop.eup %5680 }
 0xc8e   :  { %v3921_v41 = vmul.f32 %v5681_v25, %v7316_v9  ;;  %5684 = vtanh.f32 %v7372_v34 }
 0xc8f   :  { %5686 = vrcp.f32 %v3915_v16  ;;  %v5683_v7 = vpop.eup %5682 }
 0xc90   :  { %v7376_v5 = vadd.f32 %v3923_v18, %v3921_v41  ;;  %v7745_v18 = vld [vmem:[#allocation38_spill] sm:$0xff] }
 0xc91   :  { %v3953_v25 = vunpack.c.l.bf16 %v7745_v18 }
 0xc92   :  { %5688 = vtanh.f32 %v7376_v5 }
 0xc9b   :  { %v5685_v46 = vpop.eup %5684 }
 0xc9c   :  { %v3928_v17 = vmul.f32 %v5685_v46, %v5683_v7  ;;  %v5687_v45 = vpop.eup %5686  ;;  %v3954_v46 = vunpack.c.h.bf16 %v7745_v18 }
 0xc9e   :  { %v7380_v24 = vsel %vm3940_vm0, %v3928_v17, %v7320_v48  ;;  %v4270_v48 = vsel %vm4268_vm2, 1, %v7668_v61 }
 0xc9f   :  { %v5689_v26 = vpop.eup %5688  ;;  %4273 = vperm.xlu0 %5096, %v4270_v48  }
 0xca0   :  { %v3929_v9 = vmul.f32 %v5689_v26, %v5687_v45 }
 0xca2   :  { %v3944_v43 = vpack.c.bf16 %v3929_v9, %v3928_v17  ;;  %v7383_v13 = vsel %vm3941_vm1, %v3929_v9, %v7323_v31  ;;  %v4271_v31 = vsel %vm4269_vm3, 1, %v7668_v61 }
 0xca3   :  { %4276 = vperm.xlu1 %5097, %v4271_v31  }
 0xca4   :  { %3990 = vmatmul.mubr.bf16.vlgmr.msra.gmra.mxu0 %v3944_v43  ;;  %4033 = vmatmul.mubr.bf16.vlgmr.msra.gmra.mxu1 %v3944_v43  ;;  %v7746_v43 = vld [vmem:[#allocation36_spill] sm:$0xff] }
 0xca5   :  { %4127 = vmatpush1.bf16.msra.mxu0 %v7201_v51  ;;  %4170 = vmatpush1.bf16.msra.mxu1 %v7204_v53  ;;  %v3952_v48 = vunpack.c.h.bf16 %v7746_v43  ;;  %v3951_v23 = vunpack.c.l.bf16 %v7746_v43 }
 0xca6   :  { %4128 = vmatprep.subr.bf16.mxu0 %v7207_v20  ;;  %4171 = vmatprep.subr.bf16.mxu1 %v7210_v54 }
 0xca7   :  { %4158 = vmatprep.mubr.bf16.mxu0 %v7668_v61  ;;  %4201 = vmatprep.mubr.bf16.mxu1 %v7668_v61 }
 0xca9   :  { %4129 = vmatpush1.bf16.msra.mxu0 %v7215_v32  ;;  %4172 = vmatpush1.bf16.msra.mxu1 %v7218_v55 }
 0xcaa   :  { %4130 = vmatprep.subr.bf16.mxu0 %v7221_v56  ;;  %4173 = vmatprep.subr.bf16.mxu1 %v7224_v12 }
 0xcad   :  { %4131 = vmatpush1.bf16.msra.mxu0 %v7227_v57  ;;  %4174 = vmatpush1.bf16.msra.mxu1 %v7230_v58 }
 0xcae   :  { %4132 = vmatprep.subr.bf16.mxu0 %v7233_v59  ;;  %4175 = vmatprep.subr.bf16.mxu1 %v7236_v60 }
 0xcb1   :  { %4133 = vmatpush1.bf16.msra.mxu0 %v7239_v62  ;;  %4176 = vmatpush1.bf16.msra.mxu1 %v7242_v63 }
 0xcb2   :  { %4134 = vmatprep.subr.bf16.mxu0 %v7245_v1  ;;  %4177 = vmatprep.subr.bf16.mxu1 %v7248_v52 }
 0xcb5   :  { %4135 = vmatpush1.bf16.msra.mxu0 %v7251_v40  ;;  %4178 = vmatpush1.bf16.msra.mxu1 %v7254_v35 }
 0xcb6   :  { %4136 = vmatprep.subr.bf16.mxu0 %v7257_v2  ;;  %4179 = vmatprep.subr.bf16.mxu1 %v7260_v30 }
 0xcb9   :  { %4137 = vmatpush1.bf16.msra.mxu0 %v7263_v39  ;;  %4180 = vmatpush1.bf16.msra.mxu1 %v7266_v37 }
 0xcba   :  { %4138 = vmatprep.subr.bf16.mxu0 %v7269_v11  ;;  %4181 = vmatprep.subr.bf16.mxu1 %v7272_v38 }
 0xcbd   :  { %4139 = vmatpush1.bf16.msra.mxu0 %v7275_v27  ;;  %4182 = vmatpush1.bf16.msra.mxu1 %v7278_v29 }
 0xcbe   :  { %4140 = vmatprep.subr.bf16.mxu0 %v7281_v0  ;;  %4183 = vmatprep.subr.bf16.mxu1 %v7284_v8 }
 0xcc1   :  { %4141 = vmatpush1.bf16.msra.mxu0 %v7287_v28  ;;  %4184 = vmatpush1.bf16.msra.mxu1 %v7290_v22 }
 0xcc2   :  { %4295 = vmatprep.subr.bf16.mxu0 %v7293_v42  ;;  %4338 = vmatprep.subr.bf16.mxu1 %v7296_v10 }
 0xd64   :  { %v3991_v33 = vpop.f32.mrf.mxu0  ;;  %v4034_v19 = vpop.f32.mrf.mxu1 }
 0xd65   :  { %v4043_v36 = vadd.f32 %v3991_v33, %v3949_v6  ;;  %v7747_v33 = vld [vmem:[#allocation39_spill] sm:$0xff] }
 0xd66   :  { %v3993_v4 = vpop.f32.mrf.mxu0  ;;  %v4036_v15 = vpop.f32.mrf.mxu1 }
 0xd67   :  { %v4939_v50 = vmul.f32 -1.442695, %v4043_v36  ;;  %v4044_v44 = vadd.f32 %v3993_v4, %v3950_v49  ;;  %v4046_v31 = vadd.f32 %v4036_v15, %v3952_v48  ;;  %v3956_v36 = vunpack.c.h.bf16 %v7747_v33 }
 0xd68   :  { %v3995_v16 = vpop.f32.mrf.mxu0  ;;  %v4038_v26 = vpop.f32.mrf.mxu1  ;;  %v4045_v49 = vadd.f32 %v4034_v19, %v3951_v23 }
 0xd69   :  { %5690 = vpow2.f32 %v4939_v50  ;;  %v4941_v41 = vmul.f32 -1.442695, %v4044_v44  ;;  %v4047_v7 = vadd.f32 %v3995_v16, %v3953_v25  ;;  %v4943_v4 = vmul.f32 -1.442695, %v4046_v31 }
 0xd6a   :  { %v3997_v17 = vpop.f32.mrf.mxu0  ;;  %v4040_v6 = vpop.f32.mrf.mxu1  ;;  %v3955_v50 = vunpack.c.l.bf16 %v7747_v33 }
 0xd6b   :  { %5692 = vpow2.f32 %v4941_v41  ;;  %v4940_v47 = vmul.f32 -1.442695, %v4047_v7  ;;  %v4048_v45 = vadd.f32 %v3997_v17, %v3954_v46  ;;  %v4050_v44 = vadd.f32 %v4040_v6, %v3956_v36 }
 0xd6c   :  { %v4049_v25 = vadd.f32 %v4038_v26, %v3955_v50 }
 0xd6d   :  { %5694 = vpow2.f32 %v4940_v47  ;;  %v4942_v9 = vmul.f32 -1.442695, %v4048_v45  ;;  %v4944_v7 = vmul.f32 -1.442695, %v4050_v44 }
 0xd6f   :  { %5696 = vpow2.f32 %v4942_v9 }
 0xd70   :  { %5698 = vtanh.f32 %v4045_v49 }
 0xd71   :  { %5700 = vpow2.f32 %v4943_v4 }
 0xd76   :  { %v5691_v18 = vpop.eup %5690 }
 0xd77   :  { %v4057_v16 = vadd.f32 1.0, %v5691_v18 }
 0xd78   :  { %v5693_v41 = vpop.eup %5692 }
 0xd79   :  { %5702 = vrcp.f32 %v4057_v16  ;;  %v4069_v46 = vadd.f32 1.0, %v5693_v41  ;;  %v4105_v16 = vpop.permute.xlu0 %4104 }
 0xd7a   :  { %v5695_v15 = vpop.eup %5694  ;;  %5704 = vtanh.f32 %v4049_v25  ;;  %vm4109_vm4 = vcmp.eq.s32.totalorder %v4105_v16, 1 }
 0xd7b   :  { %5706 = vrcp.f32 %v4069_v46  ;;  %v4058_v17 = vadd.f32 1.0, %v5695_v15  ;;  %v4108_v46 = vpop.permute.xlu1 %4107 }
 0xd7c   :  { %v5697_v47 = vpop.eup %5696  ;;  %5708 = vpow2.f32 %v4944_v7  ;;  %vm4110_vm5 = vcmp.eq.s32.totalorder %v4108_v46, 1 }
 0xd7d   :  { %5710 = vrcp.f32 %v4058_v17  ;;  %v4070_v19 = vadd.f32 1.0, %v5697_v47  ;;  %v5699_v45 = vpop.eup %5698 }
 0xd7e   :  { %v5701_v9 = vpop.eup %5700 }
 0xd7f   :  { %5712 = vrcp.f32 %v4070_v19  ;;  %v4083_v23 = vadd.f32 1.0, %v5701_v9  ;;  %v7748_v9 = vld [vmem:[#allocation18_spill] sm:$0xff] }
 0xd81   :  { %5714 = vrcp.f32 %v4083_v23  ;;  %v4119_v23 = vunpack.c.h.bf16 %v7748_v9 }
 0xd86   :  { %v5703_v43 = vpop.eup %5702 }
 0xd87   :  { %v5705_v26 = vpop.eup %5704  ;;  %v4091_v48 = vmul.f32 %v5703_v43, %v5699_v45  ;;  %v4118_v43 = vunpack.c.l.bf16 %v7748_v9  ;;  %v7751_v9 = vld [vmem:[#allocation42_spill] sm:$0xff] }
 0xd88   :  { %v5707_v31 = vpop.eup %5706 }
 0xd89   :  { %v5709_v6 = vpop.eup %5708  ;;  %v4089_v33 = vmul.f32 %v5707_v31, %v7372_v34 }
 0xd8a   :  { %v5711_v36 = vpop.eup %5710  ;;  %v4084_v44 = vadd.f32 1.0, %v5709_v6 }
 0xd8b   :  { %v7432_v49 = vadd.f32 %v4091_v48, %v4089_v33  ;;  %v4092_v4 = vmul.f32 %v5711_v36, %v5705_v26  ;;  %v7749_v33 = vld [vmem:[#allocation41_spill] sm:$0xff] }
 0xd8c   :  { %v5713_v50 = vpop.eup %5712  ;;  %v4122_v36 = vunpack.c.l.bf16 %v7749_v33  ;;  %v4123_v16 = vunpack.c.h.bf16 %v7749_v33 }
 0xd8d   :  { %v4090_v18 = vmul.f32 %v5713_v50, %v7376_v5  ;;  %5716 = vtanh.f32 %v7432_v49 }
 0xd8e   :  { %5718 = vrcp.f32 %v4084_v44  ;;  %v5715_v41 = vpop.eup %5714 }
 0xd8f   :  { %v7436_v25 = vadd.f32 %v4092_v4, %v4090_v18 }
 0xd91   :  { %5720 = vtanh.f32 %v7436_v25 }
 0xd9a   :  { %v5717_v7 = vpop.eup %5716 }
 0xd9b   :  { %v4097_v34 = vmul.f32 %v5717_v7, %v5715_v41  ;;  %v5719_v15 = vpop.eup %5718 }
 0xd9d   :  { %v7440_v17 = vsel %vm4109_vm4, %v4097_v34, %v7380_v24  ;;  %v4439_v24 = vsel %vm4437_vm6, 1, %v7668_v61 }
 0xd9e   :  { %v5721_v47 = vpop.eup %5720  ;;  %4442 = vperm.xlu0 %5096, %v4439_v24  }
 0xd9f   :  { %v4098_v5 = vmul.f32 %v5721_v47, %v5719_v15  ;;  %v7750_v47 = vld [vmem:[#allocation40_spill] sm:$0xff] }
 0xda0   :  { %v4120_v24 = vunpack.c.l.bf16 %v7750_v47 }
 0xda1   :  { %v4113_v19 = vpack.c.bf16 %v4098_v5, %v4097_v34  ;;  %v7443_v45 = vsel %vm4110_vm5, %v4098_v5, %v7383_v13  ;;  %v4440_v13 = vsel %vm4438_vm7, 1, %v7668_v61  ;;  %v4121_v5 = vunpack.c.h.bf16 %v7750_v47 }
 0xda2   :  { %4445 = vperm.xlu1 %5097, %v4440_v13  }
 0xda3   :  { %4159 = vmatmul.mubr.bf16.vlgmr.msra.gmra.mxu0 %v4113_v19  ;;  %4202 = vmatmul.mubr.bf16.vlgmr.msra.gmra.mxu1 %v4113_v19 }
 0xda4   :  { %4296 = vmatpush1.bf16.msra.mxu0 %v7201_v51  ;;  %4339 = vmatpush1.bf16.msra.mxu1 %v7204_v53 }
 0xda5   :  { %4297 = vmatprep.subr.bf16.mxu0 %v7207_v20  ;;  %4340 = vmatprep.subr.bf16.mxu1 %v7210_v54 }
 0xda6   :  { %4327 = vmatprep.mubr.bf16.mxu0 %v7668_v61  ;;  %4370 = vmatprep.mubr.bf16.mxu1 %v7668_v61 }
 0xda8   :  { %4298 = vmatpush1.bf16.msra.mxu0 %v7215_v32  ;;  %4341 = vmatpush1.bf16.msra.mxu1 %v7218_v55 }
 0xda9   :  { %4299 = vmatprep.subr.bf16.mxu0 %v7221_v56  ;;  %4342 = vmatprep.subr.bf16.mxu1 %v7224_v12 }
 0xdac   :  { %4300 = vmatpush1.bf16.msra.mxu0 %v7227_v57  ;;  %4343 = vmatpush1.bf16.msra.mxu1 %v7230_v58 }
 0xdad   :  { %4301 = vmatprep.subr.bf16.mxu0 %v7233_v59  ;;  %4344 = vmatprep.subr.bf16.mxu1 %v7236_v60 }
 0xdb0   :  { %4302 = vmatpush1.bf16.msra.mxu0 %v7239_v62  ;;  %4345 = vmatpush1.bf16.msra.mxu1 %v7242_v63 }
 0xdb1   :  { %4303 = vmatprep.subr.bf16.mxu0 %v7245_v1  ;;  %4346 = vmatprep.subr.bf16.mxu1 %v7248_v52 }
 0xdb4   :  { %4304 = vmatpush1.bf16.msra.mxu0 %v7251_v40  ;;  %4347 = vmatpush1.bf16.msra.mxu1 %v7254_v35 }
 0xdb5   :  { %4305 = vmatprep.subr.bf16.mxu0 %v7257_v2  ;;  %4348 = vmatprep.subr.bf16.mxu1 %v7260_v30 }
 0xdb8   :  { %4306 = vmatpush1.bf16.msra.mxu0 %v7263_v39  ;;  %4349 = vmatpush1.bf16.msra.mxu1 %v7266_v37 }
 0xdb9   :  { %4307 = vmatprep.subr.bf16.mxu0 %v7269_v11  ;;  %4350 = vmatprep.subr.bf16.mxu1 %v7272_v38 }
 0xdbc   :  { %4308 = vmatpush1.bf16.msra.mxu0 %v7275_v27  ;;  %4351 = vmatpush1.bf16.msra.mxu1 %v7278_v29 }
 0xdbd   :  { %4309 = vmatprep.subr.bf16.mxu0 %v7281_v0  ;;  %4352 = vmatprep.subr.bf16.mxu1 %v7284_v8 }
 0xdc0   :  { %4310 = vmatpush1.bf16.msra.mxu0 %v7287_v28  ;;  %4353 = vmatpush1.bf16.msra.mxu1 %v7290_v22 }
 0xdc1   :  { %4464 = vmatprep.subr.bf16.mxu0 %v7293_v42  ;;  %4507 = vmatprep.subr.bf16.mxu1 %v7296_v10 }
 0xe63   :  { %v4160_v26 = vpop.f32.mrf.mxu0  ;;  %v4203_v31 = vpop.f32.mrf.mxu1 }
 0xe64   :  { %v4212_v48 = vadd.f32 %v4160_v26, %v4118_v43  ;;  %v4125_v43 = vunpack.c.h.bf16 %v7751_v9  ;;  %v4214_v26 = vadd.f32 %v4203_v31, %v4120_v24 }
 0xe65   :  { %v4162_v42 = vpop.f32.mrf.mxu0  ;;  %v4205_v44 = vpop.f32.mrf.mxu1 }
 0xe66   :  { %v4945_v6 = vmul.f32 -1.442695, %v4212_v48  ;;  %v4213_v10 = vadd.f32 %v4162_v42, %v4119_v23  ;;  %v4215_v19 = vadd.f32 %v4205_v44, %v4121_v5  ;;  %v4124_v23 = vunpack.c.l.bf16 %v7751_v9 }
 0xe67   :  { %v4164_v4 = vpop.f32.mrf.mxu0  ;;  %v4207_v46 = vpop.f32.mrf.mxu1 }
 0xe68   :  { %5722 = vpow2.f32 %v4945_v6  ;;  %v4947_v50 = vmul.f32 -1.442695, %v4213_v10  ;;  %v4216_v18 = vadd.f32 %v4164_v4, %v4122_v36  ;;  %v4949_v48 = vmul.f32 -1.442695, %v4215_v19 }
 0xe69   :  { %v4166_v41 = vpop.f32.mrf.mxu0  ;;  %v4209_v13 = vpop.f32.mrf.mxu1  ;;  %v4218_v10 = vadd.f32 %v4207_v46, %v4124_v23 }
 0xe6a   :  { %5724 = vpow2.f32 %v4947_v50  ;;  %v4946_v7 = vmul.f32 -1.442695, %v4216_v18  ;;  %v4217_v34 = vadd.f32 %v4166_v41, %v4123_v16  ;;  %v4219_v42 = vadd.f32 %v4209_v13, %v4125_v43 }
 0xe6c   :  { %5726 = vpow2.f32 %v4946_v7  ;;  %v4948_v15 = vmul.f32 -1.442695, %v4217_v34  ;;  %v4950_v4 = vmul.f32 -1.442695, %v4219_v42 }
 0xe6e   :  { %5728 = vpow2.f32 %v4948_v15 }
 0xe6f   :  { %5730 = vtanh.f32 %v4214_v26 }
 0xe70   :  { %5732 = vpow2.f32 %v4949_v48 }
 0xe75   :  { %v5723_v6 = vpop.eup %5722 }
 0xe76   :  { %v4226_v33 = vadd.f32 1.0, %v5723_v6  ;;  %v4274_v6 = vpop.permute.xlu0 %4273 }
 0xe77   :  { %v5725_v36 = vpop.eup %5724  ;;  %vm4278_vm8 = vcmp.eq.s32.totalorder %v4274_v6, 1 }
 0xe78   :  { %5734 = vrcp.f32 %v4226_v33  ;;  %v4238_v50 = vadd.f32 1.0, %v5725_v36  ;;  %v4277_v36 = vpop.permute.xlu1 %4276 }
 0xe79   :  { %v5727_v44 = vpop.eup %5726  ;;  %5736 = vtanh.f32 %v4218_v10  ;;  %vm4279_vm9 = vcmp.eq.s32.totalorder %v4277_v36, 1 }
 0xe7a   :  { %5738 = vrcp.f32 %v4238_v50  ;;  %v4227_v18 = vadd.f32 1.0, %v5727_v44 }
 0xe7b   :  { %v5729_v16 = vpop.eup %5728  ;;  %5740 = vpow2.f32 %v4950_v4 }
 0xe7c   :  { %5742 = vrcp.f32 %v4227_v18  ;;  %v4239_v31 = vadd.f32 1.0, %v5729_v16  ;;  %v5731_v41 = vpop.eup %5730 }
 0xe7d   :  { %v5733_v7 = vpop.eup %5732 }
 0xe7e   :  { %5744 = vrcp.f32 %v4239_v31  ;;  %v4252_v5 = vadd.f32 1.0, %v5733_v7  ;;  %v7760_v31 = vld [vmem:[#allocation44_spill] sm:$0xff] }
 0xe80   :  { %5746 = vrcp.f32 %v4252_v5 }
 0xe85   :  { %v5735_v34 = vpop.eup %5734 }
 0xe86   :  { %v5737_v46 = vpop.eup %5736  ;;  %v4260_v15 = vmul.f32 %v5735_v34, %v5731_v41  ;;  %v4290_v41 = vunpack.c.h.bf16 %v7760_v31  ;;  %v4289_v34 = vunpack.c.l.bf16 %v7760_v31 }
 0xe87   :  { %v5739_v47 = vpop.eup %5738 }
 0xe88   :  { %v5741_v19 = vpop.eup %5740  ;;  %v4258_v24 = vmul.f32 %v5739_v47, %v7432_v49 }
 0xe89   :  { %v5743_v13 = vpop.eup %5742  ;;  %v4253_v48 = vadd.f32 1.0, %v5741_v19 }
 0xe8a   :  { %v7492_v9 = vadd.f32 %v4260_v15, %v4258_v24  ;;  %v4261_v43 = vmul.f32 %v5743_v13, %v5737_v46 }
 0xe8b   :  { %v5745_v26 = vpop.eup %5744 }
 0xe8c   :  { %v4259_v23 = vmul.f32 %v5745_v26, %v7436_v25  ;;  %5748 = vtanh.f32 %v7492_v9 }
 0xe8d   :  { %5750 = vrcp.f32 %v4253_v48  ;;  %v5747_v10 = vpop.eup %5746 }
 0xe8e   :  { %v7496_v42 = vadd.f32 %v4261_v43, %v4259_v23 }
 0xe90   :  { %5752 = vtanh.f32 %v7496_v42 }
 0xe99   :  { %v5749_v33 = vpop.eup %5748 }
 0xe9a   :  { %v4266_v49 = vmul.f32 %v5749_v33, %v5747_v10  ;;  %v5751_v4 = vpop.eup %5750 }
 0xe9c   :  { %v7500_v50 = vsel %vm4278_vm8, %v4266_v49, %v7440_v17 }
 0xe9d   :  { %v5753_v44 = vpop.eup %5752 }
 0xe9e   :  { %v4267_v25 = vmul.f32 %v5753_v44, %v5751_v4 }
 0xea0   :  { %v4282_v18 = vpack.c.bf16 %v4267_v25, %v4266_v49  ;;  %v7503_v16 = vsel %vm4279_vm9, %v4267_v25, %v7443_v45 }
 0xea2   :  { %4328 = vmatmul.mubr.bf16.vlgmr.msra.gmra.mxu0 %v4282_v18  ;;  %4371 = vmatmul.mubr.bf16.vlgmr.msra.gmra.mxu1 %v4282_v18 }
 0xea3   :  { %4465 = vmatpush1.bf16.msra.mxu0 %v7201_v51  ;;  %4508 = vmatpush1.bf16.msra.mxu1 %v7204_v53  ;;  %v4609_v51 = vsel %vm4607_vm10, 1, %v7668_v61  ;;  %v4608_v53 = vsel %vm4606_vm11, 1, %v7668_v61 }
 0xea4   :  { %4466 = vmatprep.subr.bf16.mxu0 %v7207_v20  ;;  %4509 = vmatprep.subr.bf16.mxu1 %v7210_v54  ;;  %v7752_v20 = vld [vmem:[#allocation24_spill] sm:$0xff]  ;;  %v7753_v54 = vld [vmem:[#allocation47_spill] sm:$0xff] }
 0xea5   :  { %4496 = vmatprep.mubr.bf16.mxu0 %v7668_v61  ;;  %4539 = vmatprep.mubr.bf16.mxu1 %v7668_v61 }
 0xea6   :  { %4614 = vperm.xlu1 %5097, %v4609_v51   ;;  %4611 = vperm.xlu0 %5096, %v4608_v53  }
 0xea7   :  { %4467 = vmatpush1.bf16.msra.mxu0 %v7215_v32  ;;  %4510 = vmatpush1.bf16.msra.mxu1 %v7218_v55  ;;  %v2728_v32 = vadd.f32 %v7753_v54, %v7752_v20  ;;  %v7754_v55 = vld [vmem:[#allocation25_spill] sm:$0xff] }
 0xea8   :  { %4468 = vmatprep.subr.bf16.mxu0 %v7221_v56  ;;  %4511 = vmatprep.subr.bf16.mxu1 %v7224_v12  ;;  %v7755_v56 = vld [vmem:[#allocation45_spill] sm:$0xff] }
 0xea9   :  { %v2726_v12 = vadd.f32 %v7755_v56, %v7754_v55 }
 0xeab   :  { %4469 = vmatpush1.bf16.msra.mxu0 %v7227_v57  ;;  %4512 = vmatpush1.bf16.msra.mxu1 %v7230_v58  ;;  %v5037_v57 = vpack.c.bf16 %v2728_v32, %v2726_v12  ;;  %v7756_v58 = vld [vmem:[#allocation43_spill] sm:$0xff] }
 0xeac   :  { %4470 = vmatprep.subr.bf16.mxu0 %v7233_v59  ;;  %4513 = vmatprep.subr.bf16.mxu1 %v7236_v60  ;;  %v4287_v59 = vunpack.c.l.bf16 %v7756_v58  ;;  %v4288_v3 = vunpack.c.h.bf16 %v7756_v58 }
 0xead   :  { %v4291_v61 = vunpack.c.l.bf16 %v5037_v57 }
 0xeaf   :  { %4471 = vmatpush1.bf16.msra.mxu0 %v7239_v62  ;;  %4514 = vmatpush1.bf16.msra.mxu1 %v7242_v63 }
 0xeb0   :  { %4472 = vmatprep.subr.bf16.mxu0 %v7245_v1  ;;  %4515 = vmatprep.subr.bf16.mxu1 %v7248_v52 }
 0xeb3   :  { %4473 = vmatpush1.bf16.msra.mxu0 %v7251_v40  ;;  %4516 = vmatpush1.bf16.msra.mxu1 %v7254_v35 }
 0xeb4   :  { %4474 = vmatprep.subr.bf16.mxu0 %v7257_v2  ;;  %4517 = vmatprep.subr.bf16.mxu1 %v7260_v30 }
 0xeb7   :  { %4475 = vmatpush1.bf16.msra.mxu0 %v7263_v39  ;;  %4518 = vmatpush1.bf16.msra.mxu1 %v7266_v37  ;;  %v4292_v39 = vunpack.c.h.bf16 %v5037_v57  ;;  %v7757_v37 = vld [vmem:[#allocation26_spill] sm:$0xff] }
 0xeb8   :  { %4476 = vmatprep.subr.bf16.mxu0 %v7269_v11  ;;  %4519 = vmatprep.subr.bf16.mxu1 %v7272_v38  ;;  %v7758_v11 = vld [vmem:[#allocation48_spill] sm:$0xff] }
 0xeb9   :  { %v2841_v38 = vadd.f32 %v7758_v11, %v7757_v37 }
 0xebb   :  { %4477 = vmatpush1.bf16.msra.mxu0 %v7275_v27  ;;  %4520 = vmatpush1.bf16.msra.mxu1 %v7278_v29 }
 0xebc   :  { %4478 = vmatprep.subr.bf16.mxu0 %v7281_v0  ;;  %4521 = vmatprep.subr.bf16.mxu1 %v7284_v8  ;;  %v7759_v8 = vld [vmem:[#allocation46_spill] sm:$0xff] }
 0xebf   :  { %4479 = vmatpush1.bf16.msra.mxu0 %v7287_v28  ;;  %4522 = vmatpush1.bf16.msra.mxu1 %v7290_v22  ;;  %v2839_v28 = vadd.f32 %v7759_v8, %v6948_v14 }
 0xec1   :  { %v5038_v45 = vpack.c.bf16 %v2841_v38, %v2839_v28 }
 0xec3   :  { %v4294_v15 = vunpack.c.h.bf16 %v5038_v45  ;;  %v4293_v19 = vunpack.c.l.bf16 %v5038_v45 }
 0xf62   :  { %v4329_v60 = vpop.f32.mrf.mxu0  ;;  %v4372_v21 = vpop.f32.mrf.mxu1 }
 0xf63   :  { %v4381_v62 = vadd.f32 %v4329_v60, %v4287_v59  ;;  %v4383_v47 = vadd.f32 %v4372_v21, %v4289_v34  ;;  %v4443_v60 = vpop.permute.xlu0 %4442 }
 0xf64   :  { %v4331_v63 = vpop.f32.mrf.mxu0  ;;  %v4374_v2 = vpop.f32.mrf.mxu1  ;;  %vm4447_vm12 = vcmp.eq.s32.totalorder %v4443_v60, 1 }
 0xf65   :  { %v4951_v1 = vmul.f32 -1.442695, %v4381_v62  ;;  %v4382_v52 = vadd.f32 %v4331_v63, %v4288_v3  ;;  %v4384_v7 = vadd.f32 %v4374_v2, %v4290_v41  ;;  %v4446_v3 = vpop.permute.xlu1 %4445 }
 0xf66   :  { %v4333_v40 = vpop.f32.mrf.mxu0  ;;  %v4376_v22 = vpop.f32.mrf.mxu1  ;;  %vm4448_vm13 = vcmp.eq.s32.totalorder %v4446_v3, 1 }
 0xf67   :  { %5754 = vpow2.f32 %v4951_v1  ;;  %v4953_v35 = vmul.f32 -1.442695, %v4382_v52  ;;  %v4385_v30 = vadd.f32 %v4333_v40, %v4291_v61  ;;  %v4955_v5 = vmul.f32 -1.442695, %v4384_v7 }
 0xf68   :  { %v4335_v27 = vpop.f32.mrf.mxu0  ;;  %v4378_v46 = vpop.f32.mrf.mxu1  ;;  %v4387_v43 = vadd.f32 %v4376_v22, %v4293_v19 }
 0xf69   :  { %5756 = vpow2.f32 %v4953_v35  ;;  %v4952_v29 = vmul.f32 -1.442695, %v4385_v30  ;;  %v4386_v0 = vadd.f32 %v4335_v27, %v4292_v39  ;;  %v4388_v24 = vadd.f32 %v4378_v46, %v4294_v15  ;;  %v7761_v35 = vld [vmem:[#allocation20_spill] sm:$0xff]  ;;  %v7763_v46 = vld [vmem:[#allocation49_spill] sm:$0xff] }
 0xf6a   :  { %v4456_v2 = vunpack.c.l.bf16 %v7761_v35  ;;  %v4457_v11 = vunpack.c.h.bf16 %v7761_v35  ;;  %v4459_v15 = vunpack.c.h.bf16 %v7763_v46 }
 0xf6b   :  { %5758 = vpow2.f32 %v4952_v29  ;;  %v4954_v17 = vmul.f32 -1.442695, %v4386_v0  ;;  %v4956_v48 = vmul.f32 -1.442695, %v4388_v24  ;;  %v7762_v29 = vld [vmem:[#allocation50_spill] sm:$0xff]  ;;  %v7764_v24 = vld [vmem:[#allocation51_spill] sm:$0xff] }
 0xf6c   :  { %v4460_v0 = vunpack.c.l.bf16 %v7762_v29 }
 0xf6d   :  { %5760 = vpow2.f32 %v4954_v17  ;;  %v4461_v17 = vunpack.c.h.bf16 %v7762_v29 }
 0xf6e   :  { %5762 = vtanh.f32 %v4383_v47 }
 0xf6f   :  { %5764 = vpow2.f32 %v4955_v5  ;;  %v4458_v5 = vunpack.c.l.bf16 %v7763_v46 }
 0xf74   :  { %v5755_v13 = vpop.eup %5754 }
 0xf75   :  { %v4395_v26 = vadd.f32 1.0, %v5755_v13  ;;  %v4463_v13 = vunpack.c.h.bf16 %v7764_v24 }
 0xf76   :  { %v5757_v14 = vpop.eup %5756 }
 0xf77   :  { %5766 = vrcp.f32 %v4395_v26  ;;  %v4407_v23 = vadd.f32 1.0, %v5757_v14  ;;  %v4462_v14 = vunpack.c.l.bf16 %v7764_v24 }
 0xf78   :  { %v5759_v6 = vpop.eup %5758  ;;  %5768 = vtanh.f32 %v4387_v43 }
 0xf79   :  { %5770 = vrcp.f32 %v4407_v23  ;;  %v4396_v10 = vadd.f32 1.0, %v5759_v6 }
 0xf7a   :  { %v5761_v33 = vpop.eup %5760  ;;  %5772 = vpow2.f32 %v4956_v48 }
 0xf7b   :  { %5774 = vrcp.f32 %v4396_v10  ;;  %v4408_v49 = vadd.f32 1.0, %v5761_v33  ;;  %v5763_v36 = vpop.eup %5762 }
 0xf7c   :  { %v5765_v4 = vpop.eup %5764 }
 0xf7d   :  { %5776 = vrcp.f32 %v4408_v49  ;;  %v4421_v53 = vadd.f32 1.0, %v5765_v4 }
 0xf7f   :  { %5778 = vrcp.f32 %v4421_v53 }
 0xf84   :  { %v5767_v44 = vpop.eup %5766 }
 0xf85   :  { %v5769_v25 = vpop.eup %5768  ;;  %v4429_v18 = vmul.f32 %v5767_v44, %v5763_v36 }
 0xf86   :  { %v5771_v51 = vpop.eup %5770 }
 0xf87   :  { %v5773_v20 = vpop.eup %5772  ;;  %v4427_v54 = vmul.f32 %v5771_v51, %v7492_v9 }
 0xf88   :  { %v5775_v32 = vpop.eup %5774  ;;  %v4422_v57 = vadd.f32 1.0, %v5773_v20 }
 0xf89   :  { %v7554_v55 = vadd.f32 %v4429_v18, %v4427_v54  ;;  %v4430_v56 = vmul.f32 %v5775_v32, %v5769_v25 }
 0xf8a   :  { %v5777_v12 = vpop.eup %5776 }
 0xf8b   :  { %v4428_v58 = vmul.f32 %v5777_v12, %v7496_v42  ;;  %5780 = vtanh.f32 %v7554_v55 }
 0xf8c   :  { %5782 = vrcp.f32 %v4422_v57  ;;  %v5779_v62 = vpop.eup %5778 }
 0xf8d   :  { %v7558_v59 = vadd.f32 %v4430_v56, %v4428_v58 }
 0xf8f   :  { %5784 = vtanh.f32 %v7558_v59 }
 0xf98   :  { %v5781_v21 = vpop.eup %5780 }
 0xf99   :  { %v4435_v9 = vmul.f32 %v5781_v21, %v5779_v62  ;;  %v5783_v63 = vpop.eup %5782 }
 0xf9b   :  { %v7562_v1 = vsel %vm4447_vm12, %v4435_v9, %v7500_v50 }
 0xf9c   :  { %v5785_v52 = vpop.eup %5784 }
 0xf9d   :  { %v4436_v42 = vmul.f32 %v5785_v52, %v5783_v63 }
 0xf9f   :  { %v4451_v61 = vpack.c.bf16 %v4436_v42, %v4435_v9  ;;  %v7565_v40 = vsel %vm4448_vm13, %v4436_v42, %v7503_v16 }
 0xfa1   :  { %4497 = vmatmul.mubr.bf16.vlgmr.msra.gmra.mxu0 %v4451_v61  ;;  %4540 = vmatmul.mubr.bf16.vlgmr.msra.gmra.mxu1 %v4451_v61  ;;  %v4612_v61 = vpop.permute.xlu0 %4611 }
 0xfa2   :  { %vm4616_vm14 = vcmp.eq.s32.totalorder %v4612_v61, 1 }
0x1061   :  { %v4498_v30 = vpop.f32.mrf.mxu0  ;;  %v4541_v37 = vpop.f32.mrf.mxu1 }
0x1062   :  { %v4550_v39 = vadd.f32 %v4498_v30, %v4456_v2  ;;  %v4552_v43 = vadd.f32 %v4541_v37, %v4458_v5 }
0x1063   :  { %v4500_v38 = vpop.f32.mrf.mxu0  ;;  %v4543_v22 = vpop.f32.mrf.mxu1 }
0x1064   :  { %v4957_v27 = vmul.f32 -1.442695, %v4550_v39  ;;  %v4551_v50 = vadd.f32 %v4500_v38, %v4457_v11  ;;  %v4553_v47 = vadd.f32 %v4543_v22, %v4459_v15  ;;  %v4615_v39 = vpop.permute.xlu1 %4614 }
0x1065   :  { %v4502_v8 = vpop.f32.mrf.mxu0  ;;  %v4545_v7 = vpop.f32.mrf.mxu1  ;;  %vm4617_vm15 = vcmp.eq.s32.totalorder %v4615_v39, 1 }
0x1066   :  { %5786 = vpow2.f32 %v4957_v27  ;;  %v4959_v28 = vmul.f32 -1.442695, %v4551_v50  ;;  %v4554_v16 = vadd.f32 %v4502_v8, %v4460_v0  ;;  %v4961_v26 = vmul.f32 -1.442695, %v4553_v47 }
0x1067   :  { %v4504_v45 = vpop.f32.mrf.mxu0  ;;  %v4547_v19 = vpop.f32.mrf.mxu1  ;;  %v4556_v6 = vadd.f32 %v4545_v7, %v4462_v14 }
0x1068   :  { %5788 = vpow2.f32 %v4959_v28  ;;  %v4958_v31 = vmul.f32 -1.442695, %v4554_v16  ;;  %v4555_v41 = vadd.f32 %v4504_v45, %v4461_v17  ;;  %v4557_v48 = vadd.f32 %v4547_v19, %v4463_v13 }
0x106a   :  { %5790 = vpow2.f32 %v4958_v31  ;;  %v4960_v34 = vmul.f32 -1.442695, %v4555_v41  ;;  %v4962_v49 = vmul.f32 -1.442695, %v4557_v48 }
0x106c   :  { %5792 = vpow2.f32 %v4960_v34 }
0x106d   :  { %5794 = vtanh.f32 %v4552_v43 }
0x106e   :  { %5796 = vpow2.f32 %v4961_v26 }
0x1073   :  { %v5787_v23 = vpop.eup %5786 }
0x1074   :  { %v4564_v10 = vadd.f32 1.0, %v5787_v23 }
0x1075   :  { %v5789_v33 = vpop.eup %5788 }
0x1076   :  { %5798 = vrcp.f32 %v4564_v10  ;;  %v4576_v36 = vadd.f32 1.0, %v5789_v33 }
0x1077   :  { %v5791_v4 = vpop.eup %5790  ;;  %5800 = vtanh.f32 %v4556_v6 }
0x1078   :  { %5802 = vrcp.f32 %v4576_v36  ;;  %v4565_v44 = vadd.f32 1.0, %v5791_v4 }
0x1079   :  { %v5793_v25 = vpop.eup %5792  ;;  %5804 = vpow2.f32 %v4962_v49 }
0x107a   :  { %5806 = vrcp.f32 %v4565_v44  ;;  %v4577_v18 = vadd.f32 1.0, %v5793_v25  ;;  %v5795_v51 = vpop.eup %5794 }
0x107b   :  { %v5797_v53 = vpop.eup %5796 }
0x107c   :  { %5808 = vrcp.f32 %v4577_v18  ;;  %v4590_v12 = vadd.f32 1.0, %v5797_v53 }
0x107e   :  { %5810 = vrcp.f32 %v4590_v12 }
0x1083   :  { %v5799_v20 = vpop.eup %5798 }
0x1084   :  { %v5801_v54 = vpop.eup %5800  ;;  %v4598_v32 = vmul.f32 %v5799_v20, %v5795_v51 }
0x1085   :  { %v5803_v56 = vpop.eup %5802 }
0x1086   :  { %v5805_v57 = vpop.eup %5804  ;;  %v4596_v58 = vmul.f32 %v5803_v56, %v7554_v55 }
0x1087   :  { %v5807_v60 = vpop.eup %5806  ;;  %v4591_v3 = vadd.f32 1.0, %v5805_v57 }
0x1088   :  { %v4599_v62 = vmul.f32 %v5807_v60, %v5801_v54  ;;  %v4600_v21 = vadd.f32 %v4598_v32, %v4596_v58 }
0x1089   :  { %v5809_v9 = vpop.eup %5808 }
0x108a   :  { %v4597_v63 = vmul.f32 %v5809_v9, %v7558_v59  ;;  %5812 = vtanh.f32 %v4600_v21 }
0x108b   :  { %5814 = vrcp.f32 %v4591_v3  ;;  %v5811_v42 = vpop.eup %5810 }
0x108c   :  { %v4601_v52 = vadd.f32 %v4599_v62, %v4597_v63 }
0x108e   :  { %5816 = vtanh.f32 %v4601_v52 }
0x1097   :  { %v5813_v35 = vpop.eup %5812 }
0x1098   :  { %v4604_v2 = vmul.f32 %v5813_v35, %v5811_v42  ;;  %v5815_v30 = vpop.eup %5814 }
0x109a   :  { %v4618_v55 = vsel %vm4616_vm14, %v4604_v2, %v7562_v1 }
0x109b   :  { %v5817_v37 = vpop.eup %5816  ;;  %4620 = vst [vmem:[#allocation13] sm:$0xff] %v4618_v55 }
0x109c   :  { %v4605_v11 = vmul.f32 %v5817_v37, %v5815_v30 }
0x109e   :  { %v4619_v59 = vsel %vm4617_vm15, %v4605_v11, %v7565_v40 }
0x109f   :  { %4621 = vst [vmem:[#allocation13 + $0x8] sm:$0xff] %v4619_v59 }
0x10a0   :  { %5993 = shalt.err (!%p5990_p1)
}
0x10a1   :  { %s6021_s15 = smov 128   ;;  %s6022_s16 = smov 8  }
0x10a2   :  { %4633 = dma.vmem_to_hbm [thread:$0]  %s4628_s13, 256, %s7590_s8, [#allocation6], %s6021_s15, %s6021_s15, %s6022_s16  }
0x10a3   :  { %6008 = dma.done.wait [#allocation6], 256  }
0x10a4   :  { %6009 = vsyncadd [#allocation6], 4294967040 }
0x10a5   :  { %4637 = vsyncpa [#allocation5], 1 }
0x10a6   :  { %4638 = vsyncpa [#allocation8], 1 }
0x10a7   :  { %4639 = vsyncpa [#allocation11], 1 }
0x10a8   :  { %4640 = vsyncpa [#allocation6], 1 }

</bundles_post_ra>
